<compile_context>
chip_gen: v7x
topology: tpu7x:2x2x1
jax: 0.10.0
libtpu: 0.0.40
codegen_flags: <defaults>
</compile_context>

<pallas_src>
import functools

import jax
import jax.numpy as jnp
import numpy as np
from jax.experimental import pallas as pl
from jax.experimental.pallas import tpu as pltpu


# ----------------------------------------------------------------------------
# In-kernel helpers (register-level reflection padding, no VMEM scratch)
# ----------------------------------------------------------------------------
def _reflect_pad_last(x, pad):
    """Reflection-pad a (CB, TH, W) value along the last (lane) axis."""
    if pad == 0:
        return x
    W = x.shape[-1]
    left = [x[:, :, j:j + 1] for j in range(pad, 0, -1)]               # x[pad] .. x[1]
    right = [x[:, :, j:j + 1] for j in range(W - 2, W - 2 - pad, -1)]  # x[W-2] .. x[W-1-pad]
    return jnp.concatenate(left + [x] + right, axis=-1)


def _reflect_pad_sub(x, pad):
    """Reflection-pad a (CB, H, TW) value along the second-to-last (sublane) axis."""
    if pad == 0:
        return x
    H = x.shape[-2]
    top = [x[:, j:j + 1, :] for j in range(pad, 0, -1)]
    bot = [x[:, j:j + 1, :] for j in range(H - 2, H - 2 - pad, -1)]
    return jnp.concatenate(top + [x] + bot, axis=-2)


# ----------------------------------------------------------------------------
# Pallas kernels
# ----------------------------------------------------------------------------
def _strip_lane_kernel(K, DIL, PAD, inv_hw, x_ref, tbl_ref, o_ref, mean_ref):
    """Strip attention with the K taps shifted along the LAST axis (W).

    Block views:
      x_ref    : (CB, TH, W)      input activations (one H-tile)
      tbl_ref  : (CB, 1, K + 3)   packed [taps_0..K-1, inside_all, lamb_l, lamb_h]
      o_ref    : (CB, TH, W)      strip-attention output
      mean_ref : (CB, 1, 1)       per-(n, c) plane mean of the stored output,
                                  accumulated across the H-tile grid axis
    """
    x = x_ref[...].astype(jnp.float32)
    W = x.shape[-1]

    # Reflection pad + K-tap weighted sum entirely on register values: the
    # shifted reads are XLU lane shifts that co-issue with the VPU FMAs
    # (no VMEM pad scratch -> no extra vst + K vlds per grid step).
    xp = _reflect_pad_last(x, PAD)
    acc = jnp.zeros_like(x)
    for k in range(K):                                         # static unroll
        tap = tbl_ref[:, :, k:k + 1].astype(jnp.float32)       # (CB, 1, 1)
        acc = acc + tap * xp[:, :, k * DIL:k * DIL + W]

    gap = jnp.mean(x, axis=-1, keepdims=True)                  # (CB, TH, 1)
    ia = tbl_ref[:, :, K + 0:K + 1].astype(jnp.float32)
    ll = tbl_ref[:, :, K + 1:K + 2].astype(jnp.float32)
    lh = tbl_ref[:, :, K + 2:K + 3].astype(jnp.float32)
    out = (acc * (ia + 1.0) - ia * gap) * ll + x * (lh + 1.0)
    out_stored = out.astype(o_ref.dtype)
    o_ref[...] = out_stored

    # Plane mean of the *stored* output (feeds the W-direction filter
    # generator; saves a full-tensor HBM re-read).  Accumulated over H-tiles.
    @pl.when(pl.program_id(2) == 0)
    def _():
        mean_ref[...] = jnp.zeros_like(mean_ref)

    part = jnp.sum(out_stored.astype(jnp.float32), axis=-1, keepdims=True)
    part = jnp.sum(part, axis=-2, keepdims=True)               # (CB, 1, 1)
    mean_ref[...] += part * inv_hw


def _strip_sub_combine_kernel(K, DIL, PAD, y_ref, x_ref, tbl_ref, o_ref):
    """Strip attention with taps shifted along the SECOND-TO-LAST axis (H),
    fused with the final `gamma * out + x * beta` combine.

    Block views:
      y_ref   : (CB, H, TW)    output of the first strip pass (one W-tile)
      x_ref   : (CB, H, TW)    original input (for the final combine)
      tbl_ref : (CB, 1, K + 5) packed [taps, inside_all, lamb_l, lamb_h, gamma, beta]
      o_ref   : (CB, H, TW)    final output (aliased onto y's HBM buffer)
    """
    y = y_ref[...].astype(jnp.float32)
    H = y.shape[-2]

    yp = _reflect_pad_sub(y, PAD)
    acc = jnp.zeros_like(y)
    for k in range(K):
        tap = tbl_ref[:, :, k:k + 1].astype(jnp.float32)       # (CB, 1, 1)
        acc = acc + tap * yp[:, k * DIL:k * DIL + H, :]

    gap = jnp.mean(y, axis=-2, keepdims=True)                  # (CB, 1, TW)
    ia = tbl_ref[:, :, K + 0:K + 1].astype(jnp.float32)
    ll = tbl_ref[:, :, K + 1:K + 2].astype(jnp.float32)
    lh = tbl_ref[:, :, K + 2:K + 3].astype(jnp.float32)
    gamma = tbl_ref[:, :, K + 3:K + 4].astype(jnp.float32)
    beta = tbl_ref[:, :, K + 4:K + 5].astype(jnp.float32)

    strip = (acc * (ia + 1.0) - ia * gap) * ll + y * (lh + 1.0)
    out = gamma * strip + x_ref[...].astype(jnp.float32) * beta
    o_ref[...] = out.astype(o_ref.dtype)


# ----------------------------------------------------------------------------
# Tiling / VMEM heuristics
# ----------------------------------------------------------------------------
_DEF_VMEM_FALLBACK = 32 * 1024 * 1024


@functools.lru_cache(maxsize=1)
def _vmem_limit_bytes():
    """Scoped-VMEM limit ≈ half of physical VMEM (64 MiB on v5e/v6e, 32 MiB on v7x)."""
    try:
        cap = int(pltpu.get_tpu_info().vmem_capacity_bytes)
    except Exception:  # noqa: BLE001 - conservative fallback, safe on all gens
        return _DEF_VMEM_FALLBACK
    return max(_DEF_VMEM_FALLBACK, min(cap // 2, 96 * 1024 * 1024))


def _round_up(v, m):
    return -(-v // m) * m


def _block_vmem_bytes(cb, d1, d2, itemsize):
    """VMEM bytes of a (cb, d1, d2) block including (8, 128) tile padding."""
    return cb * _round_up(d1, 8) * _round_up(d2, 128) * itemsize


def _divisors_desc(n):
    return [d for d in range(n, 0, -1) if n % d == 0]


def _pick_tiles(C, S, quantum, block_dims, io_itemsize, n_io_blocks, n_f32_temps,
                budget):
    """Pick (cb, ts): channel block (divides C) and tile of the non-shift spatial
    axis (divides S; multiple of `quantum` unless full).  Maximizes block size
    subject to an approximate resident-VMEM budget counting the double-buffered
    IO blocks plus f32 in-kernel temporaries."""
    ts_opts = [t for t in _divisors_desc(S) if t == S or t % quantum == 0]
    best, best_sz = (1, ts_opts[-1]), -1
    for cb in _divisors_desc(C):
        for ts in ts_opts:
            d1, d2 = block_dims(ts)
            need = (n_io_blocks * 2 * _block_vmem_bytes(cb, d1, d2, io_itemsize)
                    + n_f32_temps * _block_vmem_bytes(cb, d1, d2, 4))
            if need <= budget and cb * ts > best_sz:
                best, best_sz = (cb, ts), cb * ts
    return best


def _pack_param_table(taps, per_channel):
    """Pack per-(n, c) taps (N, C, K) and per-channel scalars (C,) into a single
    (N, C, 1, K + len(per_channel)) f32 side table (one small DMA per grid step)."""
    N, C, K = taps.shape
    cols = [taps.astype(jnp.float32)]
    for p in per_channel:
        cols.append(jnp.broadcast_to(p.astype(jnp.float32).reshape(1, C, 1), (N, C, 1)))
    return jnp.concatenate(cols, axis=-1).reshape(N, C, 1, K + len(per_channel))


# ----------------------------------------------------------------------------
# Wrappers
# ----------------------------------------------------------------------------
def strip_att_lane(x, tbl, *, kernel, dilation, cb, th, out_dtype):
    """spatial_strip_att with the strip along W (PyTorch H=True branch).

    Returns (out, plane_mean): plane_mean is the (N, C) mean of `out` over
    (H, W), accumulated inside the kernel across H-tiles."""
    N, C, H, W = x.shape
    pad = dilation * (kernel - 1) // 2
    assert dilation * (kernel - 1) % 2 == 0, "expect odd effective kernel"
    assert 0 <= pad < W, "reflection pad must be smaller than width"
    assert C % cb == 0 and H % th == 0
    assert th == H or th % 8 == 0, "H tile must be sublane aligned or full"
    P = tbl.shape[-1]

    plane_spec = pl.BlockSpec((None, cb, th, W), lambda n, c, h: (n, c, h, 0))
    tbl_spec = pl.BlockSpec((None, cb, 1, P), lambda n, c, h: (n, c, 0, 0))
    mean_spec = pl.BlockSpec((None, cb, 1, 1), lambda n, c, h: (n, c, 0, 0))

    kern = functools.partial(_strip_lane_kernel, kernel, dilation, pad,
                             1.0 / float(H * W))
    out, mean = pl.pallas_call(
        kern,
        out_shape=(jax.ShapeDtypeStruct((N, C, H, W), out_dtype),
                   jax.ShapeDtypeStruct((N, C, 1, 1), jnp.float32)),
        grid=(N, C // cb, H // th),
        in_specs=[plane_spec, tbl_spec],
        out_specs=(plane_spec, mean_spec),
        compiler_params=pltpu.CompilerParams(
            dimension_semantics=("parallel", "parallel", "arbitrary"),
            vmem_limit_bytes=_vmem_limit_bytes()),
    )(x, tbl)
    return out, mean.reshape(N, C)


def strip_att_sub_combine(y, x, tbl, *, kernel, dilation, cb, tw):
    """spatial_strip_att with the strip along H (PyTorch H=False branch), fused
    with the final `gamma * out + x * beta` combine.  The dead `y` buffer is
    aliased onto the output when dtypes match (no extra HBM allocation)."""
    N, C, H, W = y.shape
    pad = dilation * (kernel - 1) // 2
    assert dilation * (kernel - 1) % 2 == 0, "expect odd effective kernel"
    assert 0 <= pad < H, "reflection pad must be smaller than height"
    assert C % cb == 0 and W % tw == 0
    assert tw == W or tw % 128 == 0, "W tile must be lane aligned or full"
    P = tbl.shape[-1]
    out_dtype = x.dtype
    io_aliases = {0: 0} if y.dtype == out_dtype else {}

    plane_spec = pl.BlockSpec((None, cb, H, tw), lambda n, c, w: (n, c, 0, w))
    tbl_spec = pl.BlockSpec((None, cb, 1, P), lambda n, c, w: (n, c, 0, 0))

    kern = functools.partial(_strip_sub_combine_kernel, kernel, dilation, pad)
    return pl.pallas_call(
        kern,
        out_shape=jax.ShapeDtypeStruct((N, C, H, W), out_dtype),
        grid=(N, C // cb, W // tw),
        in_specs=[plane_spec, plane_spec, tbl_spec],
        out_specs=plane_spec,
        input_output_aliases=io_aliases,
        compiler_params=pltpu.CompilerParams(
            dimension_semantics=("parallel", "parallel", "parallel"),
            vmem_limit_bytes=_vmem_limit_bytes()),
    )(y, x, tbl)


def cubic_attention_forward(x, params, *, kernel, dilation, group,
                            intermediate_dtype=None, tile_override=None,
                            vmem_budget_bytes=None):
    """Forward pass of the PyTorch `cubic_attention` module (NCHW input).

    intermediate_dtype: optional lower-precision dtype (e.g. bf16) for the
      out_h HBM round trip between the two kernels (cuts ~30% of HBM traffic).
    tile_override: optional (cb, th, tw) for testing the tiled paths.
    """
    N, C, H, W = x.shape
    K = kernel
    cpg = C // group
    inter_dt = x.dtype if intermediate_dtype is None else jnp.dtype(intermediate_dtype)

    if vmem_budget_bytes is None:
        vmem_budget_bytes = int(0.6 * _vmem_limit_bytes())

    if tile_override is not None:
        cb1, th = tile_override[0], tile_override[1]
        cb2, tw = tile_override[0], tile_override[2]
    else:
        cb1, th = _pick_tiles(C, H, 8, lambda t: (t, W), x.dtype.itemsize,
                              n_io_blocks=2, n_f32_temps=5,
                              budget=vmem_budget_bytes)
        cb2, tw = _pick_tiles(C, W, 128, lambda t: (H, t),
                              max(x.dtype.itemsize, jnp.dtype(inter_dt).itemsize),
                              n_io_blocks=3, n_f32_temps=6,
                              budget=vmem_budget_bytes)

    # H-direction filter: GAP(x) -> 1x1 conv -> tanh (tiny plain-XLA glue),
    # expanded per channel and packed with the affine params into one table.
    f_h = jnp.tanh(jnp.mean(x.astype(jnp.float32), axis=(2, 3))
                   @ params["conv_h"].T)                                # (N, G*K)
    taps_h = jnp.repeat(f_h.reshape(N, group, K), cpg, axis=1)          # (N, C, K)
    tbl_h = _pack_param_table(taps_h, (params["inside_all_h"],
                                       params["lamb_l_h"], params["lamb_h_h"]))

    out_h, mean_h = strip_att_lane(x, tbl_h, kernel=K, dilation=dilation,
                                   cb=cb1, th=th, out_dtype=inter_dt)

    # W-direction filter from the plane means emitted by the first kernel
    # (no full-tensor re-read of out_h just for a global average pool).
    f_w = jnp.tanh(mean_h @ params["conv_w"].T)
    taps_w = jnp.repeat(f_w.reshape(N, group, K), cpg, axis=1)
    tbl_w = _pack_param_table(taps_w, (params["inside_all_w"], params["lamb_l_w"],
                                       params["lamb_h_w"], params["gamma"],
                                       params["beta"]))

    return strip_att_sub_combine(out_h, x, tbl_w, kernel=K, dilation=dilation,
                                 cb=cb2, tw=tw)


# ----------------------------------------------------------------------------
# Pure-JAX reference (mirrors the PyTorch forward) for verification
# ----------------------------------------------------------------------------
def _strip_att_ref(x, filt, inside_all, lamb_l, lamb_h,
                   kernel, dilation, group, H=True):
    n, c, h, w = x.shape
    pad = dilation * (kernel - 1) // 2
    cpg = c // group
    a = jnp.repeat(filt, cpg, axis=1)                      # (n, c, k)
    if H:
        xp = jnp.pad(x, ((0, 0), (0, 0), (0, 0), (pad, pad)), mode="reflect")
        shifts = jnp.stack(
            [xp[:, :, :, i * dilation:i * dilation + w] for i in range(kernel)], axis=2)
        gap = jnp.mean(x, axis=3, keepdims=True)
    else:
        xp = jnp.pad(x, ((0, 0), (0, 0), (pad, pad), (0, 0)), mode="reflect")
        shifts = jnp.stack(
            [xp[:, :, i * dilation:i * dilation + h, :] for i in range(kernel)], axis=2)
        gap = jnp.mean(x, axis=2, keepdims=True)
    out = jnp.sum(shifts * a[:, :, :, None, None], axis=2)
    ia = inside_all[None, :, None, None]
    out_low = (out * (ia + 1.0) - ia * gap) * lamb_l[None, :, None, None]
    out_high = x * (lamb_h[None, :, None, None] + 1.0)
    return out_low + out_high


def cubic_attention_ref(x, params, *, kernel, dilation, group):
    n = x.shape[0]
    f_h = jnp.tanh(jnp.mean(x, axis=(2, 3)) @ params["conv_h"].T
                   ).reshape(n, group, kernel)
    y = _strip_att_ref(x, f_h, params["inside_all_h"], params["lamb_l_h"],
                       params["lamb_h_h"], kernel, dilation, group, H=True)
    f_w = jnp.tanh(jnp.mean(y, axis=(2, 3)) @ params["conv_w"].T
                   ).reshape(n, group, kernel)
    y = _strip_att_ref(y, f_w, params["inside_all_w"], params["lamb_l_w"],
                       params["lamb_h_w"], kernel, dilation, group, H=False)
    return (params["gamma"][None, :, None, None] * y
            + x * params["beta"][None, :, None, None])


# ----------------------------------------------------------------------------
if __name__ == "__main__":
    N, C, H, W = 2, 8, 16, 16
    group, dilation, kernel = 2, 1, 3

    key = jax.random.PRNGKey(0)
    keys = jax.random.split(key, 11)
    x = jax.random.normal(keys[0], (N, C, H, W), jnp.float32)

    # Nonzero synthetic parameters (PyTorch defaults would make the module an
    # identity; use random values so the kernel compute path is exercised).
    params = dict(
        conv_h=0.2 * jax.random.normal(keys[1], (group * kernel, C), jnp.float32),
        conv_w=0.2 * jax.random.normal(keys[2], (group * kernel, C), jnp.float32),
        inside_all_h=0.1 * jax.random.normal(keys[3], (C,), jnp.float32),
        lamb_l_h=0.1 * jax.random.normal(keys[4], (C,), jnp.float32),
        lamb_h_h=0.1 * jax.random.normal(keys[5], (C,), jnp.float32),
        inside_all_w=0.1 * jax.random.normal(keys[6], (C,), jnp.float32),
        lamb_l_w=0.1 * jax.random.normal(keys[7], (C,), jnp.float32),
        lamb_h_w=0.1 * jax.random.normal(keys[8], (C,), jnp.float32),
        gamma=0.1 * jax.random.normal(keys[9], (C,), jnp.float32),
        beta=jnp.ones((C,), jnp.float32)
        + 0.1 * jax.random.normal(keys[10], (C,), jnp.float32),
    )

    ref = cubic_attention_ref(x, params, kernel=kernel, dilation=dilation,
                              group=group)

    # Default path: auto-picked (full-plane) blocks.
    fwd = jax.jit(functools.partial(cubic_attention_forward, kernel=kernel,
                                    dilation=dilation, group=group))
    out = jax.block_until_ready(fwd(x, params))
    np.testing.assert_allclose(np.asarray(out), np.asarray(ref),
                               rtol=1e-5, atol=1e-5)

    # Forced small tiles: exercises the multi-channel-block and H-tiled
    # (plane-mean accumulation) paths used for large images / v7x VMEM.
    fwd_tiled = jax.jit(functools.partial(cubic_attention_forward, kernel=kernel,
                                          dilation=dilation, group=group,
                                          tile_override=(2, 8, W)))
    out_t = jax.block_until_ready(fwd_tiled(x, params))
    np.testing.assert_allclose(np.asarray(out_t), np.asarray(ref),
                               rtol=1e-5, atol=1e-5)

    print("KERNEL_OK")
</pallas_src>

<mosaic_0001>
module attributes {stable_mosaic.version = 11 : i64} {
  func.func @_strip_lane_kernel(%arg0: i32, %arg1: i32, %arg2: i32, %arg3: memref<1x8x16x16xf32, #tpu.memory_space<vmem>>, %arg4: memref<1x8x1x6xf32, #tpu.memory_space<vmem>>, %arg5: memref<1x8x16x16xf32, #tpu.memory_space<vmem>>, %arg6: memref<1x8x1x1xf32, #tpu.memory_space<vmem>>) attributes {dimension_semantics = [#tpu.dimension_semantics<parallel>, #tpu.dimension_semantics<parallel>, #tpu.dimension_semantics<arbitrary>], iteration_bounds = array<i64: 2, 1, 1>, scalar_prefetch = 0 : i64, scratch_operands = 0 : i64, tpu.core_type = #tpu.core_type<tc>, window_params = [{transform_indices = @transform_0, window_bounds = array<i64: 1, 8, 16, 16>}, {transform_indices = @transform_1, window_bounds = array<i64: 1, 8, 1, 6>}, {transform_indices = @transform_2, window_bounds = array<i64: 1, 8, 16, 16>}, {transform_indices = @transform_3, window_bounds = array<i64: 1, 8, 1, 1>}]} {
    %c0 = arith.constant 0 : index
    %c0_0 = arith.constant 0 : index
    %c0_1 = arith.constant 0 : index
    %c0_2 = arith.constant 0 : index
    %0 = vector.load %arg3[%c0, %c0_0, %c0_1, %c0_2] : memref<1x8x16x16xf32, #tpu.memory_space<vmem>>, vector<1x8x16x16xf32>
    %1 = vector.shape_cast %0 : vector<1x8x16x16xf32> to vector<8x16x16xf32>
    %2 = vector.extract_strided_slice %1 {offsets = [0, 0, 1], sizes = [8, 16, 1], strides = [1, 1, 1]} : vector<8x16x16xf32> to vector<8x16x1xf32>
    %3 = vector.extract_strided_slice %1 {offsets = [0, 0, 14], sizes = [8, 16, 1], strides = [1, 1, 1]} : vector<8x16x16xf32> to vector<8x16x1xf32>
    %4 = tpu.concatenate %2, %1, %3 in 2 : vector<8x16x1xf32>, vector<8x16x16xf32>, vector<8x16x1xf32> -> vector<8x16x18xf32>
    %cst = arith.constant 0.000000e+00 : f32
    %5 = vector.broadcast %cst : f32 to vector<8x16x16xf32>
    %c0_3 = arith.constant 0 : index
    %c0_4 = arith.constant 0 : index
    %c0_5 = arith.constant 0 : index
    %c0_6 = arith.constant 0 : index
    %6 = vector.load %arg4[%c0_3, %c0_4, %c0_5, %c0_6] : memref<1x8x1x6xf32, #tpu.memory_space<vmem>>, vector<1x8x1x1xf32>
    %7 = vector.shape_cast %6 : vector<1x8x1x1xf32> to vector<8x1x1xf32>
    %8 = vector.extract_strided_slice %4 {offsets = [0, 0, 0], sizes = [8, 16, 16], strides = [1, 1, 1]} : vector<8x16x18xf32> to vector<8x16x16xf32>
    %9 = vector.broadcast %7 : vector<8x1x1xf32> to vector<8x16x16xf32>
    %10 = arith.mulf %9, %8 : vector<8x16x16xf32>
    %11 = arith.addf %5, %10 : vector<8x16x16xf32>
    %c0_7 = arith.constant 0 : index
    %c0_8 = arith.constant 0 : index
    %c0_9 = arith.constant 0 : index
    %c1 = arith.constant 1 : index
    %12 = vector.load %arg4[%c0_7, %c0_8, %c0_9, %c1] : memref<1x8x1x6xf32, #tpu.memory_space<vmem>>, vector<1x8x1x1xf32>
    %13 = vector.shape_cast %12 : vector<1x8x1x1xf32> to vector<8x1x1xf32>
    %14 = vector.extract_strided_slice %4 {offsets = [0, 0, 1], sizes = [8, 16, 16], strides = [1, 1, 1]} : vector<8x16x18xf32> to vector<8x16x16xf32>
    %15 = vector.broadcast %13 : vector<8x1x1xf32> to vector<8x16x16xf32>
    %16 = arith.mulf %15, %14 : vector<8x16x16xf32>
    %17 = arith.addf %11, %16 : vector<8x16x16xf32>
    %c0_10 = arith.constant 0 : index
    %c0_11 = arith.constant 0 : index
    %c0_12 = arith.constant 0 : index
    %c2 = arith.constant 2 : index
    %18 = vector.load %arg4[%c0_10, %c0_11, %c0_12, %c2] : memref<1x8x1x6xf32, #tpu.memory_space<vmem>>, vector<1x8x1x1xf32>
    %19 = vector.shape_cast %18 : vector<1x8x1x1xf32> to vector<8x1x1xf32>
    %20 = vector.extract_strided_slice %4 {offsets = [0, 0, 2], sizes = [8, 16, 16], strides = [1, 1, 1]} : vector<8x16x18xf32> to vector<8x16x16xf32>
    %21 = vector.broadcast %19 : vector<8x1x1xf32> to vector<8x16x16xf32>
    %22 = arith.mulf %21, %20 : vector<8x16x16xf32>
    %23 = arith.addf %17, %22 : vector<8x16x16xf32>
    %cst_13 = arith.constant dense<0.000000e+00> : vector<8x16xf32>
    %24 = vector.multi_reduction <add>, %1, %cst_13 [2] : vector<8x16x16xf32> to vector<8x16xf32>
    %25 = vector.shape_cast %24 : vector<8x16xf32> to vector<8x16x1xf32>
    %cst_14 = arith.constant 1.600000e+01 : f32
    %26 = vector.broadcast %cst_14 : f32 to vector<8x16x1xf32>
    %27 = arith.divf %25, %26 : vector<8x16x1xf32>
    %c0_15 = arith.constant 0 : index
    %c0_16 = arith.constant 0 : index
    %c0_17 = arith.constant 0 : index
    %c3 = arith.constant 3 : index
    %28 = vector.load %arg4[%c0_15, %c0_16, %c0_17, %c3] : memref<1x8x1x6xf32, #tpu.memory_space<vmem>>, vector<1x8x1x1xf32>
    %29 = vector.shape_cast %28 : vector<1x8x1x1xf32> to vector<8x1x1xf32>
    %c0_18 = arith.constant 0 : index
    %c0_19 = arith.constant 0 : index
    %c0_20 = arith.constant 0 : index
    %c4 = arith.constant 4 : index
    %30 = vector.load %arg4[%c0_18, %c0_19, %c0_20, %c4] : memref<1x8x1x6xf32, #tpu.memory_space<vmem>>, vector<1x8x1x1xf32>
    %31 = vector.shape_cast %30 : vector<1x8x1x1xf32> to vector<8x1x1xf32>
    %c0_21 = arith.constant 0 : index
    %c0_22 = arith.constant 0 : index
    %c0_23 = arith.constant 0 : index
    %c5 = arith.constant 5 : index
    %32 = vector.load %arg4[%c0_21, %c0_22, %c0_23, %c5] : memref<1x8x1x6xf32, #tpu.memory_space<vmem>>, vector<1x8x1x1xf32>
    %33 = vector.shape_cast %32 : vector<1x8x1x1xf32> to vector<8x1x1xf32>
    %cst_24 = arith.constant 1.000000e+00 : f32
    %34 = vector.broadcast %cst_24 : f32 to vector<8x1x1xf32>
    %35 = arith.addf %29, %34 : vector<8x1x1xf32>
    %36 = vector.broadcast %35 : vector<8x1x1xf32> to vector<8x16x16xf32>
    %37 = arith.mulf %23, %36 : vector<8x16x16xf32>
    %38 = vector.broadcast %29 : vector<8x1x1xf32> to vector<8x16x1xf32>
    %39 = arith.mulf %38, %27 : vector<8x16x1xf32>
    %40 = vector.broadcast %39 : vector<8x16x1xf32> to vector<8x16x16xf32>
    %41 = arith.subf %37, %40 : vector<8x16x16xf32>
    %42 = vector.broadcast %31 : vector<8x1x1xf32> to vector<8x16x16xf32>
    %43 = arith.mulf %41, %42 : vector<8x16x16xf32>
    %cst_25 = arith.constant 1.000000e+00 : f32
    %44 = vector.broadcast %cst_25 : f32 to vector<8x1x1xf32>
    %45 = arith.addf %33, %44 : vector<8x1x1xf32>
    %46 = vector.broadcast %45 : vector<8x1x1xf32> to vector<8x16x16xf32>
    %47 = arith.mulf %1, %46 : vector<8x16x16xf32>
    %48 = arith.addf %43, %47 : vector<8x16x16xf32>
    %c0_26 = arith.constant 0 : index
    %c0_27 = arith.constant 0 : index
    %c0_28 = arith.constant 0 : index
    %c0_29 = arith.constant 0 : index
    %49 = vector.load %arg5[%c0_26, %c0_27, %c0_28, %c0_29] : memref<1x8x16x16xf32, #tpu.memory_space<vmem>>, vector<1x8x16x16xf32>
    %50 = vector.shape_cast %49 : vector<1x8x16x16xf32> to vector<8x16x16xf32>
    %51 = vector.shape_cast %48 : vector<8x16x16xf32> to vector<1x8x16x16xf32>
    tpu.vector_store %arg5[%c0_26, %c0_27, %c0_28, %c0_29], %51 {strides = array<i32>} : memref<1x8x16x16xf32, #tpu.memory_space<vmem>>, vector<1x8x16x16xf32>,
    %c0_i32 = arith.constant 0 : i32
    %52 = arith.cmpi eq, %arg2, %c0_i32 : i32
    %53 = arith.extui %52 : i1 to i32
    %c0_i32_30 = arith.constant 0 : i32
    %54 = arith.cmpi ne, %53, %c0_i32_30 : i32
    scf.if %54 {
      %cst_42 = arith.constant 0.000000e+00 : f32
      %67 = vector.broadcast %cst_42 : f32 to vector<8x1x1xf32>
      %c0_43 = arith.constant 0 : index
      %c0_44 = arith.constant 0 : index
      %c0_45 = arith.constant 0 : index
      %c0_46 = arith.constant 0 : index
      %68 = vector.load %arg6[%c0_43, %c0_44, %c0_45, %c0_46] : memref<1x8x1x1xf32, #tpu.memory_space<vmem>>, vector<1x8x1x1xf32>
      %69 = vector.shape_cast %68 : vector<1x8x1x1xf32> to vector<8x1x1xf32>
      %70 = vector.shape_cast %67 : vector<8x1x1xf32> to vector<1x8x1x1xf32>
      tpu.vector_store %arg6[%c0_43, %c0_44, %c0_45, %c0_46], %70 {strides = array<i32>} : memref<1x8x1x1xf32, #tpu.memory_space<vmem>>, vector<1x8x1x1xf32>,
    } else {
    }
    %cst_31 = arith.constant dense<0.000000e+00> : vector<8x16xf32>
    %55 = vector.multi_reduction <add>, %48, %cst_31 [2] : vector<8x16x16xf32> to vector<8x16xf32>
    %56 = vector.shape_cast %55 : vector<8x16xf32> to vector<8x16x1xf32>
    %cst_32 = arith.constant dense<0.000000e+00> : vector<8x1xf32>
    %57 = vector.multi_reduction <add>, %56, %cst_32 [1] : vector<8x16x1xf32> to vector<8x1xf32>
    %58 = vector.shape_cast %57 : vector<8x1xf32> to vector<8x1x1xf32>
    %c0_33 = arith.constant 0 : index
    %c0_34 = arith.constant 0 : index
    %c0_35 = arith.constant 0 : index
    %c0_36 = arith.constant 0 : index
    %59 = vector.load %arg6[%c0_33, %c0_34, %c0_35, %c0_36] : memref<1x8x1x1xf32, #tpu.memory_space<vmem>>, vector<1x8x1x1xf32>
    %60 = vector.shape_cast %59 : vector<1x8x1x1xf32> to vector<8x1x1xf32>
    %cst_37 = arith.constant 3.906250e-03 : f32
    %61 = vector.broadcast %cst_37 : f32 to vector<8x1x1xf32>
    %62 = arith.mulf %58, %61 : vector<8x1x1xf32>
    %63 = arith.addf %60, %62 : vector<8x1x1xf32>
    %c0_38 = arith.constant 0 : index
    %c0_39 = arith.constant 0 : index
    %c0_40 = arith.constant 0 : index
    %c0_41 = arith.constant 0 : index
    %64 = vector.load %arg6[%c0_38, %c0_39, %c0_40, %c0_41] : memref<1x8x1x1xf32, #tpu.memory_space<vmem>>, vector<1x8x1x1xf32>
    %65 = vector.shape_cast %64 : vector<1x8x1x1xf32> to vector<8x1x1xf32>
    %66 = vector.shape_cast %63 : vector<8x1x1xf32> to vector<1x8x1x1xf32>
    tpu.vector_store %arg6[%c0_38, %c0_39, %c0_40, %c0_41], %66 {strides = array<i32>} : memref<1x8x1x1xf32, #tpu.memory_space<vmem>>, vector<1x8x1x1xf32>,
    return
  }
  func.func @transform_0(%arg0: i32, %arg1: i32, %arg2: i32) -> (i32, i32, i32, i32) {
    %c0_i32 = arith.constant 0 : i32
    %c0_i32_0 = arith.constant 0 : i32
    return %arg0, %arg1, %arg2, %c0_i32 : i32, i32, i32, i32
  }
  func.func @transform_1(%arg0: i32, %arg1: i32, %arg2: i32) -> (i32, i32, i32, i32) {
    %c0_i32 = arith.constant 0 : i32
    %c0_i32_0 = arith.constant 0 : i32
    %c0_i32_1 = arith.constant 0 : i32
    return %arg0, %arg1, %c0_i32, %c0_i32_0 : i32, i32, i32, i32
  }
  func.func @transform_2(%arg0: i32, %arg1: i32, %arg2: i32) -> (i32, i32, i32, i32) {
    %c0_i32 = arith.constant 0 : i32
    %c0_i32_0 = arith.constant 0 : i32
    return %arg0, %arg1, %arg2, %c0_i32 : i32, i32, i32, i32
  }
  func.func @transform_3(%arg0: i32, %arg1: i32, %arg2: i32) -> (i32, i32, i32, i32) {
    %c0_i32 = arith.constant 0 : i32
    %c0_i32_0 = arith.constant 0 : i32
    %c0_i32_1 = arith.constant 0 : i32
    return %arg0, %arg1, %c0_i32, %c0_i32_0 : i32, i32, i32, i32
  }
}

module attributes {stable_mosaic.version = 11 : i64} {
  func.func @_strip_sub_combine_kernel(%arg0: i32, %arg1: i32, %arg2: i32, %arg3: memref<1x8x16x16xf32, #tpu.memory_space<vmem>>, %arg4: memref<1x8x16x16xf32, #tpu.memory_space<vmem>>, %arg5: memref<1x8x1x8xf32, #tpu.memory_space<vmem>>, %arg6: memref<1x8x16x16xf32, #tpu.memory_space<vmem>>) attributes {dimension_semantics = [#tpu.dimension_semantics<parallel>, #tpu.dimension_semantics<parallel>, #tpu.dimension_semantics<parallel>], iteration_bounds = array<i64: 2, 1, 1>, scalar_prefetch = 0 : i64, scratch_operands = 0 : i64, tpu.core_type = #tpu.core_type<tc>, window_params = [{transform_indices = @transform_0, window_bounds = array<i64: 1, 8, 16, 16>}, {transform_indices = @transform_1, window_bounds = array<i64: 1, 8, 16, 16>}, {transform_indices = @transform_2, window_bounds = array<i64: 1, 8, 1, 8>}, {transform_indices = @transform_3, window_bounds = array<i64: 1, 8, 16, 16>}]} {
    %c0 = arith.constant 0 : index
    %c0_0 = arith.constant 0 : index
    %c0_1 = arith.constant 0 : index
    %c0_2 = arith.constant 0 : index
    %0 = vector.load %arg3[%c0, %c0_0, %c0_1, %c0_2] : memref<1x8x16x16xf32, #tpu.memory_space<vmem>>, vector<1x8x16x16xf32>
    %1 = vector.shape_cast %0 : vector<1x8x16x16xf32> to vector<8x16x16xf32>
    %2 = vector.extract_strided_slice %1 {offsets = [0, 1, 0], sizes = [8, 1, 16], strides = [1, 1, 1]} : vector<8x16x16xf32> to vector<8x1x16xf32>
    %3 = vector.extract_strided_slice %1 {offsets = [0, 14, 0], sizes = [8, 1, 16], strides = [1, 1, 1]} : vector<8x16x16xf32> to vector<8x1x16xf32>
    %4 = tpu.concatenate %2, %1, %3 in 1 : vector<8x1x16xf32>, vector<8x16x16xf32>, vector<8x1x16xf32> -> vector<8x18x16xf32>
    %cst = arith.constant 0.000000e+00 : f32
    %5 = vector.broadcast %cst : f32 to vector<8x16x16xf32>
    %c0_3 = arith.constant 0 : index
    %c0_4 = arith.constant 0 : index
    %c0_5 = arith.constant 0 : index
    %c0_6 = arith.constant 0 : index
    %6 = vector.load %arg5[%c0_3, %c0_4, %c0_5, %c0_6] : memref<1x8x1x8xf32, #tpu.memory_space<vmem>>, vector<1x8x1x1xf32>
    %7 = vector.shape_cast %6 : vector<1x8x1x1xf32> to vector<8x1x1xf32>
    %8 = vector.extract_strided_slice %4 {offsets = [0, 0, 0], sizes = [8, 16, 16], strides = [1, 1, 1]} : vector<8x18x16xf32> to vector<8x16x16xf32>
    %9 = vector.broadcast %7 : vector<8x1x1xf32> to vector<8x16x16xf32>
    %10 = arith.mulf %9, %8 : vector<8x16x16xf32>
    %11 = arith.addf %5, %10 : vector<8x16x16xf32>
    %c0_7 = arith.constant 0 : index
    %c0_8 = arith.constant 0 : index
    %c0_9 = arith.constant 0 : index
    %c1 = arith.constant 1 : index
    %12 = vector.load %arg5[%c0_7, %c0_8, %c0_9, %c1] : memref<1x8x1x8xf32, #tpu.memory_space<vmem>>, vector<1x8x1x1xf32>
    %13 = vector.shape_cast %12 : vector<1x8x1x1xf32> to vector<8x1x1xf32>
    %14 = vector.extract_strided_slice %4 {offsets = [0, 1, 0], sizes = [8, 16, 16], strides = [1, 1, 1]} : vector<8x18x16xf32> to vector<8x16x16xf32>
    %15 = vector.broadcast %13 : vector<8x1x1xf32> to vector<8x16x16xf32>
    %16 = arith.mulf %15, %14 : vector<8x16x16xf32>
    %17 = arith.addf %11, %16 : vector<8x16x16xf32>
    %c0_10 = arith.constant 0 : index
    %c0_11 = arith.constant 0 : index
    %c0_12 = arith.constant 0 : index
    %c2 = arith.constant 2 : index
    %18 = vector.load %arg5[%c0_10, %c0_11, %c0_12, %c2] : memref<1x8x1x8xf32, #tpu.memory_space<vmem>>, vector<1x8x1x1xf32>
    %19 = vector.shape_cast %18 : vector<1x8x1x1xf32> to vector<8x1x1xf32>
    %20 = vector.extract_strided_slice %4 {offsets = [0, 2, 0], sizes = [8, 16, 16], strides = [1, 1, 1]} : vector<8x18x16xf32> to vector<8x16x16xf32>
    %21 = vector.broadcast %19 : vector<8x1x1xf32> to vector<8x16x16xf32>
    %22 = arith.mulf %21, %20 : vector<8x16x16xf32>
    %23 = arith.addf %17, %22 : vector<8x16x16xf32>
    %cst_13 = arith.constant dense<0.000000e+00> : vector<8x16xf32>
    %24 = vector.multi_reduction <add>, %1, %cst_13 [1] : vector<8x16x16xf32> to vector<8x16xf32>
    %25 = vector.shape_cast %24 : vector<8x16xf32> to vector<8x1x16xf32>
    %cst_14 = arith.constant 1.600000e+01 : f32
    %26 = vector.broadcast %cst_14 : f32 to vector<8x1x16xf32>
    %27 = arith.divf %25, %26 : vector<8x1x16xf32>
    %c0_15 = arith.constant 0 : index
    %c0_16 = arith.constant 0 : index
    %c0_17 = arith.constant 0 : index
    %c3 = arith.constant 3 : index
    %28 = vector.load %arg5[%c0_15, %c0_16, %c0_17, %c3] : memref<1x8x1x8xf32, #tpu.memory_space<vmem>>, vector<1x8x1x1xf32>
    %29 = vector.shape_cast %28 : vector<1x8x1x1xf32> to vector<8x1x1xf32>
    %c0_18 = arith.constant 0 : index
    %c0_19 = arith.constant 0 : index
    %c0_20 = arith.constant 0 : index
    %c4 = arith.constant 4 : index
    %30 = vector.load %arg5[%c0_18, %c0_19, %c0_20, %c4] : memref<1x8x1x8xf32, #tpu.memory_space<vmem>>, vector<1x8x1x1xf32>
    %31 = vector.shape_cast %30 : vector<1x8x1x1xf32> to vector<8x1x1xf32>
    %c0_21 = arith.constant 0 : index
    %c0_22 = arith.constant 0 : index
    %c0_23 = arith.constant 0 : index
    %c5 = arith.constant 5 : index
    %32 = vector.load %arg5[%c0_21, %c0_22, %c0_23, %c5] : memref<1x8x1x8xf32, #tpu.memory_space<vmem>>, vector<1x8x1x1xf32>
    %33 = vector.shape_cast %32 : vector<1x8x1x1xf32> to vector<8x1x1xf32>
    %c0_24 = arith.constant 0 : index
    %c0_25 = arith.constant 0 : index
    %c0_26 = arith.constant 0 : index
    %c6 = arith.constant 6 : index
    %34 = vector.load %arg5[%c0_24, %c0_25, %c0_26, %c6] : memref<1x8x1x8xf32, #tpu.memory_space<vmem>>, vector<1x8x1x1xf32>
    %35 = vector.shape_cast %34 : vector<1x8x1x1xf32> to vector<8x1x1xf32>
    %c0_27 = arith.constant 0 : index
    %c0_28 = arith.constant 0 : index
    %c0_29 = arith.constant 0 : index
    %c7 = arith.constant 7 : index
    %36 = vector.load %arg5[%c0_27, %c0_28, %c0_29, %c7] : memref<1x8x1x8xf32, #tpu.memory_space<vmem>>, vector<1x8x1x1xf32>
    %37 = vector.shape_cast %36 : vector<1x8x1x1xf32> to vector<8x1x1xf32>
    %cst_30 = arith.constant 1.000000e+00 : f32
    %38 = vector.broadcast %cst_30 : f32 to vector<8x1x1xf32>
    %39 = arith.addf %29, %38 : vector<8x1x1xf32>
    %40 = vector.broadcast %39 : vector<8x1x1xf32> to vector<8x16x16xf32>
    %41 = arith.mulf %23, %40 : vector<8x16x16xf32>
    %42 = vector.broadcast %29 : vector<8x1x1xf32> to vector<8x1x16xf32>
    %43 = arith.mulf %42, %27 : vector<8x1x16xf32>
    %44 = vector.broadcast %43 : vector<8x1x16xf32> to vector<8x16x16xf32>
    %45 = arith.subf %41, %44 : vector<8x16x16xf32>
    %46 = vector.broadcast %31 : vector<8x1x1xf32> to vector<8x16x16xf32>
    %47 = arith.mulf %45, %46 : vector<8x16x16xf32>
    %cst_31 = arith.constant 1.000000e+00 : f32
    %48 = vector.broadcast %cst_31 : f32 to vector<8x1x1xf32>
    %49 = arith.addf %33, %48 : vector<8x1x1xf32>
    %50 = vector.broadcast %49 : vector<8x1x1xf32> to vector<8x16x16xf32>
    %51 = arith.mulf %1, %50 : vector<8x16x16xf32>
    %52 = arith.addf %47, %51 : vector<8x16x16xf32>
    %53 = vector.broadcast %35 : vector<8x1x1xf32> to vector<8x16x16xf32>
    %54 = arith.mulf %53, %52 : vector<8x16x16xf32>
    %c0_32 = arith.constant 0 : index
    %c0_33 = arith.constant 0 : index
    %c0_34 = arith.constant 0 : index
    %c0_35 = arith.constant 0 : index
    %55 = vector.load %arg4[%c0_32, %c0_33, %c0_34, %c0_35] : memref<1x8x16x16xf32, #tpu.memory_space<vmem>>, vector<1x8x16x16xf32>
    %56 = vector.shape_cast %55 : vector<1x8x16x16xf32> to vector<8x16x16xf32>
    %57 = vector.broadcast %37 : vector<8x1x1xf32> to vector<8x16x16xf32>
    %58 = arith.mulf %56, %57 : vector<8x16x16xf32>
    %59 = arith.addf %54, %58 : vector<8x16x16xf32>
    %c0_36 = arith.constant 0 : index
    %c0_37 = arith.constant 0 : index
    %c0_38 = arith.constant 0 : index
    %c0_39 = arith.constant 0 : index
    %60 = vector.load %arg6[%c0_36, %c0_37, %c0_38, %c0_39] : memref<1x8x16x16xf32, #tpu.memory_space<vmem>>, vector<1x8x16x16xf32>
    %61 = vector.shape_cast %60 : vector<1x8x16x16xf32> to vector<8x16x16xf32>
    %62 = vector.shape_cast %59 : vector<8x16x16xf32> to vector<1x8x16x16xf32>
    tpu.vector_store %arg6[%c0_36, %c0_37, %c0_38, %c0_39], %62 {strides = array<i32>} : memref<1x8x16x16xf32, #tpu.memory_space<vmem>>, vector<1x8x16x16xf32>,
    return
  }
  func.func @transform_0(%arg0: i32, %arg1: i32, %arg2: i32) -> (i32, i32, i32, i32) {
    %c0_i32 = arith.constant 0 : i32
    %c0_i32_0 = arith.constant 0 : i32
    return %arg0, %arg1, %c0_i32, %arg2 : i32, i32, i32, i32
  }
  func.func @transform_1(%arg0: i32, %arg1: i32, %arg2: i32) -> (i32, i32, i32, i32) {
    %c0_i32 = arith.constant 0 : i32
    %c0_i32_0 = arith.constant 0 : i32
    return %arg0, %arg1, %c0_i32, %arg2 : i32, i32, i32, i32
  }
  func.func @transform_2(%arg0: i32, %arg1: i32, %arg2: i32) -> (i32, i32, i32, i32) {
    %c0_i32 = arith.constant 0 : i32
    %c0_i32_0 = arith.constant 0 : i32
    %c0_i32_1 = arith.constant 0 : i32
    return %arg0, %arg1, %c0_i32, %c0_i32_0 : i32, i32, i32, i32
  }
  func.func @transform_3(%arg0: i32, %arg1: i32, %arg2: i32) -> (i32, i32, i32, i32) {
    %c0_i32 = arith.constant 0 : i32
    %c0_i32_0 = arith.constant 0 : i32
    return %arg0, %arg1, %c0_i32, %arg2 : i32, i32, i32, i32
  }
}

</mosaic_0001>

<bundles_post_ra>
// kernel: cubic_attention_forward.3
= control target key start
LH: loop header
LB: loop body
LE: loop exit
PB: predicated region body
PF: predicated region fallthrough
CT: control target
= control target key end

     0   :  { %8 = vsyncpa [#allocation3], 0  ;;  %s2797_s0 = inlined_call_operand.hbm [shape: f32[2,8,16,16], index: 0, kind: input, shape index: {}, may-alias: {0,3}]   ;;  %s2798_s1 = inlined_call_operand.vmem [shape: f32[2,8,16,16], index: 1, kind: input, shape index: {}]   ;;  %s2799_s2 = inlined_call_operand.vmem [shape: f32[2,8,1,8], index: 2, kind: input, shape index: {}]   ;;  %s2800_s3 = inlined_call_operand.hbm [shape: f32[2,8,16,16], index: 3, kind: output, shape index: {}, may-alias: {0,3}]  }
   0x1   :  { %10 = vsyncpa [#allocation3 + $0x1], 0 }
   0x2   :  { %11 = vsyncpa [#allocation4], 0 }
   0x3   :  { %13 = vsyncpa [#allocation4 + $0x1], 0  ;;  %s1786_s12 = smov 0   ;;  %s1788_s13 = smov 0  }
   0x4   :  { %s1790_s14 = smov 0   ;;  %s1792_s15 = smov 0  }
   0x5   :  { %s1794_s16 = smov 0   ;;  %s1796_s17 = smov 0  }
   0x6 LB: > { %s1523_s18 = sadd.s32 4294967295, %s1750_s17   ;;  %s1524_s19 = sadd.s32 4294967294, %s1750_s17   ;;  %s1750_s17 = sphi %s1796_s17, %s19_s17   ;;  %s1746_s16 = sphi %s1794_s16, %s2940_s16   ;;  %s1742_s15 = sphi %s1792_s15, %s2939_s15   ;;  %s1738_s14 = sphi %s1790_s14, %s2938_s14   ;;  %s1734_s13 = sphi %s1788_s13, %s2937_s13   ;;  %s1730_s12 = sphi %s1786_s12, %s2936_s12  }
   0x7   : > { %s38_s20 = sadd.s32 1, %s1746_s16  ;;  %s49_s21 = sadd.s32 1, %s1738_s14 }
   0x8   : > { %p40_p0 = scmp.ge.s32.totalorder %s38_s20, 2  ;;  %p56_p1 = scmp.ne.s32.totalorder %s1738_s14, %s1734_s13 }
   0x9   : > { %p57_p2 = scmp.eq.s32.totalorder %s1750_s17, 0  ;;  %p62_p3 = scmp.ne.s32.totalorder %s1734_s13, %s1730_s12 }
   0xa   : > { %s2942_s20 = smov (%p40_p0, %s38_s20), 0  ;;  %p63_p5 = scmp.eq.s32.totalorder %s1523_s18, 0 }
   0xb   : > { %p1827_p4 = por %p57_p2, %p56_p1  ;;  %s42_s23 = ssub.s32 %s1746_s16, %s2942_s20 }
   0xc   : > { %p148_p6 = scmp.eq.s32.totalorder %s1523_s18, 1  ;;  %p47_p7 = scmp.eq.s32.totalorder %s42_s23, 0 }
   0xd   : > { %p1833_p8 = por %p63_p5, %p62_p3  ;;  %p154_p10 = scmp.eq.s32.totalorder %s1524_s19, 1 }
   0xe   : > { %p1837_p9 = por %p148_p6, %p56_p1  ;;  %p1556_p13 = scmp.lt.s32.totalorder %s1750_s17, 2 }
   0xf   : > { %s1842_s26 = scalar_select %p47_p7, %s1738_s14, %s49_s21  }
  0x10   : > { %s2843_s25 = scalar_select %p1837_p9, 1, 0 }
  0x11   : > { %p1844_p11 = por %p154_p10, %p62_p3  ;;  %s174_s28 = sand.u32 1, %s1738_s14  }
  0x12   : > { %s1527_s29 = sshll.u32 %s174_s28, 7  ;;  %s1541_s30 = sshll.u32 %s1746_s16, 11 }
  0x13   : > { %s2844_s27 = scalar_select %p1844_p11, 1, 0 }
  0x14   : > { %s1855_s6 = scalar_lea.hbm %s2797_s0, %s1541_s30  ;;  %s178_s7 = scalar_lea.vmem [#allocation2], %s1527_s29 }
  0x15   : > { %s189_s8 = sshll.u32 %s178_s7, 4  ;;  %p1861_p0 = pnand %p1556_p13, %p1827_p4  ;;  %s1857_s8 = int_to_ptr.vmem [resolvable:$true] %s189_s8 }
  0x16   : > { %s1866_s10 = scalar_lea.sflag [#allocation3], %s174_s28  ;;  %s1638_s11 = scalar_lea.hbm %s1855_s6, 2048 }
  0x17   : > { %p1639_p2 = scmp.ne.s32.totalorder %s1855_s6, %s1638_s11  ;;  %p1640_p3 = pneg %p1861_p0 }
  0x18   : > { %s1643_s21 = scalar_lea.hbm %s2797_s0, 4096  ;;  %p1644_p4 = scmp.lt.u32.totalorder %s1855_s6, %s2797_s0 }
  0x19   : > { %p1641_p5 = pnand %p1640_p3, %p1639_p2  ;;  %p1645_p7 = scmp.lt.u32.totalorder %s1643_s21, %s1638_s11 }
  0x1a   : > { %p1647_p13 = scmp.lt.u32.totalorder %s1638_s11, %s1855_s6 }
  0x1b   : > { %p1642_p6 = pneg %p1641_p5  ;;  %p1646_p10 = por %p1645_p7, %p1644_p4 }
  0x1d   : > { %p1648_p12 = por %p1647_p13, %p1646_p10 }
  0x1f   : > { %p1649_p1 = pnand %p1648_p12, %p1642_p6 }
  0x21   : > { %1652 = shalt.err (!%p1649_p1)
}
  0x22   : > { %s1653_s28 = scalar_lea.vmem %s1857_s8, 2048  ;;  %s1752_s29 = smov [#allocation2]  }
  0x23   : > { %p1654_p2 = scmp.ne.s32.totalorder %s1857_s8, %s1653_s28  ;;  %s1658_s30 = sshll.u32 %s1752_s29, 4  ;;  %s1659_s30 = int_to_ptr.vmem [resolvable:$false] %s1658_s30 }
  0x24   : > { %s1660_s4 = scalar_lea.vmem %s1659_s30, 4096  ;;  %p1661_p9 = scmp.lt.s32.totalorder %s1857_s8, %s1659_s30 }
  0x25   : > { %p1656_p5 = pnand %p1654_p2, %p1640_p3  ;;  %p1662_p4 = scmp.lt.s32.totalorder %s1660_s4, %s1653_s28 }
  0x27   : > { %p1657_p11 = pneg %p1656_p5  ;;  %p1663_p7 = por %p1662_p4, %p1661_p9 }
  0x29   : > { %p1664_p10 = pnand %p1663_p7, %p1657_p11 }
  0x2b   : > { %1667 = shalt.err (!%p1664_p10)
}
  0x2c   : > { %s1753_s5 = smov 128   ;;  %s1754_s7 = smov 8  }
  0x2d   : > { %1551 = dma.hbm_to_vmem [thread:$0]  (!%p1861_p0), %s1855_s6, 2048, %s1857_s8, %s1866_s10, %s1753_s5, %s1753_s5, %s1754_s7  }
  0x2e   : > { %p226_p12 = scmp.lt.s32.totalorder %s1750_s17, 3  ;;  %p2846_p1 = scmp.ge.s32.totalorder %s1750_s17, 1 }
  0x30   : > { %p227_p3 = pnand %p2846_p1, %p226_p12 }
  0x32   : > { %230 = sbr.rel (%p227_p3) target bundleno = 376 (0x178), region = 32 }
  0x39   : > { %s1898_s11 = sand.u32 1, %s1734_s13  }
  0x3a   : > { %s1531_s18 = sshll.u32 %s1898_s11, 7  ;;  %s233_s19 = scalar_lea.sflag [#allocation3], %s1898_s11 }
  0x3b   : > { %s1904_s21 = scalar_lea.vmem [#allocation2], %s1531_s18 }
  0x3c   : > { %1721 = dma.done.wait (%p1833_p8), %s233_s19, 2048  }
  0x3d   : > { %1723 = vsyncadd (%p1833_p8), %s233_s19, 4294965248  ;;  %p282_p9 = scmp.lt.s32.totalorder %s1742_s15, 1  ;;  %v450_v0 = vlaneseq  ;;  %v1755_v1 = vmov 0   ;;  %v1756_v20 = vmov 1   ;;  %v1757_v21 = vmov 2   ;;  %v2021_v42 = vld [vmem:[%s1904_s21 + $0x10] sm:$0xff] }
  0x3e   : > { %1619 = vset.pattern.permute.xlu1 %v1755_v1  ;;  %1618 = vset.pattern.permute.xlu0 %v1755_v1  ;;  %v1758_v25 = vmov 3   ;;  %v1759_v39 = vmov 4   ;;  %v1760_v40 = vmov 5   ;;  %v1761_v41 = vmov 6   ;;  %v2024_v43 = vld [vmem:[%s1904_s21 + $0x18] sm:$0xff]  ;;  %v2035_v49 = vld [vmem:[%s1904_s21 + $0x20] sm:$0xff] }
  0x3f   : > { %s1912_s6 = scalar_select %p282_p9, %s1742_s15, 1  ;;  %v451_v2 = vshrl.u32 %v450_v0, 7  ;;  %vm852_vm0 = vcmask 130048   ;;  %v2802_v48 = vmov 7   ;;  %2848 = vst [vmem:[#allocation9_spill] sm:$0xff] %v2035_v49  ;;  %v2038_v50 = vld [vmem:[%s1904_s21 + $0x28] sm:$0xff] }
  0x40   : > { %v862_v44 = vsel %vm852_vm0, %v2021_v42, 0.0  ;;  %v863_v45 = vsel %vm852_vm0, %v2024_v43, 0.0  ;;  %2849 = vst [vmem:[#allocation10_spill] sm:$0xff] %v2038_v50  ;;  %v2041_v51 = vld [vmem:[%s1904_s21] sm:$0xff]  ;;  %v2044_v52 = vld [vmem:[%s1904_s21 + $0x8] sm:$0xff]  ;;  %v2047_v53 = vld [vmem:[%s1904_s21 + $0x30] sm:$0xff] }
  0x41   : > { %s1535_s8 = sshll.u32 %s1912_s6, 3  ;;  %v1915_v3 = vsub.s32 0, %v451_v2  ;;  %v864_v46 = vadd.f32 %v863_v45, %v862_v44  ;;  %2850 = vst [vmem:[#allocation11_spill] sm:$0xff] %v2041_v51  ;;  %2851 = vst [vmem:[#allocation12_spill] sm:$0xff] %v2044_v52  ;;  %v2050_v54 = vld [vmem:[%s1904_s21 + $0x38] sm:$0xff]  ;;  %vm353_vm1 = vcmask 1040384  }
  0x42   : > { %s302_s22 = scalar_lea.vmem %s2799_s2, %s1535_s8  ;;  %2852 = vst [vmem:[#allocation13_spill] sm:$0xff] %v2047_v53  ;;  %2853 = vst [vmem:[#allocation14_spill] sm:$0xff] %v2050_v54  ;;  %v331_v56 = vrot.slane %v2035_v49, 1  ;;  %v360_v57 = vrot.slane %v2035_v49, 7  ;;  %v2804_v58 = vrot.slane %v2038_v50, 7  ;;  %v329_v59 = vrot.slane %v2041_v51, 1 }
  0x43   : > { %2847 = vst [vmem:[#allocation8_spill] sm:$0xff] %v1915_v3  ;;  %v1920_v4 = vld [vmem:[%s302_s22 + $0x2] sm:$0x1]  ;;  %v1922_v5 = vld [vmem:[%s302_s22] sm:$0x1]  ;;  %v865_v47 = vrot.slane %v864_v46, 4 }
  0x44   : > { %v1924_v6 = vld [vmem:[%s302_s22 + $0x3] sm:$0x1]  ;;  %v1928_v7 = vrot.slane %v1920_v4, %v1915_v3  ;;  %v1932_v8 = vrot.slane %v1922_v5, %v1915_v3  ;;  %v1934_v9 = vld [vmem:[%s302_s22 + $0x1] sm:$0x1]  ;;  %v1946_v12 = vld [vmem:[%s302_s22 + $0x5] sm:$0x1] }
  0x45   : > { %v1940_v10 = vrot.slane %v1924_v6, %v1915_v3  ;;  %v1944_v11 = vrot.slane %v1934_v9, %v1915_v3  ;;  %v1948_v13 = vld [vmem:[%s302_s22 + $0x4] sm:$0x1]  ;;  %v1954_v14 = vrot.slane %v1946_v12, %v1915_v3  ;;  %v441_v16 = vld [vmem:[%s302_s22 + $0x7] sm:$0x1]  ;;  %v1960_v17 = vld [vmem:[%s302_s22 + $0x6] sm:$0x1]  ;;  %v866_v55 = vadd.f32 %v865_v47, %v864_v46 }
  0x46   : > { %491 = vperm.xlu1 %1619, %v1928_v7   ;;  %483 = vperm.xlu0 %1618, %v1932_v8   ;;  %v1958_v15 = vrot.slane %v1948_v13, %v1915_v3  ;;  %v1965_v18 = vrot.slane %v441_v16, %v1915_v3  ;;  %v1969_v19 = vrot.slane %v1960_v17, %v1915_v3  ;;  %v934_v22 = vadd.f32 1.0, %v1922_v5  ;;  %v2067_v2 = vld [vmem:[%s1904_s21 + $0x50] sm:$0xff]  ;;  %s1542_s24 = sshll.u32 %s1912_s6, 7  ;;  %s2637_s30 = scalar_lea.vmem [#allocation5], %s1531_s18 }
  0x47   : > { %v937_v24 = vadd.f32 1.0, %v1924_v6  ;;  %v935_v27 = vadd.f32 1.0, %v1934_v9  ;;  %v939_v28 = vadd.f32 1.0, %v1946_v12  ;;  %v936_v31 = vadd.f32 1.0, %v1920_v4  ;;  %2854 = vst [vmem:[#allocation15_spill] sm:$0xff] %v2067_v2  ;;  %s2597_s29 = scalar_lea.vmem %s2798_s1, %s1542_s24  ;;  %s1543_s4 = sshll.u32 %s1742_s15, 11 }
  0x48   : > { %v953_v23 = vrot.slane %v934_v22, %v1915_v3  ;;  %v941_v32 = vadd.f32 1.0, %v441_v16  ;;  %v938_v35 = vadd.f32 1.0, %v1948_v13  ;;  %v940_v37 = vadd.f32 1.0, %v1960_v17  ;;  %s1392_s5 = sshll.u32 %s2637_s30, 4  ;;  %s2742_s19 = scalar_lea.hbm %s2800_s3, %s1543_s4  ;;  %s2744_s5 = int_to_ptr.vmem [resolvable:$true] %s1392_s5 }
  0x49   : > { %v965_v26 = vrot.slane %v937_v24, %v1915_v3  ;;  %v957_v29 = vrot.slane %v935_v27, %v1915_v3  ;;  %v973_v30 = vrot.slane %v939_v28, %v1915_v3  ;;  %v961_v33 = vrot.slane %v936_v31, %v1915_v3  ;;  %v2108_v28 = vld [vmem:[%s1904_s21 + $0x70] sm:$0xff]  ;;  %s1375_s15 = scalar_lea.sflag [#allocation4], %s1898_s11  ;;  %p2933_p11 = scmp.ne.s32.totalorder %s2843_s25, 0 }
  0x4a   : > { %495 = vperm.xlu1 %1619, %v1940_v10   ;;  %487 = vperm.xlu0 %1618, %v1944_v11   ;;  %v981_v34 = vrot.slane %v941_v32, %v1915_v3  ;;  %v969_v36 = vrot.slane %v938_v35, %v1915_v3  ;;  %v977_v38 = vrot.slane %v940_v37, %v1915_v3  ;;  %v354_v62 = vrot.slane %v2041_v51, 7  ;;  %v2125_v35 = vld [vmem:[%s1904_s21 + $0x68] sm:$0xff]  ;;  %s1763_s6 = smov [#allocation5]  }
  0x4b   : > { %v2805_v63 = vrot.slane %v2044_v52, 7  ;;  %v363_v0 = vrot.slane %v2047_v53, 7  ;;  %v2803_v1 = vrot.slane %v2050_v54, 7  ;;  %v2091_v22 = vsel %vm353_vm1, %v360_v57, %v2804_v58  ;;  %2858 = vst [vmem:[#allocation19_spill] sm:$0xff] %v2108_v28  ;;  %2861 = vst [vmem:[#allocation22_spill] sm:$0xff] %v2125_v35  ;;  %s1672_s8 = sshll.u32 %s1763_s6, 4  ;;  %s1673_s8 = int_to_ptr.vmem [resolvable:$false] %s1672_s8 }
  0x4c   : > { %v2099_v24 = vsel %vm353_vm1, %v329_v59, %v354_v62  ;;  %v334_v32 = vrot.slane %v2067_v2, 1  ;;  %v404_v59 = vrot.slane %v2038_v50, 5  ;;  %vm626_vm2 = vcmask 1046528   ;;  %s1674_s9 = scalar_lea.vmem %s1673_s8, 4096  ;;  %p1675_p13 = scmp.lt.s32.totalorder %s2744_s5, %s1673_s8 }
  0x4d   : > { %vm779_vm3 = vcmask 1045504  }
  0x4e   : > { %503 = vperm.xlu1 %1619, %v1954_v14   ;;  %499 = vperm.xlu0 %1618, %v1958_v15  }
  0x52   : > { %511 = vperm.xlu1 %1619, %v1965_v18   ;;  %507 = vperm.xlu0 %1618, %v1969_v19  }
  0x56   : > { %1621 = vset.pattern.permute.xlu1 %v1756_v20  ;;  %1620 = vset.pattern.permute.xlu0 %v1756_v20 }
  0x57   : > { %551 = vperm.xlu1 %1621, %v1944_v11   ;;  %547 = vperm.xlu0 %1620, %v1932_v8  }
  0x5b   : > { %555 = vperm.xlu1 %1621, %v1928_v7   ;;  %559 = vperm.xlu0 %1620, %v1940_v10  }
  0x5f   : > { %563 = vperm.xlu1 %1621, %v1958_v15   ;;  %567 = vperm.xlu0 %1620, %v1954_v14  }
  0x63   : > { %571 = vperm.xlu1 %1621, %v1969_v19   ;;  %575 = vperm.xlu0 %1620, %v1965_v18  }
  0x67   : > { %1622 = vset.pattern.permute.xlu1 %v1757_v21  ;;  %1623 = vset.pattern.permute.xlu0 %v1757_v21  ;;  %v2086_v21 = vld [vmem:[%s1904_s21 + $0x48] sm:$0xff] }
  0x68   : > { %700 = vperm.xlu1 %1622, %v1932_v8   ;;  %704 = vperm.xlu0 %1623, %v1944_v11   ;;  %2857 = vst [vmem:[#allocation18_spill] sm:$0xff] %v2086_v21 }
  0x6c   : > { %708 = vperm.xlu1 %1622, %v1928_v7   ;;  %716 = vperm.xlu0 %1623, %v1958_v15  }
  0x70   : > { %712 = vperm.xlu1 %1622, %v1940_v10   ;;  %724 = vperm.xlu0 %1623, %v1969_v19  }
  0x74   : > { %720 = vperm.xlu1 %1622, %v1954_v14   ;;  %1624 = vset.pattern.permute.xlu0 %v1758_v25 }
  0x75   : > { %983 = vperm.xlu0 %1624, %v953_v23  }
  0x78   : > { %728 = vperm.xlu1 %1622, %v1965_v18  }
  0x79   : > { %995 = vperm.xlu0 %1624, %v965_v26  }
  0x7c   : > { %1625 = vset.pattern.permute.xlu1 %v1758_v25 }
  0x7d   : > { %987 = vperm.xlu1 %1625, %v957_v29   ;;  %1003 = vperm.xlu0 %1624, %v973_v30  }
  0x81   : > { %991 = vperm.xlu1 %1625, %v961_v33   ;;  %1011 = vperm.xlu0 %1624, %v981_v34  }
  0x85   : > { %999 = vperm.xlu1 %1625, %v969_v36   ;;  %1039 = vperm.xlu0 %1624, %v1934_v9   ;;  %v330_v9 = vrot.slane %v2021_v42, 1 }
  0x89   : > { %1007 = vperm.xlu1 %1625, %v977_v38   ;;  %1055 = vperm.xlu0 %1624, %v1924_v6   ;;  %v357_v6 = vrot.slane %v2021_v42, 7  ;;  %v375_v42 = vrot.slane %v2108_v28, 7 }
  0x8d   : > { %1031 = vperm.xlu1 %1625, %v1922_v5   ;;  %1071 = vperm.xlu0 %1624, %v1946_v12   ;;  %v332_v5 = vrot.slane %v2047_v53, 1  ;;  %v2077_v12 = vld [vmem:[%s1904_s21 + $0x40] sm:$0xff] }
  0x8e   : > { %2856 = vst [vmem:[#allocation17_spill] sm:$0xff] %v2077_v12  ;;  %v366_v37 = vrot.slane %v2077_v12, 7 }
  0x91   : > { %1047 = vperm.xlu1 %1625, %v1920_v4   ;;  %1087 = vperm.xlu0 %1624, %v441_v16   ;;  %v2070_v4 = vld [vmem:[%s1904_s21 + $0x58] sm:$0xff]  ;;  %v2080_v16 = vsel %vm353_vm1, %v331_v56, %v360_v57  ;;  %v373_v57 = vrot.slane %v2125_v35, 7 }
  0x92   : > { %2855 = vst [vmem:[#allocation16_spill] sm:$0xff] %v2070_v4  ;;  %v370_v20 = vrot.slane %v2070_v4, 7 }
  0x95   : > { %1063 = vperm.xlu1 %1625, %v1948_v13   ;;  %1627 = vset.pattern.permute.xlu0 %v1759_v39  ;;  %v867_v13 = vrot.slane %v866_v55, 2 }
  0x96   : > { %1123 = vperm.xlu0 %1627, %v1944_v11  }
  0x99   : > { %1079 = vperm.xlu1 %1625, %v1960_v17   ;;  %v369_v17 = vrot.slane %v2067_v2, 7 }
  0x9a   : > { %1135 = vperm.xlu0 %1627, %v1958_v15  }
  0x9d   : > { %1626 = vset.pattern.permute.xlu1 %v1759_v39  ;;  %v868_v39 = vadd.f32 %v867_v13, %v866_v55  ;;  %v402_v55 = vrot.slane %v2044_v52, 5 }
  0x9e   : > { %1119 = vperm.xlu1 %1626, %v1932_v8   ;;  %1143 = vperm.xlu0 %1627, %v1969_v19  }
  0x9f   : > { %v869_v13 = vrot.slane %v868_v39, 1 }
  0xa2   : > { %1127 = vperm.xlu1 %1626, %v1928_v7   ;;  %1628 = vset.pattern.permute.xlu0 %v1760_v40 }
  0xa3   : > { %1167 = vperm.xlu0 %1628, %v953_v23   ;;  %v2096_v23 = vsel %vm353_vm1, %v354_v62, %v2805_v63  ;;  %v405_v62 = vrot.slane %v2050_v54, 5 }
  0xa6   : > { %1131 = vperm.xlu1 %1626, %v1940_v10  }
  0xa7   : > { %1179 = vperm.xlu0 %1628, %v965_v26   ;;  %v2104_v26 = vsel %vm353_vm1, %v363_v0, %v2803_v1 }
  0xaa   : > { %1139 = vperm.xlu1 %1626, %v1954_v14  }
  0xab   : > { %1187 = vperm.xlu0 %1628, %v973_v30   ;;  %v2114_v30 = vsel %vm353_vm1, %v332_v5, %v363_v0  ;;  %v406_v0 = vrot.slane %v2086_v21, 5  ;;  %v407_v5 = vrot.slane %v2070_v4, 5 }
  0xae   : > { %1147 = vperm.xlu1 %1626, %v1965_v18  }
  0xaf   : > { %1195 = vperm.xlu0 %1628, %v981_v34   ;;  %v2122_v34 = vld [vmem:[%s1904_s21 + $0x60] sm:$0xff] }
  0xb0   : > { %2860 = vst [vmem:[#allocation21_spill] sm:$0xff] %v2122_v34  ;;  %v335_v47 = vrot.slane %v2122_v34, 1  ;;  %v372_v56 = vrot.slane %v2122_v34, 7 }
  0xb2   : > { %1629 = vset.pattern.permute.xlu1 %v1760_v40  ;;  %v2134_v40 = vsel %vm353_vm1, %v369_v17, %v370_v20 }
  0xb3   : > { %1171 = vperm.xlu1 %1629, %v957_v29   ;;  %1631 = vset.pattern.permute.xlu0 %v1761_v41  ;;  %v2111_v29 = vld [vmem:[%s1904_s21 + $0x78] sm:$0xff] }
  0xb4   : > { %1235 = vperm.xlu0 %1631, %v1944_v11   ;;  %2859 = vst [vmem:[#allocation20_spill] sm:$0xff] %v2111_v29  ;;  %v376_v44 = vrot.slane %v2111_v29, 7 }
  0xb7   : > { %1175 = vperm.xlu1 %1629, %v961_v33   ;;  %v333_v33 = vrot.slane %v2077_v12, 1 }
  0xb8   : > { %1247 = vperm.xlu0 %1631, %v1958_v15  }
  0xb9   : > { %v2158_v1 = vsel %vm353_vm1, %v333_v33, %v366_v37  ;;  %v2862_v33 = vrot.slane %v2044_v52, 7 }
  0xbb   : > { %1183 = vperm.xlu1 %1629, %v969_v36   ;;  %v2128_v36 = vsel %vm353_vm1, %v330_v9, %v357_v6  ;;  %v409_v9 = vrot.slane %v2111_v29, 5 }
  0xbc   : > { %1255 = vperm.xlu0 %1631, %v1969_v19  }
  0xbf   : > { %1191 = vperm.xlu1 %1629, %v977_v38   ;;  %v367_v38 = vrot.slane %v2086_v21, 7  ;;  %v2168_v21 = vsel %vm353_vm1, %v372_v56, %v373_v57 }
  0xc0   : > { %1632 = vset.pattern.permute.xlu0 %v2802_v48  ;;  %v2152_v48 = vsel %vm353_vm1, %v334_v32, %v369_v17  ;;  %v2171_v17 = vsel %vm353_vm1, %v335_v47, %v372_v56 }
  0xc1   : > { %1295 = vperm.xlu0 %1632, %v1932_v8   ;;  %v2192_v47 = vsel %vm353_vm1, %v367_v38, %v406_v0 }
  0xc3   : > { %1630 = vset.pattern.permute.xlu1 %v1761_v41  ;;  %v336_v41 = vrot.slane %v2108_v28, 1 }
  0xc4   : > { %1231 = vperm.xlu1 %1630, %v1932_v8   ;;  %v358_v8 = vrot.slane %v2024_v43, 7 }
  0xc5   : > { %v2057_v60 = vpop.permute.xlu1 %491  ;;  %v2059_v61 = vpop.permute.xlu0 %483  ;;  %1307 = vperm.xlu0 %1632, %v1940_v10   ;;  %v2162_v58 = vsel %vm353_vm1, %v336_v41, %v375_v42 }
  0xc6   : > { %v2117_v31 = vsel %vm353_vm1, %v357_v6, %v358_v8  ;;  %v408_v6 = vrot.slane %v2125_v35, 5  ;;  %v2165_v35 = vsel %vm353_vm1, %v375_v42, %v376_v44  ;;  %v2864_v42 = vrot.slane %v2050_v54, 7 }
  0xc8   : > { %1239 = vperm.xlu1 %1630, %v1928_v7   ;;  %v2189_v12 = vsel %vm353_vm1, %v2864_v42, %v405_v62  ;;  %v2198_v56 = vsel %vm353_vm1, %v373_v57, %v408_v6  ;;  %v515_v57 = vmul.f32 %v2059_v61, %v2096_v23 }
  0xc9   : > { %v496_v25 = vpop.permute.xlu1 %495  ;;  %v488_v27 = vpop.permute.xlu0 %487  ;;  %1315 = vperm.xlu0 %1632, %v1954_v14  }
  0xca   : > { %v2225_v62 = vmul.f32 %v488_v27, %v2128_v36 }
  0xcc   : > { %1243 = vperm.xlu1 %1630, %v1940_v10   ;;  %v403_v10 = vrot.slane %v2024_v43, 5  ;;  %v2155_v43 = vsel %vm353_vm1, %v366_v37, %v367_v38  ;;  %v2863_v37 = vrot.slane %v2038_v50, 7  ;;  %v2211_v38 = vmul.f32 %v2057_v60, %v2091_v22 }
  0xcd   : > { %v504_v45 = vpop.permute.xlu1 %503  ;;  %v500_v46 = vpop.permute.xlu0 %499  ;;  %1323 = vperm.xlu0 %1632, %v1965_v18   ;;  %v2868_v50 = vmov 7  }
  0xce   : > { %v2174_v32 = vsel %vm353_vm1, %v358_v8, %v403_v10  ;;  %v2184_v41 = vsel %vm353_vm1, %v2863_v37, %v404_v59  ;;  %v2195_v8 = vsel %vm353_vm1, %v370_v20, %v407_v5  ;;  %v2201_v10 = vsel %vm353_vm1, %v376_v44, %v409_v9 }
  0xcf   : > { %v2207_v59 = vmul.f32 %v2057_v60, %v2080_v16  ;;  %v514_v20 = vmul.f32 %v2059_v61, %v2099_v24  ;;  %v2219_v44 = vmul.f32 %v496_v25, %v2114_v30  ;;  %v2228_v60 = vmul.f32 %v488_v27, %v2117_v31 }
  0xd0   : > { %1251 = vperm.xlu1 %1630, %v1954_v14   ;;  %v2179_v14 = vsel %vm353_vm1, %v2862_v33, %v402_v55  ;;  %v2203_v55 = vadd.f32 %v869_v13, %v868_v39  ;;  %v2222_v39 = vmul.f32 %v496_v25, %v2104_v26  ;;  %v2231_v0 = vmul.f32 %v504_v45, %v2152_v48 }
  0xd1   : > { %v512_v63 = vpop.permute.xlu1 %511  ;;  %v508_v34 = vpop.permute.xlu0 %507  ;;  %v2234_v5 = vmul.f32 %v504_v45, %v2134_v40  ;;  %v2240_v61 = vmul.f32 %v500_v46, %v2155_v43 }
  0xd2   : > { %2865 = vst [vmem:[#allocation23_spill] sm:$0xff] %v2203_v55  ;;  %v2253_v33 = vmul.f32 %v512_v63, %v2162_v58  ;;  %v2256_v37 = vmul.f32 %v512_v63, %v2165_v35  ;;  %v2262_v49 = vmul.f32 %v508_v34, %v2171_v17 }
  0xd3   : > { %2867 = vst [vmem:[#allocation25_spill] sm:$0xff] %v2240_v61 }
  0xd4   : > { %1259 = vperm.xlu1 %1630, %v1965_v18   ;;  %v2237_v18 = vmul.f32 %v500_v46, %v2158_v1  ;;  %2869 = vst [vmem:[#allocation26_spill] sm:$0xff] %v2262_v49 }
  0xd6   : > { %2866 = vst [vmem:[#allocation24_spill] sm:$0xff] %v2237_v18  ;;  %v552_v25 = vpop.permute.xlu1 %551  ;;  %v548_v6 = vpop.permute.xlu0 %547 }
  0xd7   : > { %v2243_v9 = vmul.f32 %v552_v25, %v2128_v36  ;;  %v2246_v27 = vmul.f32 %v552_v25, %v2117_v31  ;;  %v2249_v13 = vmul.f32 %v552_v25, %v2174_v32  ;;  %v578_v45 = vmul.f32 %v548_v6, %v2099_v24 }
  0xd8   : > { %v579_v46 = vmul.f32 %v548_v6, %v2096_v23  ;;  %v580_v42 = vmul.f32 %v548_v6, %v2179_v14  ;;  %1633 = vset.pattern.permute.xlu1 %v2868_v50  ;;  %v2265_v25 = vmul.f32 %v508_v34, %v2168_v21 }
  0xd9   : > { %v632_v29 = vrot.slane %v2243_v9, 1  ;;  %v627_v28 = vrot.slane %v578_v45, 1  ;;  %1299 = vperm.xlu1 %1633, %v1944_v11   ;;  %v633_v63 = vrot.slane %v2246_v27, 1  ;;  %v635_v4 = vrot.slane %v2249_v13, 1 }
  0xda   : > { %2870 = vst [vmem:[#allocation27_spill] sm:$0xff] %v2265_v25  ;;  %v628_v2 = vrot.slane %v579_v46, 1  ;;  %v630_v54 = vrot.slane %v580_v42, 1  ;;  %v556_v6 = vpop.permute.xlu1 %555  ;;  %v560_v53 = vpop.permute.xlu0 %559 }
  0xdb   : > { %v584_v50 = vmul.f32 %v556_v6, %v2080_v16  ;;  %v585_v52 = vmul.f32 %v556_v6, %v2091_v22  ;;  %v586_v34 = vmul.f32 %v556_v6, %v2184_v41  ;;  %v587_v51 = vmul.f32 %v560_v53, %v2114_v30 }
  0xdc   : > { %v588_v9 = vmul.f32 %v560_v53, %v2104_v26  ;;  %v589_v11 = vmul.f32 %v560_v53, %v2189_v12  ;;  %v629_v27 = vsel %vm626_vm2, %v627_v28, %v628_v2  ;;  %v631_v13 = vsel %vm626_vm2, %v628_v2, %v630_v54 }
  0xdd   : > { %v637_v45 = vrot.slane %v584_v50, 1  ;;  %v638_v46 = vrot.slane %v585_v52, 1  ;;  %v640_v42 = vrot.slane %v586_v34, 1  ;;  %v642_v3 = vrot.slane %v587_v51, 1  ;;  %1303 = vperm.xlu1 %1633, %v1928_v7  }
  0xde   : > { %v643_v55 = vrot.slane %v588_v9, 1  ;;  %v645_v25 = vrot.slane %v589_v11, 1  ;;  %v564_v49 = vpop.permute.xlu1 %563  ;;  %v568_v6 = vpop.permute.xlu0 %567  ;;  %v2280_v61 = vadd.f32 %v629_v27, %v514_v20  ;;  %v2282_v18 = vadd.f32 %v631_v13, %v515_v57 }
  0xdf   : > { %v2285_v53 = vmul.f32 %v564_v49, %v2158_v1  ;;  %v2288_v28 = vmul.f32 %v564_v49, %v2155_v43  ;;  %v2291_v52 = vmul.f32 %v564_v49, %v2192_v47  ;;  %v593_v51 = vmul.f32 %v568_v6, %v2152_v48 }
  0xe0   : > { %v594_v7 = vmul.f32 %v568_v6, %v2134_v40  ;;  %v595_v54 = vmul.f32 %v568_v6, %v2195_v8  ;;  %v644_v2 = vsel %vm626_vm2, %v642_v3, %v643_v55  ;;  %v646_v20 = vsel %vm626_vm2, %v643_v55, %v645_v25 }
  0xe1   : > { %2871 = vst [vmem:[#allocation28_spill] sm:$0xff] %v2291_v52  ;;  %v652_v9 = vrot.slane %v593_v51, 1  ;;  %1311 = vperm.xlu1 %1633, %v1958_v15   ;;  %v2303_v6 = vadd.f32 %v644_v2, %v2219_v44  ;;  %v2306_v3 = vadd.f32 %v646_v20, %v2222_v39  ;;  %v634_v39 = vsel %vm626_vm2, %v632_v29, %v633_v63 }
  0xe2   : > { %v653_v49 = vrot.slane %v594_v7, 1  ;;  %v655_v11 = vrot.slane %v595_v54, 1  ;;  %v572_v27 = vpop.permute.xlu1 %571  ;;  %v576_v13 = vpop.permute.xlu0 %575  ;;  %v636_v54 = vsel %vm626_vm2, %v633_v63, %v635_v4  ;;  %v641_v20 = vsel %vm626_vm2, %v638_v46, %v640_v42 }
  0xe3   : > { %v2309_v55 = vmul.f32 %v572_v27, %v2171_v17  ;;  %v2312_v25 = vmul.f32 %v572_v27, %v2168_v21  ;;  %v2315_v51 = vmul.f32 %v572_v27, %v2198_v56  ;;  %v2318_v15 = vmul.f32 %v576_v13, %v2162_v58 }
  0xe4   : > { %v2321_v7 = vmul.f32 %v576_v13, %v2165_v35  ;;  %v2324_v44 = vmul.f32 %v576_v13, %v2201_v10  ;;  %v685_v13 = vadd.f32 %v634_v39, %v2225_v62  ;;  %v686_v29 = vadd.f32 %v636_v54, %v2228_v60 }
  0xe5   : > { %1319 = vperm.xlu1 %1633, %v1969_v19   ;;  %v654_v63 = vsel %vm626_vm2, %v652_v9, %v653_v49  ;;  %v656_v2 = vsel %vm626_vm2, %v653_v49, %v655_v11  ;;  %v639_v27 = vsel %vm626_vm2, %v637_v45, %v638_v46 }
  0xe6   : > { %v663_v57 = vrot.slane %v2321_v7, 1  ;;  %v2348_v9 = vadd.f32 %v654_v63, %v2231_v0  ;;  %v2351_v49 = vadd.f32 %v656_v2, %v2234_v5 }
  0xe7   : > { %v701_v52 = vpop.permute.xlu1 %700  ;;  %v705_v4 = vpop.permute.xlu0 %704 }
  0xe8   : > { %v731_v19 = vmul.f32 %v701_v52, %v2099_v24  ;;  %v732_v34 = vmul.f32 %v701_v52, %v2096_v23  ;;  %v733_v50 = vmul.f32 %v701_v52, %v2179_v14  ;;  %v734_v62 = vmul.f32 %v705_v4, %v2128_v36 }
  0xe9   : > { %v735_v60 = vmul.f32 %v705_v4, %v2117_v31  ;;  %v736_v39 = vmul.f32 %v705_v4, %v2174_v32  ;;  %v2354_v36 = vadd.f32 %v639_v27, %v2207_v59  ;;  %v2357_v31 = vadd.f32 %v641_v20, %v2211_v38 }
  0xea   : > { %v780_v45 = vrot.slane %v731_v19, 2  ;;  %v781_v46 = vrot.slane %v732_v34, 2  ;;  %v783_v42 = vrot.slane %v733_v50, 2  ;;  %v785_v24 = vrot.slane %v734_v62, 2 }
  0xeb   : > { %v786_v11 = vrot.slane %v735_v60, 2  ;;  %v788_v23 = vrot.slane %v736_v39, 2  ;;  %v709_v54 = vpop.permute.xlu1 %708  ;;  %v717_v14 = vpop.permute.xlu0 %716 }
  0xec   : > { %v737_v32 = vmul.f32 %v709_v54, %v2080_v16  ;;  %v738_v0 = vmul.f32 %v709_v54, %v2091_v22  ;;  %v739_v5 = vmul.f32 %v709_v54, %v2184_v41  ;;  %v2363_v52 = vmul.f32 %v717_v14, %v2158_v1 }
  0xed   : > { %v2366_v50 = vmul.f32 %v717_v14, %v2155_v43  ;;  %v2369_v34 = vmul.f32 %v717_v14, %v2192_v47  ;;  %v782_v59 = vsel %vm779_vm3, %v780_v45, %v781_v46  ;;  %v784_v38 = vsel %vm779_vm3, %v781_v46, %v783_v42 }
  0xee   : > { %v790_v2 = vrot.slane %v737_v32, 2  ;;  %v791_v20 = vrot.slane %v738_v0, 2  ;;  %v793_v16 = vrot.slane %v739_v5, 2  ;;  %v800_v22 = vrot.slane %v2363_v52, 2 }
  0xef   : > { %v801_v41 = vrot.slane %v2366_v50, 2  ;;  %v803_v1 = vrot.slane %v2369_v34, 2  ;;  %v713_v27 = vpop.permute.xlu1 %712  ;;  %v725_v4 = vpop.permute.xlu0 %724  ;;  %v836_v43 = vadd.f32 %v782_v59, %v2280_v61  ;;  %v837_v47 = vadd.f32 %v784_v38, %v2282_v18 }
  0xf0   : > { %v740_v63 = vmul.f32 %v713_v27, %v2114_v30  ;;  %v741_v19 = vmul.f32 %v713_v27, %v2104_v26  ;;  %v742_v62 = vmul.f32 %v713_v27, %v2189_v12  ;;  %v2382_v60 = vmul.f32 %v725_v4, %v2171_v17 }
  0xf1   : > { %v2385_v39 = vmul.f32 %v725_v4, %v2168_v21  ;;  %v2388_v45 = vmul.f32 %v725_v4, %v2198_v56  ;;  %v787_v46 = vsel %vm779_vm3, %v785_v24, %v786_v11  ;;  %v789_v61 = vsel %vm779_vm3, %v786_v11, %v788_v23 }
  0xf2   : > { %v795_v18 = vrot.slane %v740_v63, 2  ;;  %v796_v42 = vrot.slane %v741_v19, 2  ;;  %v798_v30 = vrot.slane %v742_v62, 2  ;;  %v810_v26 = vrot.slane %v2382_v60, 2 }
  0xf3   : > { %v811_v12 = vrot.slane %v2385_v39, 2  ;;  %v813_v17 = vrot.slane %v2388_v45, 2  ;;  %v721_v54 = vpop.permute.xlu1 %720  ;;  %v838_v14 = vadd.f32 %v787_v46, %v685_v13  ;;  %v839_v21 = vadd.f32 %v789_v61, %v686_v29 }
  0xf4   : > { %v746_v32 = vmul.f32 %v721_v54, %v2152_v48  ;;  %v747_v56 = vmul.f32 %v721_v54, %v2134_v40  ;;  %v748_v24 = vmul.f32 %v721_v54, %v2195_v8  ;;  %v984_v0 = vpop.permute.xlu0 %983  ;;  %v797_v11 = vsel %vm779_vm3, %v795_v18, %v796_v42 }
  0xf5   : > { %v2399_v23 = vmul.f32 %v984_v0, %v836_v43  ;;  %v2401_v5 = vmul.f32 %v984_v0, %v837_v47  ;;  %v799_v59 = vsel %vm779_vm3, %v796_v42, %v798_v30  ;;  %v842_v38 = vadd.f32 %v797_v11, %v2303_v6  ;;  %v2876_v0 = vld [vmem:[#allocation28_spill] sm:$0xff] }
  0xf6   : > { %v805_v27 = vrot.slane %v746_v32, 2  ;;  %v806_v13 = vrot.slane %v747_v56, 2  ;;  %v808_v29 = vrot.slane %v748_v24, 2  ;;  %v843_v48 = vadd.f32 %v799_v59, %v2306_v3 }
  0xf7   : > { %v729_v4 = vpop.permute.xlu1 %728  ;;  %v792_v40 = vsel %vm779_vm3, %v790_v2, %v791_v20  ;;  %v794_v8 = vsel %vm779_vm3, %v791_v20, %v793_v16  ;;  %v2872_v43 = vrot.slane %v2318_v15, 1  ;;  %v2873_v63 = vrot.slane %v2324_v44, 1 }
  0xf8   : > { %v752_v19 = vmul.f32 %v729_v4, %v2162_v58  ;;  %v753_v3 = vmul.f32 %v729_v4, %v2165_v35  ;;  %v754_v2 = vmul.f32 %v729_v4, %v2201_v10  ;;  %v996_v62 = vpop.permute.xlu0 %995  ;;  %v807_v20 = vsel %vm779_vm3, %v805_v27, %v806_v13 }
  0xf9   : > { %v664_v47 = vsel %vm626_vm2, %v2872_v43, %v663_v57  ;;  %v666_v6 = vsel %vm626_vm2, %v663_v57, %v2873_v63  ;;  %v2422_v16 = vmul.f32 %v996_v62, %v842_v38  ;;  %v2424_v15 = vmul.f32 %v996_v62, %v843_v48  ;;  %v2880_v48 = vld [vmem:[#allocation25_spill] sm:$0xff] }
  0xfa   : > { %v809_v46 = vsel %vm779_vm3, %v806_v13, %v808_v29  ;;  %v846_v44 = vadd.f32 %v807_v20, %v2348_v9  ;;  %v815_v7 = vrot.slane %v752_v19, 2  ;;  %v816_v61 = vrot.slane %v753_v3, 2  ;;  %v2879_v29 = vld [vmem:[#allocation24_spill] sm:$0xff]  ;;  %v2885_v19 = vld [vmem:[#allocation26_spill] sm:$0xff]  ;;  %v2886_v3 = vld [vmem:[#allocation27_spill] sm:$0xff] }
  0xfb   : > { %v818_v57 = vrot.slane %v754_v2, 2  ;;  %v847_v58 = vadd.f32 %v809_v46, %v2351_v49  ;;  %v840_v35 = vadd.f32 %v792_v40, %v2354_v36  ;;  %v841_v10 = vadd.f32 %v794_v8, %v2357_v31  ;;  %v2889_v20 = vld [vmem:[#allocation23_spill] sm:$0xff] }
  0xfc   : > { %v697_v18 = vadd.f32 %v664_v47, %v2253_v33  ;;  %v698_v42 = vadd.f32 %v666_v6, %v2256_v37  ;;  %v988_v30 = vpop.permute.xlu1 %987  ;;  %v1004_v54 = vpop.permute.xlu0 %1003  ;;  %v817_v32 = vsel %vm779_vm3, %v815_v7, %v816_v61  ;;  %v2874_v9 = vrot.slane %v2288_v28, 1 }
  0xfd   : > { %v819_v56 = vsel %vm779_vm3, %v816_v61, %v818_v57  ;;  %v2875_v24 = vrot.slane %v2285_v53, 1  ;;  %v2877_v36 = vrot.slane %v2876_v0, 1  ;;  %v2445_v11 = vmul.f32 %v988_v30, %v838_v14 }
  0xfe   : > { %v2878_v31 = vmov %v2874_v9  ;;  %v2447_v37 = vmul.f32 %v988_v30, %v839_v21  ;;  %v2449_v59 = vmul.f32 %v1004_v54, %v846_v44  ;;  %v2451_v38 = vmul.f32 %v1004_v54, %v847_v58 }
  0xff   : > { %v649_v49 = vsel %vm626_vm2, %v2875_v24, %v2874_v9  ;;  %v651_v33 = vsel %vm626_vm2, %v2878_v31, %v2877_v36  ;;  %v850_v27 = vadd.f32 %v817_v32, %v697_v18  ;;  %v851_v13 = vadd.f32 %v819_v56, %v698_v42  ;;  %v2896_v36 = vld [vmem:[#allocation12_spill] sm:$0xff] }
 0x100   : > { %v691_v53 = vadd.f32 %v649_v49, %v2879_v29  ;;  %v692_v4 = vadd.f32 %v651_v33, %v2880_v48  ;;  %v802_v28 = vsel %vm779_vm3, %v800_v22, %v801_v41  ;;  %v804_v14 = vsel %vm779_vm3, %v801_v41, %v803_v1  ;;  %v992_v63 = vpop.permute.xlu1 %991  ;;  %v1012_v22 = vpop.permute.xlu0 %1011  ;;  %v2895_v49 = vld [vmem:[#allocation11_spill] sm:$0xff]  ;;  %v2898_v29 = vld [vmem:[#allocation13_spill] sm:$0xff]  ;;  %v2899_v48 = vld [vmem:[#allocation14_spill] sm:$0xff] }
 0x101   : > { %v2881_v21 = vrot.slane %v2312_v25, 1  ;;  %v2882_v40 = vrot.slane %v2309_v55, 1  ;;  %v2883_v43 = vrot.slane %v2315_v51, 1  ;;  %v2477_v1 = vmul.f32 %v992_v63, %v840_v35 }
 0x102   : > { %v844_v6 = vadd.f32 %v802_v28, %v691_v53  ;;  %v845_v34 = vadd.f32 %v804_v14, %v692_v4  ;;  %v2479_v2 = vmul.f32 %v992_v63, %v841_v10  ;;  %v2481_v55 = vmul.f32 %v1012_v22, %v850_v27  ;;  %v2892_v10 = vld [vmem:[#allocation8_spill] sm:$0xff] }
 0x103   : > { %v659_v8 = vsel %vm626_vm2, %v2882_v40, %v2881_v21  ;;  %v2884_v47 = vmov %v2881_v21  ;;  %2887 = vst [vmem:[#allocation28_spill] sm:$0xff] %v2477_v1  ;;  %v2483_v62 = vmul.f32 %v1012_v22, %v851_v13  ;;  %v812_v25 = vsel %vm779_vm3, %v810_v26, %v811_v12  ;;  %v2901_v40 = vld [vmem:[#allocation15_spill] sm:$0xff] }
 0x104   : > { %v661_v52 = vsel %vm626_vm2, %v2884_v47, %v2883_v43  ;;  %v695_v50 = vadd.f32 %v659_v8, %v2885_v19  ;;  %2888 = vst [vmem:[#allocation24_spill] sm:$0xff] %v2479_v2  ;;  %v814_v51 = vsel %vm779_vm3, %v811_v12, %v813_v17  ;;  %v927_v46 = vmul.f32 0.0625, %v2889_v20  ;;  %v1000_v61 = vpop.permute.xlu1 %999  ;;  %v1040_v57 = vpop.permute.xlu0 %1039  ;;  %v2902_v43 = vld [vmem:[#allocation16_spill] sm:$0xff] }
 0x105   : > { %v696_v41 = vadd.f32 %v661_v52, %v2886_v3  ;;  %v2496_v58 = vmul.f32 %v1000_v61, %v844_v6  ;;  %v2498_v35 = vmul.f32 %v1000_v61, %v845_v34  ;;  %v1045_v60 = vrot.slane %v1040_v57, %v2892_v10  ;;  %v2907_v61 = vld [vmem:[#allocation10_spill] sm:$0xff] }
 0x106   : > { %v848_v44 = vadd.f32 %v812_v25, %v695_v50  ;;  %v853_v0 = vsel %vm852_vm0, %v2895_v49, 0.0  ;;  %v854_v31 = vsel %vm852_vm0, %v2896_v36, 0.0  ;;  %v880_v53 = vsel %vm852_vm0, %v2898_v29, 0.0  ;;  %v2904_v50 = vld [vmem:[#allocation19_spill] sm:$0xff] }
 0x107   : > { %v849_v7 = vadd.f32 %v814_v51, %v696_v41  ;;  %2890 = vst [vmem:[#allocation25_spill] sm:$0xff] %v2496_v58  ;;  %2891 = vst [vmem:[#allocation26_spill] sm:$0xff] %v2498_v35  ;;  %v2501_v18 = vmul.f32 %v1045_v60, %v927_v46  ;;  %v855_v13 = vadd.f32 %v854_v31, %v853_v0  ;;  %v881_v4 = vsel %vm852_vm0, %v2899_v48, 0.0  ;;  %v2905_v41 = vld [vmem:[#allocation20_spill] sm:$0xff] }
 0x108   : > { %v1008_v26 = vpop.permute.xlu1 %1007  ;;  %v2503_v45 = vpop.permute.xlu0 %1055  ;;  %v898_v8 = vsel %vm852_vm0, %v2901_v40, 0.0  ;;  %v899_v47 = vsel %vm852_vm0, %v2902_v43, 0.0  ;;  %v882_v52 = vadd.f32 %v881_v4, %v880_v53  ;;  %v916_v3 = vsel %vm852_vm0, %v2904_v50, 0.0  ;;  %v2908_v53 = vld [vmem:[#allocation17_spill] sm:$0xff] }
 0x109   : > { %v2505_v39 = vmul.f32 %v1008_v26, %v848_v44  ;;  %v2507_v12 = vmul.f32 %v1008_v26, %v849_v7  ;;  %v856_v21 = vrot.slane %v855_v13, 4  ;;  %v900_v63 = vadd.f32 %v899_v47, %v898_v8  ;;  %v2906_v44 = vld [vmem:[#allocation9_spill] sm:$0xff] }
 0x10a   : > { %v883_v19 = vrot.slane %v882_v52, 4  ;;  %v917_v25 = vsel %vm852_vm0, %v2905_v41, 0.0  ;;  %v871_v7 = vsel %vm852_vm0, %v2906_v44, 0.0  ;;  %v872_v57 = vsel %vm852_vm0, %v2907_v61, 0.0 }
 0x10b   : > { %2893 = vst [vmem:[#allocation27_spill] sm:$0xff] %v2505_v39  ;;  %2894 = vst [vmem:[#allocation23_spill] sm:$0xff] %v2507_v12  ;;  %v857_v6 = vadd.f32 %v856_v21, %v855_v13  ;;  %v901_v51 = vrot.slane %v900_v63, 4  ;;  %v918_v0 = vadd.f32 %v917_v25, %v916_v3  ;;  %v873_v13 = vadd.f32 %v872_v57, %v871_v7  ;;  %v2909_v21 = vld [vmem:[#allocation18_spill] sm:$0xff] }
 0x10c   : > { %v2513_v30 = vpop.permute.xlu1 %1031  ;;  %v2515_v54 = vpop.permute.xlu0 %1071  ;;  %v884_v26 = vadd.f32 %v883_v19, %v882_v52  ;;  %v889_v4 = vsel %vm852_vm0, %v2908_v53, 0.0  ;;  %v890_v8 = vsel %vm852_vm0, %v2909_v21, 0.0  ;;  %v2910_v52 = vld [vmem:[#allocation21_spill] sm:$0xff]  ;;  %v2911_v19 = vld [vmem:[#allocation22_spill] sm:$0xff] }
 0x10d   : > { %v858_v46 = vrot.slane %v857_v6, 2  ;;  %v902_v31 = vadd.f32 %v901_v51, %v900_v63  ;;  %v891_v61 = vadd.f32 %v890_v8, %v889_v4  ;;  %v874_v39 = vrot.slane %v873_v13, 4 }
 0x10e   : > { %v885_v44 = vrot.slane %v884_v26, 2  ;;  %v907_v63 = vsel %vm852_vm0, %v2910_v52, 0.0  ;;  %v908_v3 = vsel %vm852_vm0, %v2911_v19, 0.0 }
 0x10f   : > { %v859_v42 = vadd.f32 %v858_v46, %v857_v6  ;;  %v903_v12 = vrot.slane %v902_v31, 2  ;;  %v892_v6 = vrot.slane %v891_v61, 4  ;;  %v909_v46 = vadd.f32 %v908_v3, %v907_v63 }
 0x110   : > { %v2517_v32 = vpop.permute.xlu1 %1047  ;;  %v2519_v56 = vpop.permute.xlu0 %1087  ;;  %v886_v7 = vadd.f32 %v885_v44, %v884_v26  ;;  %v875_v53 = vadd.f32 %v874_v39, %v873_v13 }
 0x111   : > { %v860_v51 = vrot.slane %v859_v42, 1  ;;  %v904_v21 = vadd.f32 %v903_v12, %v902_v31  ;;  %v893_v19 = vadd.f32 %v892_v6, %v891_v61  ;;  %v910_v2 = vrot.slane %v909_v46, 4 }
 0x112   : > { %v876_v1 = vrot.slane %v875_v53, 2  ;;  %v1061_v6 = vrot.slane %v2503_v45, %v2892_v10 }
 0x113   : > { %v861_v4 = vadd.f32 %v860_v51, %v859_v42  ;;  %v905_v58 = vrot.slane %v904_v21, 1  ;;  %v894_v31 = vrot.slane %v893_v19, 2  ;;  %v911_v13 = vadd.f32 %v910_v2, %v909_v46 }
 0x114   : > { %v2521_v9 = vpop.permute.xlu1 %1063  ;;  %v877_v63 = vadd.f32 %v876_v1, %v875_v53 }
 0x115   : > { %v2523_v24 = vpop.permute.xlu0 %1123  ;;  %v926_v26 = vmul.f32 0.0625, %v861_v4  ;;  %v906_v44 = vadd.f32 %v905_v58, %v904_v21  ;;  %v895_v2 = vadd.f32 %v894_v31, %v893_v19  ;;  %v912_v58 = vrot.slane %v911_v13, 2 }
 0x116   : > { %v878_v53 = vrot.slane %v877_v63, 1 }
 0x117   : > { %v931_v1 = vmul.f32 0.0625, %v906_v44  ;;  %v913_v31 = vadd.f32 %v912_v58, %v911_v13 }
 0x118   : > { %v2529_v33 = vpop.permute.xlu1 %1079 }
 0x119   : > { %v2531_v27 = vpop.permute.xlu0 %1135 }
 0x11a   : > { %2897 = vst [vmem:[#allocation8_spill] sm:$0xff] %v2531_v27 }
 0x11d   : > { %v2537_v28 = vpop.permute.xlu1 %1119  ;;  %v2539_v14 = vpop.permute.xlu0 %1143 }
 0x11e   : > { %2900 = vst [vmem:[#allocation11_spill] sm:$0xff] %v2539_v14  ;;  %v919_v14 = vrot.slane %v918_v0, 4 }
 0x120   : > { %v920_v57 = vadd.f32 %v919_v14, %v918_v0  ;;  %v1037_v14 = vrot.slane %v2513_v30, %v2892_v10 }
 0x121   : > { %v2545_v22 = vpop.permute.xlu1 %1127 }
 0x122   : > { %2903 = vst [vmem:[#allocation12_spill] sm:$0xff] %v2545_v22  ;;  %v2547_v34 = vpop.permute.xlu0 %1167  ;;  %v887_v22 = vrot.slane %v886_v7, 1  ;;  %v921_v52 = vrot.slane %v920_v57, 2  ;;  %v1094_v3 = vmul.f32 %v1037_v14, %v926_v26  ;;  %v1278_v26 = vld [vmem:[%s2597_s29] sm:$0xff]  ;;  %v1279_v14 = vld [vmem:[%s2597_s29 + $0x8] sm:$0xff] }
 0x124   : > { %v888_v12 = vadd.f32 %v887_v22, %v886_v7  ;;  %v922_v39 = vadd.f32 %v921_v52, %v920_v57  ;;  %v1077_v22 = vrot.slane %v2515_v54, %v2892_v10  ;;  %v1102_v21 = vsub.f32 %v2399_v23, %v1094_v3 }
 0x125   : > { %v2553_v20 = vpop.permute.xlu1 %1131  ;;  %v1103_v45 = vsub.f32 %v2401_v5, %v1094_v3  ;;  %v1198_v52 = vmul.f32 %v2547_v34, %v2895_v49  ;;  %v1199_v7 = vmul.f32 %v2547_v34, %v2896_v36  ;;  %v879_v3 = vadd.f32 %v878_v53, %v877_v63 }
 0x126   : > { %v2559_v60 = vpop.permute.xlu0 %1179  ;;  %v929_v51 = vmul.f32 0.0625, %v888_v12  ;;  %v923_v4 = vrot.slane %v922_v39, 1  ;;  %v896_v12 = vrot.slane %v895_v2, 1  ;;  %v1150_v54 = vmul.f32 %v2537_v28, %v1102_v21 }
 0x127   : > { %v1151_v23 = vmul.f32 %v2537_v28, %v1103_v45  ;;  %v1099_v5 = vmul.f32 %v1077_v22, %v931_v1  ;;  %v1093_v34 = vrot.slane %v2519_v56, %v2892_v10  ;;  %v914_v28 = vrot.slane %v913_v31, 1 }
 0x128   : > { %v1097_v46 = vmul.f32 %v1061_v6, %v929_v51  ;;  %v924_v19 = vadd.f32 %v923_v4, %v922_v39  ;;  %v897_v6 = vadd.f32 %v896_v12, %v895_v2 }
 0x129   : > { %v2565_v47 = vpop.permute.xlu1 %1139  ;;  %v1215_v49 = vadd.f32 %v1199_v7, %v1151_v23  ;;  %v1112_v53 = vsub.f32 %v2449_v59, %v1099_v5  ;;  %v1113_v56 = vsub.f32 %v2451_v38, %v1099_v5  ;;  %v1285_v7 = vld [vmem:[%s2597_s29 + $0x38] sm:$0xff] }
 0x12a   : > { %v2567_v17 = vpop.permute.xlu0 %1187  ;;  %v933_v36 = vmul.f32 0.0625, %v924_v19  ;;  %v1108_v39 = vsub.f32 %v2422_v16, %v1097_v46  ;;  %v1109_v51 = vsub.f32 %v2424_v15, %v1097_v46  ;;  %v1204_v16 = vmul.f32 %v2559_v60, %v2898_v29  ;;  %v1289_v23 = vld [vmem:[%s2597_s29 + $0x58] sm:$0xff] }
 0x12b   : > { %v1205_v15 = vmul.f32 %v2559_v60, %v2899_v48  ;;  %v1160_v46 = vmul.f32 %v2565_v47, %v1112_v53  ;;  %v1208_v59 = vmul.f32 %v2567_v17, %v2901_v40  ;;  %v1209_v38 = vmul.f32 %v2567_v17, %v2902_v43 }
 0x12c   : > { %v1156_v1 = vmul.f32 %v2553_v20, %v1108_v39  ;;  %v1157_v22 = vmul.f32 %v2553_v20, %v1109_v51  ;;  %v1161_v20 = vmul.f32 %v2565_v47, %v1113_v56  ;;  %v930_v29 = vmul.f32 0.0625, %v897_v6 }
 0x12d   : > { %v2573_v25 = vpop.permute.xlu1 %1147  ;;  %v915_v48 = vadd.f32 %v914_v28, %v913_v31  ;;  %v1053_v17 = vrot.slane %v2517_v32, %v2892_v10  ;;  %v1069_v43 = vrot.slane %v2521_v9, %v2892_v10  ;;  %v1224_v5 = vadd.f32 %v1208_v59, %v1160_v46  ;;  %v1292_v28 = vld [vmem:[%s2597_s29 + $0x70] sm:$0xff] }
 0x12e   : > { %v2575_v27 = vpop.permute.xlu0 %1195  ;;  %v1220_v47 = vadd.f32 %v1204_v16, %v1156_v1  ;;  %v1221_v40 = vadd.f32 %v1205_v15, %v1157_v22  ;;  %v1635_v22 = vld [vmem:[%s1904_s21 + $0x18] sm:$0xff] }
 0x132   : > { %v2577_v8 = vpop.permute.xlu1 %1171 }
 0x133   : > { %v2579_v35 = vpop.permute.xlu0 %1235  ;;  %v1201_v53 = vmul.f32 %v1635_v22, %v2577_v8  ;;  %v2928_v22 = vld [vmem:[#allocation21_spill] sm:$0xff] }
 0x134   : > { %2912 = vst [vmem:[#allocation13_spill] sm:$0xff] %v2579_v35 }
 0x136   : > { %v2583_v0 = vpop.permute.xlu1 %1175 }
 0x137   : > { %v2585_v42 = vpop.permute.xlu0 %1247 }
 0x138   : > { %2913 = vst [vmem:[#allocation14_spill] sm:$0xff] %v2585_v42 }
 0x13a   : > { %v2588_v61 = vpop.permute.xlu1 %1183 }
 0x13b   : > { %v2592_v30 = vpop.permute.xlu0 %1255 }
 0x13c   : > { %2914 = vst [vmem:[#allocation15_spill] sm:$0xff] %v2592_v30  ;;  %v1214_v30 = vadd.f32 %v1198_v52, %v1150_v54  ;;  %v1284_v52 = vld [vmem:[%s2597_s29 + $0x30] sm:$0xff] }
 0x13d   : > { %v1288_v54 = vld [vmem:[%s2597_s29 + $0x50] sm:$0xff] }
 0x13e   : > { %v2607_v57 = vpop.permute.xlu1 %1191 }
 0x140   : > { %v1296_v44 = vpop.permute.xlu0 %1295 }
 0x141   : > { %v1326_v42 = vmul.f32 %v1296_v44, %v1278_v26  ;;  %v1327_v35 = vmul.f32 %v1296_v44, %v1279_v14 }
 0x143   : > { %v1232_v13 = vpop.permute.xlu1 %1231 }
 0x144   : > { %v1262_v4 = vmul.f32 %v1232_v13, %v1214_v30  ;;  %v1263_v58 = vmul.f32 %v1232_v13, %v1215_v49  ;;  %v1308_v63 = vpop.permute.xlu0 %1307  ;;  %v1101_v30 = vmul.f32 %v1093_v34, %v933_v36  ;;  %v932_v13 = vmul.f32 0.0625, %v915_v48 }
 0x145   : > { %v1333_v19 = vmul.f32 %v1308_v63, %v1285_v7 }
 0x146   : > { %v1342_v2 = vadd.f32 %v1326_v42, %v1262_v4  ;;  %v1343_v21 = vadd.f32 %v1327_v35, %v1263_v58  ;;  %v928_v35 = vmul.f32 0.0625, %v879_v3  ;;  %v1332_v42 = vmul.f32 %v1308_v63, %v1284_v52  ;;  %v1293_v4 = vld [vmem:[%s2597_s29 + $0x78] sm:$0xff] }
 0x147   : > { %v2625_v45 = vpop.permute.xlu1 %1239  ;;  %v1116_v26 = vsub.f32 %v2481_v55, %v1101_v30  ;;  %v1117_v14 = vsub.f32 %v2483_v62, %v1101_v30  ;;  %v1225_v3 = vadd.f32 %v1209_v38, %v1161_v20  ;;  %v1212_v55 = vmul.f32 %v2575_v27, %v2904_v50  ;;  %v2918_v38 = vld [vmem:[#allocation25_spill] sm:$0xff] }
 0x148   : > { %1358 = vst.msk [vmem:[%s2637_s30] sm:$0xff] %vm852_vm0, %v1342_v2  ;;  %1359 = vst.msk [vmem:[%s2637_s30 + $0x8] sm:$0xff] %vm852_vm0, %v1343_v21  ;;  %v1316_v60 = vpop.permute.xlu0 %1315  ;;  %v1213_v62 = vmul.f32 %v2575_v27, %v2905_v41  ;;  %v1096_v51 = vmul.f32 %v1053_v17, %v928_v35  ;;  %v1085_v63 = vrot.slane %v2529_v33, %v2892_v10  ;;  %v1634_v41 = vld [vmem:[%s1904_s21 + $0x10] sm:$0xff]  ;;  %v1281_v17 = vld [vmem:[%s2597_s29 + $0x18] sm:$0xff] }
 0x149   : > { %v1164_v49 = vmul.f32 %v2573_v25, %v1116_v26  ;;  %v1165_v32 = vmul.f32 %v2573_v25, %v1117_v14  ;;  %v1336_v34 = vmul.f32 %v1316_v60, %v1288_v54  ;;  %v1337_v39 = vmul.f32 %v1316_v60, %v1289_v23  ;;  %v2920_v60 = vld [vmem:[#allocation26_spill] sm:$0xff]  ;;  %v1637_v14 = vld [vmem:[%s1904_s21 + $0x28] sm:$0xff]  ;;  %v2921_v54 = vld [vmem:[#allocation12_spill] sm:$0xff] }
 0x14a   : > { %v1098_v25 = vmul.f32 %v1069_v43, %v930_v29  ;;  %v1200_v1 = vmul.f32 %v1634_v41, %v2577_v8  ;;  %v2915_v33 = vsub.f32 %v2445_v11, %v2501_v18  ;;  %v2916_v52 = vsub.f32 %v2447_v37, %v2501_v18  ;;  %v2917_v8 = vld [vmem:[#allocation28_spill] sm:$0xff] }
 0x14b   : > { %v1244_v12 = vpop.permute.xlu1 %1243  ;;  %v1228_v56 = vadd.f32 %v1212_v55, %v1164_v49  ;;  %v1229_v16 = vadd.f32 %v1213_v62, %v1165_v32  ;;  %v1106_v20 = vsub.f32 %v2917_v8, %v1096_v51  ;;  %v2919_v29 = vld [vmem:[#allocation24_spill] sm:$0xff]  ;;  %v2924_v55 = vld [vmem:[#allocation13_spill] sm:$0xff] }
 0x14c   : > { %v1268_v31 = vmul.f32 %v1244_v12, %v1220_v47  ;;  %v1269_v44 = vmul.f32 %v1244_v12, %v1221_v40  ;;  %v1324_v58 = vpop.permute.xlu0 %1323  ;;  %v1152_v30 = vmul.f32 %v2523_v24, %v2915_v33  ;;  %v1153_v7 = vmul.f32 %v2523_v24, %v2916_v52  ;;  %v1636_v43 = vld [vmem:[%s1904_s21 + $0x20] sm:$0xff]  ;;  %v1287_v52 = vld [vmem:[%s2597_s29 + $0x48] sm:$0xff]  ;;  %s1668_s21 = scalar_lea.vmem %s2744_s5, 2048 }
 0x14d   : > { %v1340_v21 = vmul.f32 %v1324_v58, %v1292_v28  ;;  %v1341_v10 = vmul.f32 %v1324_v58, %v1293_v4  ;;  %v1110_v35 = vsub.f32 %v2918_v38, %v1098_v25  ;;  %v1107_v48 = vsub.f32 %v2919_v29, %v1096_v51  ;;  %v2927_v28 = vld [vmem:[#allocation23_spill] sm:$0xff]  ;;  %v1282_v4 = vld [vmem:[%s2597_s29 + $0x20] sm:$0xff]  ;;  %v1283_v58 = vld [vmem:[%s2597_s29 + $0x28] sm:$0xff]  ;;  %p1669_p8 = scmp.ne.s32.totalorder %s2744_s5, %s1668_s21  ;;  %p1676_p2 = scmp.lt.s32.totalorder %s1674_s9, %s1668_s21 }
 0x14e   : > { %v1348_v9 = vadd.f32 %v1332_v42, %v1268_v31  ;;  %v1349_v36 = vadd.f32 %v1333_v19, %v1269_v44  ;;  %v1216_v37 = vadd.f32 %v1200_v1, %v1152_v30  ;;  %v1217_v18 = vadd.f32 %v1201_v53, %v1153_v7  ;;  %v1280_v19 = vld [vmem:[%s2597_s29 + $0x10] sm:$0xff]  ;;  %v2922_v44 = vld [vmem:[#allocation17_spill] sm:$0xff]  ;;  %v1286_v30 = vld [vmem:[%s2597_s29 + $0x40] sm:$0xff] }
 0x14f   : > { %v1252_v6 = vpop.permute.xlu1 %1251  ;;  %v1100_v24 = vmul.f32 %v1085_v63, %v932_v13  ;;  %v1111_v47 = vsub.f32 %v2920_v60, %v1098_v25  ;;  %v1202_v26 = vmul.f32 %v1636_v43, %v2583_v0  ;;  %v1203_v12 = vmul.f32 %v1637_v14, %v2583_v0  ;;  %v2926_v13 = vld [vmem:[#allocation27_spill] sm:$0xff]  ;;  %p1670_p0 = pnand %p1669_p8, %p2933_p11  ;;  %p1677_p5 = por %p1676_p2, %p1675_p13 }
 0x150   : > { %1364 = vst.msk [vmem:[%s2637_s30 + $0x30] sm:$0xff] %vm852_vm0, %v1348_v9  ;;  %1365 = vst.msk [vmem:[%s2637_s30 + $0x38] sm:$0xff] %vm852_vm0, %v1349_v36  ;;  %v1272_v27 = vmul.f32 %v1252_v6, %v1224_v5  ;;  %v1273_v50 = vmul.f32 %v1252_v6, %v1225_v3  ;;  %v1154_v23 = vmul.f32 %v2921_v54, %v1106_v20  ;;  %v2923_v3 = vld [vmem:[#allocation18_spill] sm:$0xff]  ;;  %v2930_v7 = vld [vmem:[#allocation11_spill] sm:$0xff] }
 0x151   : > { %v1155_v31 = vmul.f32 %v2921_v54, %v1107_v48  ;;  %v1206_v5 = vmul.f32 %v2588_v61, %v2922_v44  ;;  %v1207_v49 = vmul.f32 %v2588_v61, %v2923_v3  ;;  %v1264_v62 = vmul.f32 %v2924_v55, %v1216_v37  ;;  %v2931_v20 = vld [vmem:[#allocation14_spill] sm:$0xff]  ;;  %p1671_p6 = pneg %p1670_p0 }
 0x152   : > { %v1352_v15 = vadd.f32 %v1336_v34, %v1272_v27  ;;  %v1353_v2 = vadd.f32 %v1337_v39, %v1273_v50  ;;  %v1265_v0 = vmul.f32 %v2924_v55, %v1217_v18  ;;  %v2925_v34 = vld [vmem:[#allocation8_spill] sm:$0xff]  ;;  %v1114_v6 = vsub.f32 %v2926_v13, %v1100_v24 }
 0x153   : > { %v1260_v46 = vpop.permute.xlu1 %1259  ;;  %v1158_v39 = vmul.f32 %v2925_v34, %v1110_v35  ;;  %v1159_v51 = vmul.f32 %v2925_v34, %v1111_v47  ;;  %v1115_v61 = vsub.f32 %v2927_v28, %v1100_v24  ;;  %v1218_v25 = vadd.f32 %v1202_v26, %v1154_v23  ;;  %v1290_v18 = vld [vmem:[%s2597_s29 + $0x60] sm:$0xff]  ;;  %v1291_v24 = vld [vmem:[%s2597_s29 + $0x68] sm:$0xff]  ;;  %p1678_p4 = pnand %p1677_p5, %p1671_p6 }
 0x154   : > { %1368 = vst.msk [vmem:[%s2637_s30 + $0x50] sm:$0xff] %vm852_vm0, %v1352_v15  ;;  %1369 = vst.msk [vmem:[%s2637_s30 + $0x58] sm:$0xff] %vm852_vm0, %v1353_v2  ;;  %v1276_v59 = vmul.f32 %v1260_v46, %v1228_v56  ;;  %v1277_v11 = vmul.f32 %v1260_v46, %v1229_v16  ;;  %v1219_v63 = vadd.f32 %v1203_v12, %v1155_v31  ;;  %v2929_v56 = vld [vmem:[#allocation22_spill] sm:$0xff] }
 0x155   : > { %v1222_v41 = vadd.f32 %v1206_v5, %v1158_v39  ;;  %v1223_v1 = vadd.f32 %v1207_v49, %v1159_v51  ;;  %v1210_v53 = vmul.f32 %v2607_v57, %v2928_v22  ;;  %v1211_v16 = vmul.f32 %v2607_v57, %v2929_v56 }
 0x156   : > { %v1356_v40 = vadd.f32 %v1340_v21, %v1276_v59  ;;  %v1357_v42 = vadd.f32 %v1341_v10, %v1277_v11  ;;  %v1266_v2 = vmul.f32 %v2625_v45, %v1218_v25  ;;  %v1267_v21 = vmul.f32 %v2625_v45, %v1219_v63 }
 0x157   : > { %v1162_v46 = vmul.f32 %v2930_v7, %v1114_v6  ;;  %v1163_v57 = vmul.f32 %v2930_v7, %v1115_v61  ;;  %v1270_v59 = vmul.f32 %v2931_v20, %v1222_v41  ;;  %v1271_v11 = vmul.f32 %v2931_v20, %v1223_v1 }
 0x158   : > { %1372 = vst.msk [vmem:[%s2637_s30 + $0x70] sm:$0xff] %vm852_vm0, %v1356_v40  ;;  %1373 = vst.msk [vmem:[%s2637_s30 + $0x78] sm:$0xff] %vm852_vm0, %v1357_v42  ;;  %v1300_v32 = vpop.permute.xlu1 %1299  ;;  %v2932_v42 = vld [vmem:[#allocation15_spill] sm:$0xff] }
 0x159   : > { %v1328_v9 = vmul.f32 %v1300_v32, %v1280_v19  ;;  %v1329_v36 = vmul.f32 %v1300_v32, %v1281_v17  ;;  %v1226_v35 = vadd.f32 %v1210_v53, %v1162_v46  ;;  %v1227_v29 = vadd.f32 %v1211_v16, %v1163_v57 }
 0x15b   : > { %v1344_v27 = vadd.f32 %v1328_v9, %v1264_v62  ;;  %v1345_v50 = vadd.f32 %v1329_v36, %v1265_v0  ;;  %v1274_v19 = vmul.f32 %v2932_v42, %v1226_v35  ;;  %v1275_v17 = vmul.f32 %v2932_v42, %v1227_v29 }
 0x15c   : > { %v1304_v15 = vpop.permute.xlu1 %1303 }
 0x15d   : > { %1360 = vst.msk [vmem:[%s2637_s30 + $0x10] sm:$0xff] %vm852_vm0, %v1344_v27  ;;  %1361 = vst.msk [vmem:[%s2637_s30 + $0x18] sm:$0xff] %vm852_vm0, %v1345_v50  ;;  %v1330_v10 = vmul.f32 %v1304_v15, %v1282_v4  ;;  %v1331_v33 = vmul.f32 %v1304_v15, %v1283_v58 }
 0x15f   : > { %v1346_v8 = vadd.f32 %v1330_v10, %v1266_v2  ;;  %v1347_v45 = vadd.f32 %v1331_v33, %v1267_v21 }
 0x160   : > { %v1312_v38 = vpop.permute.xlu1 %1311 }
 0x161   : > { %1362 = vst.msk [vmem:[%s2637_s30 + $0x20] sm:$0xff] %vm852_vm0, %v1346_v8  ;;  %1363 = vst.msk [vmem:[%s2637_s30 + $0x28] sm:$0xff] %vm852_vm0, %v1347_v45  ;;  %v1334_v48 = vmul.f32 %v1312_v38, %v1286_v30  ;;  %v1335_v37 = vmul.f32 %v1312_v38, %v1287_v52 }
 0x163   : > { %v1350_v60 = vadd.f32 %v1334_v48, %v1270_v59  ;;  %v1351_v47 = vadd.f32 %v1335_v37, %v1271_v11 }
 0x164   : > { %v1320_v40 = vpop.permute.xlu1 %1319 }
 0x165   : > { %1366 = vst.msk [vmem:[%s2637_s30 + $0x40] sm:$0xff] %vm852_vm0, %v1350_v60  ;;  %1367 = vst.msk [vmem:[%s2637_s30 + $0x48] sm:$0xff] %vm852_vm0, %v1351_v47  ;;  %v1338_v43 = vmul.f32 %v1320_v40, %v1290_v18  ;;  %v1339_v26 = vmul.f32 %v1320_v40, %v1291_v24 }
 0x167   : > { %v1354_v14 = vadd.f32 %v1338_v43, %v1274_v19  ;;  %v1355_v12 = vadd.f32 %v1339_v26, %v1275_v17 }
 0x169   : > { %1370 = vst.msk [vmem:[%s2637_s30 + $0x60] sm:$0xff] %vm852_vm0, %v1354_v14  ;;  %1371 = vst.msk [vmem:[%s2637_s30 + $0x68] sm:$0xff] %vm852_vm0, %v1355_v12 }
 0x16a   : > { %1681 = shalt.err (!%p1678_p4)
}
 0x16b   : > { %s1682_s10 = scalar_lea.hbm %s2742_s19, 2048  ;;  %s1686_s23 = scalar_lea.hbm %s2800_s3, 4096 }
 0x16c   : > { %p1683_p7 = scmp.ne.s32.totalorder %s2742_s19, %s1682_s10  ;;  %p1687_p1 = scmp.lt.u32.totalorder %s2742_s19, %s2800_s3 }
 0x16d   : > { %p1688_p3 = scmp.lt.u32.totalorder %s1686_s23, %s1682_s10  ;;  %p1690_p8 = scmp.lt.u32.totalorder %s1682_s10, %s2742_s19 }
 0x16e   : > { %p1684_p10 = pnand %p1683_p7, %p2933_p11 }
 0x16f   : > { %p1689_p9 = por %p1688_p3, %p1687_p1 }
 0x170   : > { %p1685_p12 = pneg %p1684_p10 }
 0x171   : > { %p1691_p0 = por %p1690_p8, %p1689_p9 }
 0x173   : > { %p1692_p6 = pnand %p1691_p0, %p1685_p12 }
 0x175   : > { %1695 = shalt.err (!%p1692_p6)
}
 0x176   : > { %s1764_s30 = smov 128   ;;  %s1765_s4 = smov 8  }
 0x177   : > { %1546 = dma.vmem_to_hbm [thread:$0]  (%p2933_p11), %s2744_s5, 2048, %s2742_s19, %s1375_s15, %s1764_s30, %s1764_s30, %s1765_s4  }
 0x178 PF: > { %s1407_s7 = sand.u32 1, %s1730_s12   ;;  %p2934_p13 = scmp.ne.s32.totalorder %s2844_s27, 0 }
 0x179   : > { %p2935_p2 = scmp.ge.s32.totalorder %s1750_s17, 2  ;;  %s1408_s18 = scalar_lea.sflag [#allocation4], %s1407_s7 }
 0x17b   : > { %p1553_p5 = pnand %p2935_p2, %p2934_p13 }
 0x17d   : > { %1725 = dma.done.wait (!%p1553_p5), %s1408_s18, 2048  }
 0x17e   : > { %1727 = vsyncadd (!%p1553_p5), %s1408_s18, 4294965248  ;;  %s19_s17 = sadd.s32 1, %s1750_s17   ;;  %s2936_s12 = smov %s1734_s13 }
 0x17f   : > { %p16_p4 = scmp.ge.s32.totalorder %s19_s17, 4   ;;  %s2937_s13 = smov %s1738_s14 }
 0x180   : > { %s2938_s14 = smov %s1842_s26  ;;  %s2939_s15 = smov %s1746_s16 }
 0x181   : > { %s2940_s16 = smov %s2942_s20  ;;  %18 = sbr.rel (!%p16_p4) target bundleno = 6 (0x6), region = 83 }
 0x188   :  { %1413 = vsyncpa [#allocation3], 1 }
 0x189   :  { %1415 = vsyncpa [#allocation3 + $0x1], 1 }
 0x18a   :  { %1416 = vsyncpa [#allocation4], 1 }
 0x18b   :  { %1418 = vsyncpa [#allocation4 + $0x1], 1 }

// kernel: cubic_attention_forward.2
= control target key start
LH: loop header
LB: loop body
LE: loop exit
PB: predicated region body
PF: predicated region fallthrough
CT: control target
= control target key end

     0   :  { %9 = vsyncpa [#allocation3], 0  ;;  %s2825_s0 = inlined_call_operand.vmem [shape: f32[2,8,16,16], index: 0, kind: input, shape index: {}]   ;;  %s2826_s1 = inlined_call_operand.vmem [shape: f32[2,8,1,6], index: 1, kind: input, shape index: {}]   ;;  %s2827_s2 = inlined_call_operand.hbm [shape: f32[2,8,16,16], index: 2, kind: output, shape index: {0}]   ;;  %s2828_s3 = inlined_call_operand.vmem [shape: f32[2,8,1,1], index: 3, kind: output, shape index: {1}]  }
   0x1   :  { %11 = vsyncpa [#allocation3 + $0x1], 0  ;;  %s1817_s12 = smov 0   ;;  %s1819_s13 = smov 0  }
   0x2   :  { %s1821_s14 = smov 0   ;;  %s1823_s15 = smov 0  }
   0x3   :  { %s1825_s16 = smov 0   ;;  %s1827_s17 = smov 0  }
   0x4 LB: > { %s1590_s18 = sadd.s32 4294967295, %s1781_s17   ;;  %s1591_s19 = sadd.s32 4294967294, %s1781_s17   ;;  %s1781_s17 = sphi %s1827_s17, %s17_s17   ;;  %s1777_s16 = sphi %s1825_s16, %s2963_s16   ;;  %s1773_s15 = sphi %s1823_s15, %s2962_s15   ;;  %s1769_s14 = sphi %s1821_s14, %s2961_s14   ;;  %s1765_s13 = sphi %s1819_s13, %s2960_s13   ;;  %s1761_s12 = sphi %s1817_s12, %s2959_s12  }
   0x5   : > { %s36_s20 = sadd.s32 1, %s1777_s16  ;;  %s105_s21 = sadd.s32 1, %s1769_s14 }
   0x6   : > { %p38_p0 = scmp.ge.s32.totalorder %s36_s20, 2  ;;  %p115_p1 = scmp.ne.s32.totalorder %s1769_s14, %s1765_s13 }
   0x7   : > { %p116_p2 = scmp.eq.s32.totalorder %s1590_s18, 1  ;;  %p121_p3 = scmp.ne.s32.totalorder %s1765_s13, %s1761_s12 }
   0x8   : > { %s2965_s20 = smov (%p38_p0, %s36_s20), 0  ;;  %p122_p5 = scmp.eq.s32.totalorder %s1591_s19, 1 }
   0x9   : > { %p1857_p4 = por %p116_p2, %p115_p1  ;;  %s98_s23 = ssub.s32 %s1777_s16, %s2965_s20 }
   0xa   : > { %p1594_p6 = scmp.ge.s32.totalorder %s1781_s17, 1  ;;  %p103_p7 = scmp.eq.s32.totalorder %s98_s23, 0 }
   0xb   : > { %p1864_p8 = por %p122_p5, %p121_p3  ;;  %p199_p9 = scmp.lt.s32.totalorder %s1781_s17, 3 }
   0xc   : > { %s1870_s25 = scalar_select %p103_p7, %s1769_s14, %s105_s21  }
   0xd   : > { %p200_p10 = pnand %p1594_p6, %p199_p9 }
   0xf   : > { %203 = sbr.rel (%p200_p10) target bundleno = 1017 (0x3f9), region = 28 }
  0x16   : > { %p250_p11 = scmp.lt.s32.totalorder %s1773_s15, 1  ;;  %v1783_v0 = vmov 0   ;;  %s1784_s4 = smov 127   ;;  %v510_v17 = vlaneseq  ;;  %v1787_v36 = vmov 1   ;;  %v1788_v53 = vmov 2  }
  0x17   : > { %1676 = vset.pattern.permute.xlu1 %v1783_v0  ;;  %1675 = vset.pattern.permute.xlu0 %v1783_v0  ;;  %s1785_s5 = smov 1   ;;  %s1786_s6 = smov 3   ;;  %vm460_vm0 = vcmask 7168   ;;  %vm477_vm1 = vcmask 138240   ;;  %vm862_vm2 = vcmask 130048   ;;  %vm1276_vm3 = vcmask 0  }
  0x18   : > { %s1874_s26 = scalar_select %p250_p11, %s1773_s15, 1  ;;  %v511_v18 = vshrl.u32 %v510_v17, 7 }
  0x19   : > { %s1790_s11 = smov 126   ;;  %s235_s18 = sand.u32 1, %s1765_s13  }
  0x1a   : > { %s1605_s27 = sshll.u32 %s1874_s26, 7  ;;  %s1598_s7 = sshll.u32 %s1874_s26, 3  ;;  %v1998_v19 = vsub.s32 0, %v511_v18 }
  0x1b   : > { %s1880_s30 = scalar_lea.vmem %s2825_s0, %s1605_s27  ;;  %s271_s10 = scalar_lea.vmem %s2826_s1, %s1598_s7 }
  0x1c   : > { %v1883_v1 = vld [vmem:[%s1880_s30 + $0x10] sm:$0xff]  ;;  %v1886_v2 = vld [vmem:[%s1880_s30] sm:$0xff]  ;;  %v1893_v3 = vld [vmem:[%s1880_s30 + $0x18] sm:$0xff]  ;;  %2885 = vst [vmem:[#allocation21_spill] sm:$0xff] %v1998_v19  ;;  %s1595_s19 = sshll.u32 %s235_s18, 7  ;;  %s2684_s28 = scalar_lea.vmem %s2828_s3, %s1598_s7 }
  0x1d   : > { %2869 = vst [vmem:[#allocation5_spill] sm:$0xff] %v1883_v1  ;;  %2870 = vst [vmem:[#allocation6_spill] sm:$0xff] %v1886_v2  ;;  %320 = vrot.lane.b32.xlu1 %v1883_v1, %s1784_s4  ;;  %316 = vrot.lane.b32.xlu0 %v1886_v2, %s1784_s4  ;;  %v1896_v4 = vld [vmem:[%s1880_s30 + $0x8] sm:$0xff]  ;;  %v1906_v6 = vld [vmem:[%s1880_s30 + $0x20] sm:$0xff]  ;;  %s2615_s21 = scalar_lea.vmem [#allocation2], %s1595_s19  ;;  %s1606_s26 = sshll.u32 %s1773_s15, 11 }
  0x1e   : > { %2871 = vst [vmem:[#allocation7_spill] sm:$0xff] %v1893_v3  ;;  %2872 = vst [vmem:[#allocation8_spill] sm:$0xff] %v1896_v4  ;;  %v1903_v5 = vld [vmem:[%s1880_s30 + $0x28] sm:$0xff]  ;;  %v1913_v7 = vld [vmem:[%s1880_s30 + $0x38] sm:$0xff]  ;;  %s1449_s29 = sshll.u32 %s2615_s21, 4  ;;  %s1794_s15 = smov [#allocation2]   ;;  %s2751_s29 = int_to_ptr.vmem [resolvable:$true] %s1449_s29 }
  0x1f   : > { %2873 = vst [vmem:[#allocation9_spill] sm:$0xff] %v1903_v5  ;;  %2874 = vst [vmem:[#allocation10_spill] sm:$0xff] %v1906_v6  ;;  %v1916_v8 = vld [vmem:[%s1880_s30 + $0x30] sm:$0xff]  ;;  %v1923_v9 = vld [vmem:[%s1880_s30 + $0x48] sm:$0xff]  ;;  %s1703_s7 = scalar_lea.vmem %s2751_s29, 2048  ;;  %s1707_s8 = sshll.u32 %s1794_s15, 4  ;;  %s1708_s8 = int_to_ptr.vmem [resolvable:$false] %s1707_s8 }
  0x20   : > { %2875 = vst [vmem:[#allocation11_spill] sm:$0xff] %v1913_v7  ;;  %2876 = vst [vmem:[#allocation12_spill] sm:$0xff] %v1916_v8  ;;  %v1926_v10 = vld [vmem:[%s1880_s30 + $0x40] sm:$0xff]  ;;  %v1933_v11 = vld [vmem:[%s1880_s30 + $0x58] sm:$0xff]  ;;  %p1704_p12 = scmp.ne.s32.totalorder %s2751_s29, %s1703_s7  ;;  %s1709_s9 = scalar_lea.vmem %s1708_s8, 4096 }
  0x21   : > { %322 = vrot.lane.b32.xlu1 %v1893_v3, %s1784_s4  ;;  %318 = vrot.lane.b32.xlu0 %v1896_v4, %s1784_s4  ;;  %2877 = vst [vmem:[#allocation13_spill] sm:$0xff] %v1923_v9  ;;  %2878 = vst [vmem:[#allocation14_spill] sm:$0xff] %v1926_v10  ;;  %v1936_v12 = vld [vmem:[%s1880_s30 + $0x50] sm:$0xff]  ;;  %v1943_v13 = vld [vmem:[%s1880_s30 + $0x68] sm:$0xff]  ;;  %p1710_p1 = scmp.lt.s32.totalorder %s2751_s29, %s1708_s8  ;;  %p1711_p2 = scmp.lt.s32.totalorder %s1709_s9, %s1703_s7 }
  0x22   : > { %2879 = vst [vmem:[#allocation15_spill] sm:$0xff] %v1933_v11  ;;  %2880 = vst [vmem:[#allocation16_spill] sm:$0xff] %v1936_v12  ;;  %v1946_v14 = vld [vmem:[%s1880_s30 + $0x60] sm:$0xff]  ;;  %v1953_v15 = vld [vmem:[%s1880_s30 + $0x78] sm:$0xff]  ;;  %p1705_p13 = pnand %p1704_p12, %p1857_p4 }
  0x23   : > { %2881 = vst [vmem:[#allocation17_spill] sm:$0xff] %v1943_v13  ;;  %2882 = vst [vmem:[#allocation18_spill] sm:$0xff] %v1946_v14  ;;  %v1956_v16 = vld [vmem:[%s1880_s30 + $0x70] sm:$0xff]  ;;  %v2000_v20 = vld [vmem:[%s271_s10 + $0x1] sm:$0x1]  ;;  %p1712_p3 = por %p1711_p2, %p1710_p1 }
  0x24   : > { %2883 = vst [vmem:[#allocation19_spill] sm:$0xff] %v1953_v15  ;;  %2884 = vst [vmem:[#allocation20_spill] sm:$0xff] %v1956_v16  ;;  %v2002_v21 = vld [vmem:[%s271_s10] sm:$0x1]  ;;  %v2008_v22 = vrot.slane %v2000_v20, %v1998_v19  ;;  %v2014_v24 = vld [vmem:[%s271_s10 + $0x2] sm:$0x1]  ;;  %p1706_p0 = pneg %p1705_p13 }
  0x25   : > { %326 = vrot.lane.b32.xlu1 %v1903_v5, %s1784_s4  ;;  %324 = vrot.lane.b32.xlu0 %v1906_v6, %s1784_s4  ;;  %2886 = vst [vmem:[#allocation22_spill] sm:$0xff] %v2000_v20  ;;  %2887 = vst [vmem:[#allocation23_spill] sm:$0xff] %v2002_v21  ;;  %v2012_v23 = vrot.slane %v2002_v21, %v1998_v19  ;;  %v2016_v25 = vld [vmem:[%s271_s10 + $0x3] sm:$0x1]  ;;  %v2022_v26 = vrot.slane %v2014_v24, %v1998_v19  ;;  %v2028_v28 = vld [vmem:[%s271_s10 + $0x4] sm:$0x1] }
  0x26   : > { %2888 = vst [vmem:[#allocation24_spill] sm:$0xff] %v2014_v24  ;;  %2889 = vst [vmem:[#allocation25_spill] sm:$0xff] %v2016_v25  ;;  %v2026_v27 = vrot.slane %v2016_v25, %v1998_v19  ;;  %v2030_v29 = vld [vmem:[%s271_s10 + $0x5] sm:$0x1]  ;;  %v2036_v30 = vrot.slane %v2028_v28, %v1998_v19  ;;  %v2042_v32 = vld [vmem:[%s271_s10 + $0x6] sm:$0x1]  ;;  %p1713_p5 = pnand %p1712_p3, %p1706_p0 }
  0x27   : > { %2890 = vst [vmem:[#allocation26_spill] sm:$0xff] %v2028_v28  ;;  %2891 = vst [vmem:[#allocation27_spill] sm:$0xff] %v2030_v29  ;;  %v2040_v31 = vrot.slane %v2030_v29, %v1998_v19  ;;  %v2044_v33 = vld [vmem:[%s271_s10 + $0x7] sm:$0x1]  ;;  %v2050_v34 = vrot.slane %v2042_v32, %v1998_v19 }
  0x28   : > { %2892 = vst [vmem:[#allocation28_spill] sm:$0xff] %v2042_v32  ;;  %2893 = vst [vmem:[#allocation29_spill] sm:$0xff] %v2044_v33  ;;  %v2054_v35 = vrot.slane %v2044_v33, %v1998_v19 }
  0x29   : > { %330 = vrot.lane.b32.xlu1 %v1913_v7, %s1784_s4  ;;  %328 = vrot.lane.b32.xlu0 %v1916_v8, %s1784_s4 }
  0x2a   : > { %2894 = vst [vmem:[#allocation30_spill] sm:$0xff] %v2054_v35 }
  0x2d   : > { %334 = vrot.lane.b32.xlu1 %v1923_v9, %s1784_s4  ;;  %332 = vrot.lane.b32.xlu0 %v1926_v10, %s1784_s4 }
  0x31   : > { %338 = vrot.lane.b32.xlu1 %v1933_v11, %s1784_s4  ;;  %336 = vrot.lane.b32.xlu0 %v1936_v12, %s1784_s4 }
  0x35   : > { %342 = vrot.lane.b32.xlu1 %v1943_v13, %s1784_s4  ;;  %340 = vrot.lane.b32.xlu0 %v1946_v14, %s1784_s4 }
  0x39   : > { %346 = vrot.lane.b32.xlu1 %v1953_v15, %s1784_s4  ;;  %344 = vrot.lane.b32.xlu0 %v1956_v16, %s1784_s4 }
  0x3d   : > { %366 = vrot.lane.b32.xlu1 %v1896_v4, %s1785_s5  ;;  %364 = vrot.lane.b32.xlu0 %v1886_v2, %s1785_s5 }
  0x41   : > { %370 = vrot.lane.b32.xlu1 %v1893_v3, %s1785_s5  ;;  %368 = vrot.lane.b32.xlu0 %v1883_v1, %s1785_s5 }
  0x45   : > { %374 = vrot.lane.b32.xlu1 %v1903_v5, %s1785_s5  ;;  %372 = vrot.lane.b32.xlu0 %v1906_v6, %s1785_s5 }
  0x49   : > { %378 = vrot.lane.b32.xlu1 %v1913_v7, %s1785_s5  ;;  %376 = vrot.lane.b32.xlu0 %v1916_v8, %s1785_s5 }
  0x4d   : > { %382 = vrot.lane.b32.xlu1 %v1923_v9, %s1785_s5  ;;  %380 = vrot.lane.b32.xlu0 %v1926_v10, %s1785_s5 }
  0x51   : > { %386 = vrot.lane.b32.xlu1 %v1933_v11, %s1785_s5  ;;  %384 = vrot.lane.b32.xlu0 %v1936_v12, %s1785_s5 }
  0x55   : > { %390 = vrot.lane.b32.xlu1 %v1943_v13, %s1785_s5  ;;  %388 = vrot.lane.b32.xlu0 %v1946_v14, %s1785_s5 }
  0x59   : > { %394 = vrot.lane.b32.xlu1 %v1953_v15, %s1785_s5  ;;  %392 = vrot.lane.b32.xlu0 %v1956_v16, %s1785_s5  ;;  %s2749_s5 = scalar_lea.hbm %s2827_s2, %s1606_s26 }
  0x5d   : > { %414 = vrot.lane.b32.xlu1 %v1896_v4, %s1786_s6  ;;  %412 = vrot.lane.b32.xlu0 %v1886_v2, %s1786_s6 }
  0x61   : > { %418 = vrot.lane.b32.xlu1 %v1893_v3, %s1786_s6  ;;  %416 = vrot.lane.b32.xlu0 %v1883_v1, %s1786_s6 }
  0x65   : > { %422 = vrot.lane.b32.xlu1 %v1903_v5, %s1786_s6  ;;  %420 = vrot.lane.b32.xlu0 %v1906_v6, %s1786_s6 }
  0x69   : > { %426 = vrot.lane.b32.xlu1 %v1913_v7, %s1786_s6  ;;  %424 = vrot.lane.b32.xlu0 %v1916_v8, %s1786_s6 }
  0x6d   : > { %430 = vrot.lane.b32.xlu1 %v1923_v9, %s1786_s6  ;;  %428 = vrot.lane.b32.xlu0 %v1926_v10, %s1786_s6 }
  0x71   : > { %434 = vrot.lane.b32.xlu1 %v1933_v11, %s1786_s6  ;;  %432 = vrot.lane.b32.xlu0 %v1936_v12, %s1786_s6 }
  0x75   : > { %438 = vrot.lane.b32.xlu1 %v1943_v13, %s1786_s6  ;;  %436 = vrot.lane.b32.xlu0 %v1946_v14, %s1786_s6 }
  0x79   : > { %442 = vrot.lane.b32.xlu1 %v1953_v15, %s1786_s6  ;;  %440 = vrot.lane.b32.xlu0 %v1956_v16, %s1786_s6  ;;  %s2755_s6 = scalar_lea.sflag [#allocation3], %s235_s18 }
  0x7d   : > { %547 = vperm.xlu1 %1676, %v2008_v22   ;;  %543 = vperm.xlu0 %1675, %v2012_v23  }
  0x81   : > { %551 = vperm.xlu1 %1676, %v2022_v26   ;;  %555 = vperm.xlu0 %1675, %v2026_v27  }
  0x85   : > { %559 = vperm.xlu1 %1676, %v2036_v30   ;;  %563 = vperm.xlu0 %1675, %v2040_v31  }
  0x89   : > { %567 = vperm.xlu1 %1676, %v2050_v34   ;;  %571 = vperm.xlu0 %1675, %v2054_v35  }
  0x8d   : > { %1677 = vset.pattern.permute.xlu1 %v1787_v36  ;;  %1678 = vset.pattern.permute.xlu0 %v1787_v36 }
  0x8e   : > { %607 = vperm.xlu1 %1677, %v2012_v23   ;;  %611 = vperm.xlu0 %1678, %v2008_v22  }
  0x8f   : > { %v2060_v37 = vpop.permute.xlu1 %320  ;;  %v2062_v38 = vpop.permute.xlu0 %316 }
  0x92   : > { %615 = vperm.xlu1 %1677, %v2022_v26   ;;  %623 = vperm.xlu0 %1678, %v2036_v30  }
  0x93   : > { %v2066_v39 = vpop.permute.xlu1 %322  ;;  %v2068_v40 = vpop.permute.xlu0 %318 }
  0x96   : > { %619 = vperm.xlu1 %1677, %v2026_v27   ;;  %631 = vperm.xlu0 %1678, %v2050_v34  }
  0x97   : > { %v2072_v41 = vpop.permute.xlu1 %326  ;;  %v2074_v42 = vpop.permute.xlu0 %324 }
  0x9a   : > { %627 = vperm.xlu1 %1677, %v2040_v31   ;;  %1679 = vset.pattern.permute.xlu0 %v1788_v53 }
  0x9b   : > { %v2077_v43 = vpop.permute.xlu1 %330  ;;  %v2079_v44 = vpop.permute.xlu0 %328 }
  0x9e   : > { %635 = vperm.xlu1 %1677, %v2054_v35  }
  0x9f   : > { %v2082_v45 = vpop.permute.xlu1 %334  ;;  %v2084_v46 = vpop.permute.xlu0 %332 }
  0xa2   : > { %1680 = vset.pattern.permute.xlu1 %v1788_v53 }
  0xa3   : > { %v2086_v47 = vpop.permute.xlu1 %338  ;;  %v2088_v48 = vpop.permute.xlu0 %336 }
  0xa7   : > { %v2090_v49 = vpop.permute.xlu1 %342  ;;  %v2092_v50 = vpop.permute.xlu0 %340 }
  0xab   : > { %v2094_v51 = vpop.permute.xlu1 %346  ;;  %v2096_v52 = vpop.permute.xlu0 %344 }
  0xaf   : > { %v367_v54 = vpop.permute.xlu1 %366  ;;  %v365_v55 = vpop.permute.xlu0 %364 }
  0xb0   : > { %v462_v35 = vsel %vm460_vm0, %v2068_v40, %v367_v54 }
  0xb3   : > { %v371_v56 = vpop.permute.xlu1 %370  ;;  %v369_v57 = vpop.permute.xlu0 %368 }
  0xb4   : > { %v463_v40 = vsel %vm460_vm0, %v2060_v37, %v369_v57 }
  0xb7   : > { %v375_v58 = vpop.permute.xlu1 %374  ;;  %v373_v59 = vpop.permute.xlu0 %372 }
  0xb8   : > { %v465_v37 = vsel %vm460_vm0, %v2074_v42, %v373_v59 }
  0xbb   : > { %v2098_v60 = vpop.permute.xlu1 %378  ;;  %v2100_v61 = vpop.permute.xlu0 %376 }
  0xbf   : > { %v2102_v62 = vpop.permute.xlu1 %382  ;;  %v2104_v63 = vpop.permute.xlu0 %380 }
  0xc3   : > { %v2106_v0 = vpop.permute.xlu1 %386  ;;  %v2108_v17 = vpop.permute.xlu0 %384 }
  0xc7   : > { %v2110_v18 = vpop.permute.xlu1 %390  ;;  %v2112_v36 = vpop.permute.xlu0 %388 }
  0xcb   : > { %v2114_v53 = vpop.permute.xlu1 %394  ;;  %v2116_v33 = vpop.permute.xlu0 %392 }
  0xcf   : > { %v415_v32 = vpop.permute.xlu1 %414  ;;  %v413_v29 = vpop.permute.xlu0 %412 }
  0xd3   : > { %v419_v28 = vpop.permute.xlu1 %418  ;;  %v417_v25 = vpop.permute.xlu0 %416 }
  0xd7   : > { %v423_v24 = vpop.permute.xlu1 %422  ;;  %v421_v19 = vpop.permute.xlu0 %420 }
  0xdb   : > { %v427_v20 = vpop.permute.xlu1 %426  ;;  %v425_v21 = vpop.permute.xlu0 %424 }
  0xdf   : > { %v431_v15 = vpop.permute.xlu1 %430  ;;  %v429_v13 = vpop.permute.xlu0 %428 }
  0xe3   : > { %v2118_v16 = vpop.permute.xlu1 %434  ;;  %v2120_v11 = vpop.permute.xlu0 %432 }
  0xe7   : > { %v2122_v14 = vpop.permute.xlu1 %438  ;;  %v2124_v9 = vpop.permute.xlu0 %436 }
  0xeb   : > { %v2126_v12 = vpop.permute.xlu1 %442  ;;  %v2128_v7 = vpop.permute.xlu0 %440 }
  0xfc   : > { %v2130_v10 = vpop.permute.xlu1 %547  ;;  %v2132_v5 = vpop.permute.xlu0 %543 }
  0xfd   : > { %2895 = vst [vmem:[#allocation31_spill] sm:$0xff] %v2130_v10  ;;  %2896 = vst [vmem:[#allocation32_spill] sm:$0xff] %v2132_v5  ;;  %v461_v5 = vsel %vm460_vm0, %v2062_v38, %v365_v55  ;;  %v466_v38 = vsel %vm460_vm0, %v2072_v41, %v375_v58 }
  0xfe   : > { %v2154_v10 = vsel %vm477_vm1, %v461_v5, %v413_v29  ;;  %v2168_v5 = vsel %vm477_vm1, %v463_v40, %v417_v25 }
 0x100   : > { %v2134_v8 = vpop.permute.xlu1 %551  ;;  %v2136_v3 = vpop.permute.xlu0 %555 }
 0x101   : > { %2897 = vst [vmem:[#allocation33_spill] sm:$0xff] %v2134_v8  ;;  %2898 = vst [vmem:[#allocation34_spill] sm:$0xff] %v2136_v3  ;;  %v2151_v8 = vsel %vm477_vm1, %v462_v35, %v415_v32 }
 0x104   : > { %v2138_v6 = vpop.permute.xlu1 %559  ;;  %v2140_v2 = vpop.permute.xlu0 %563 }
 0x105   : > { %2899 = vst [vmem:[#allocation35_spill] sm:$0xff] %v2138_v6  ;;  %2900 = vst [vmem:[#allocation36_spill] sm:$0xff] %v2140_v2 }
 0x108   : > { %v2142_v1 = vpop.permute.xlu1 %567  ;;  %v2144_v4 = vpop.permute.xlu0 %571 }
 0x109   : > { %2901 = vst [vmem:[#allocation37_spill] sm:$0xff] %v2142_v1  ;;  %2902 = vst [vmem:[#allocation38_spill] sm:$0xff] %v2144_v4  ;;  %v464_v4 = vsel %vm460_vm0, %v2066_v39, %v371_v56  ;;  %v467_v39 = vsel %vm460_vm0, %v2079_v44, %v2100_v61  ;;  %v469_v44 = vsel %vm460_vm0, %v2084_v46, %v2104_v63 }
 0x10a   : > { %v2165_v32 = vsel %vm477_vm1, %v464_v4, %v419_v28  ;;  %v468_v28 = vsel %vm460_vm0, %v2077_v43, %v2098_v60  ;;  %v470_v43 = vsel %vm460_vm0, %v2082_v45, %v2102_v62  ;;  %v472_v45 = vsel %vm460_vm0, %v2086_v47, %v2106_v0 }
 0x10b   : > { %v471_v46 = vsel %vm460_vm0, %v2088_v48, %v2108_v17  ;;  %v474_v48 = vsel %vm460_vm0, %v2090_v49, %v2110_v18  ;;  %v473_v60 = vsel %vm460_vm0, %v2092_v50, %v2112_v36  ;;  %v476_v50 = vsel %vm460_vm0, %v2094_v51, %v2114_v53 }
 0x10c   : > { %v475_v63 = vsel %vm460_vm0, %v2096_v52, %v2116_v33  ;;  %v1789_v53 = vmov 3  }
 0x10d   : > { %v608_v6 = vpop.permute.xlu1 %607  ;;  %v612_v3 = vpop.permute.xlu0 %611 }
 0x10e   : > { %v638_v2 = vmul.f32 %v608_v6, %v2154_v10  ;;  %v639_v1 = vmul.f32 %v608_v6, %v2151_v8  ;;  %v640_v6 = vmul.f32 %v612_v3, %v2168_v5  ;;  %v641_v35 = vmul.f32 %v612_v3, %v2165_v32 }
 0x110   : > { %672 = vrot.lane.b32.xlu1 %v639_v1, %s1784_s4  ;;  %670 = vrot.lane.b32.xlu0 %v638_v2, %s1784_s4  ;;  %v2179_v1 = vsel %vm477_vm1, %v466_v38, %v423_v24  ;;  %v2182_v2 = vsel %vm477_vm1, %v465_v37, %v421_v19  ;;  %v2195_v19 = vsel %vm477_vm1, %v468_v28, %v427_v20 }
 0x111   : > { %v616_v29 = vpop.permute.xlu1 %615  ;;  %v2198_v24 = vsel %vm477_vm1, %v467_v39, %v425_v21  ;;  %v624_v54 = vpop.permute.xlu0 %623  ;;  %v2211_v20 = vsel %vm477_vm1, %v470_v43, %v431_v15  ;;  %v2214_v21 = vsel %vm477_vm1, %v469_v44, %v429_v13  ;;  %v2228_v13 = vsel %vm477_vm1, %v472_v45, %v2118_v16 }
 0x112   : > { %v642_v4 = vmul.f32 %v616_v29, %v2182_v2  ;;  %v643_v3 = vmul.f32 %v616_v29, %v2179_v1  ;;  %v646_v55 = vmul.f32 %v624_v54, %v2214_v21  ;;  %v647_v56 = vmul.f32 %v624_v54, %v2211_v20  ;;  %2903 = vst [vmem:[#allocation39_spill] sm:$0xff] %v2228_v13 }
 0x113   : > { %v2232_v15 = vsel %vm477_vm1, %v471_v46, %v2120_v11  ;;  %v2246_v11 = vsel %vm477_vm1, %v474_v48, %v2122_v14  ;;  %v2250_v16 = vsel %vm477_vm1, %v473_v60, %v2124_v9  ;;  %v2264_v9 = vsel %vm477_vm1, %v476_v50, %v2126_v12 }
 0x114   : > { %676 = vrot.lane.b32.xlu1 %v641_v35, %s1784_s4  ;;  %674 = vrot.lane.b32.xlu0 %v640_v6, %s1784_s4  ;;  %2904 = vst [vmem:[#allocation40_spill] sm:$0xff] %v2264_v9  ;;  %v2268_v14 = vsel %vm477_vm1, %v475_v63, %v2128_v7  ;;  %v2905_v7 = vld [vmem:[#allocation30_spill] sm:$0xff] }
 0x115   : > { %v620_v25 = vpop.permute.xlu1 %619  ;;  %v632_v59 = vpop.permute.xlu0 %631 }
 0x116   : > { %v644_v41 = vmul.f32 %v620_v25, %v2198_v24  ;;  %v645_v42 = vmul.f32 %v620_v25, %v2195_v19  ;;  %v650_v61 = vmul.f32 %v632_v59, %v2250_v16  ;;  %v651_v49 = vmul.f32 %v632_v59, %v2246_v11 }
 0x118   : > { %680 = vrot.lane.b32.xlu1 %v643_v3, %s1784_s4  ;;  %678 = vrot.lane.b32.xlu0 %v642_v4, %s1784_s4 }
 0x119   : > { %v628_v57 = vpop.permute.xlu1 %627 }
 0x11a   : > { %v648_v58 = vmul.f32 %v628_v57, %v2232_v15  ;;  %v649_v47 = vmul.f32 %v628_v57, %v2228_v13 }
 0x11c   : > { %684 = vrot.lane.b32.xlu1 %v645_v42, %s1784_s4  ;;  %682 = vrot.lane.b32.xlu0 %v644_v41, %s1784_s4 }
 0x11d   : > { %v636_v62 = vpop.permute.xlu1 %635 }
 0x11e   : > { %v652_v0 = vmul.f32 %v636_v62, %v2268_v14  ;;  %v653_v51 = vmul.f32 %v636_v62, %v2264_v9 }
 0x120   : > { %688 = vrot.lane.b32.xlu1 %v647_v56, %s1784_s4  ;;  %686 = vrot.lane.b32.xlu0 %v646_v55, %s1784_s4 }
 0x124   : > { %692 = vrot.lane.b32.xlu1 %v649_v47, %s1784_s4  ;;  %690 = vrot.lane.b32.xlu0 %v648_v58, %s1784_s4 }
 0x128   : > { %696 = vrot.lane.b32.xlu1 %v651_v49, %s1784_s4  ;;  %694 = vrot.lane.b32.xlu0 %v650_v61, %s1784_s4 }
 0x12c   : > { %700 = vrot.lane.b32.xlu1 %v653_v51, %s1784_s4  ;;  %698 = vrot.lane.b32.xlu0 %v652_v0, %s1784_s4 }
 0x130   : > { %739 = vperm.xlu1 %1680, %v2008_v22   ;;  %735 = vperm.xlu0 %1679, %v2012_v23  }
 0x134   : > { %743 = vperm.xlu1 %1680, %v2022_v26   ;;  %747 = vperm.xlu0 %1679, %v2026_v27  }
 0x138   : > { %751 = vperm.xlu1 %1680, %v2036_v30   ;;  %755 = vperm.xlu0 %1679, %v2040_v31  }
 0x13c   : > { %759 = vperm.xlu1 %1680, %v2050_v34   ;;  %763 = vperm.xlu0 %1679, %v2905_v7  }
 0x140   : > { %1681 = vset.pattern.permute.xlu0 %v1789_v53  ;;  %1682 = vset.pattern.permute.xlu1 %v1789_v53 }
 0x182   : > { %v2282_v12 = vpop.permute.xlu1 %672  ;;  %v2284_v33 = vpop.permute.xlu0 %670 }
 0x186   : > { %v2286_v52 = vpop.permute.xlu1 %676  ;;  %v2288_v17 = vpop.permute.xlu0 %674 }
 0x18a   : > { %v2290_v18 = vpop.permute.xlu1 %680  ;;  %v2292_v36 = vpop.permute.xlu0 %678 }
 0x18e   : > { %v2294_v40 = vpop.permute.xlu1 %684  ;;  %v2296_v29 = vpop.permute.xlu0 %682 }
 0x192   : > { %v2298_v6 = vpop.permute.xlu1 %688  ;;  %v2300_v35 = vpop.permute.xlu0 %686 }
 0x196   : > { %v2302_v38 = vpop.permute.xlu1 %692  ;;  %v2304_v37 = vpop.permute.xlu0 %690 }
 0x197   : > { %2906 = vst [vmem:[#allocation30_spill] sm:$0xff] %v2302_v38 }
 0x19a   : > { %v2306_v4 = vpop.permute.xlu1 %696  ;;  %v2308_v3 = vpop.permute.xlu0 %694 }
 0x19e   : > { %v2310_v25 = vpop.permute.xlu1 %700  ;;  %v2312_v28 = vpop.permute.xlu0 %698 }
 0x19f   : > { %2907 = vst [vmem:[#allocation41_spill] sm:$0xff] %v2310_v25 }
 0x1af   : > { %v740_v39 = vpop.permute.xlu1 %739  ;;  %v736_v41 = vpop.permute.xlu0 %735 }
 0x1b0   : > { %v766_v42 = vmul.f32 %v736_v41, %v2154_v10  ;;  %v767_v54 = vmul.f32 %v736_v41, %v2151_v8  ;;  %v768_v43 = vmul.f32 %v740_v39, %v2168_v5  ;;  %v769_v44 = vmul.f32 %v740_v39, %v2165_v32  ;;  %v2908_v39 = vld [vmem:[#allocation8_spill] sm:$0xff] }
 0x1b1   : > { %v866_v41 = vsel %vm862_vm2, %v2908_v39, 0.0  ;;  %v2920_v39 = vld [vmem:[#allocation15_spill] sm:$0xff] }
 0x1b2   : > { %800 = vrot.lane.b32.xlu0 %v767_v54, %s1790_s11  ;;  %798 = vrot.lane.b32.xlu1 %v766_v42, %s1790_s11  ;;  %v2909_v42 = vld [vmem:[#allocation5_spill] sm:$0xff] }
 0x1b3   : > { %v744_v55 = vpop.permute.xlu1 %743  ;;  %v748_v45 = vpop.permute.xlu0 %747  ;;  %v869_v54 = vsel %vm862_vm2, %v2909_v42, 0.0  ;;  %v2921_v42 = vld [vmem:[#allocation20_spill] sm:$0xff] }
 0x1b4   : > { %v770_v56 = vmul.f32 %v744_v55, %v2182_v2  ;;  %v771_v57 = vmul.f32 %v744_v55, %v2179_v1  ;;  %v772_v46 = vmul.f32 %v748_v45, %v2198_v24  ;;  %v773_v58 = vmul.f32 %v748_v45, %v2195_v19  ;;  %v2911_v55 = vld [vmem:[#allocation10_spill] sm:$0xff] }
 0x1b6   : > { %804 = vrot.lane.b32.xlu0 %v769_v44, %s1790_s11  ;;  %802 = vrot.lane.b32.xlu1 %v768_v43, %s1790_s11  ;;  %v2910_v43 = vld [vmem:[#allocation6_spill] sm:$0xff] }
 0x1b7   : > { %v752_v47 = vpop.permute.xlu1 %751  ;;  %v756_v60 = vpop.permute.xlu0 %755  ;;  %v863_v44 = vsel %vm862_vm2, %v2910_v43, 0.0  ;;  %v2922_v43 = vld [vmem:[#allocation17_spill] sm:$0xff] }
 0x1b8   : > { %v774_v59 = vmul.f32 %v752_v47, %v2214_v21  ;;  %v775_v48 = vmul.f32 %v752_v47, %v2211_v20  ;;  %v776_v61 = vmul.f32 %v756_v60, %v2232_v15  ;;  %v777_v49 = vmul.f32 %v756_v60, %v2228_v13  ;;  %v2914_v47 = vld [vmem:[#allocation9_spill] sm:$0xff] }
 0x1ba   : > { %808 = vrot.lane.b32.xlu0 %v771_v57, %s1790_s11  ;;  %806 = vrot.lane.b32.xlu1 %v770_v56, %s1790_s11  ;;  %v875_v56 = vsel %vm862_vm2, %v2911_v55, 0.0  ;;  %v2912_v57 = vld [vmem:[#allocation7_spill] sm:$0xff] }
 0x1bb   : > { %v760_v62 = vpop.permute.xlu1 %759  ;;  %v764_v0 = vpop.permute.xlu0 %763  ;;  %v872_v45 = vsel %vm862_vm2, %v2912_v57, 0.0  ;;  %v2923_v55 = vld [vmem:[#allocation19_spill] sm:$0xff] }
 0x1bc   : > { %v778_v50 = vmul.f32 %v760_v62, %v2250_v16  ;;  %v779_v63 = vmul.f32 %v760_v62, %v2246_v11  ;;  %v780_v51 = vmul.f32 %v764_v0, %v2268_v14  ;;  %v781_v53 = vmul.f32 %v764_v0, %v2264_v9  ;;  %v2917_v62 = vld [vmem:[#allocation16_spill] sm:$0xff]  ;;  %v2924_v57 = vld [vmem:[#allocation23_spill] sm:$0xff] }
 0x1be   : > { %812 = vrot.lane.b32.xlu0 %v773_v58, %s1790_s11  ;;  %810 = vrot.lane.b32.xlu1 %v772_v46, %s1790_s11  ;;  %v2913_v46 = vld [vmem:[#allocation12_spill] sm:$0xff] }
 0x1bf   : > { %v881_v58 = vsel %vm862_vm2, %v2913_v46, 0.0  ;;  %v2925_v46 = vld [vmem:[#allocation22_spill] sm:$0xff] }
 0x1c2   : > { %816 = vrot.lane.b32.xlu0 %v775_v48, %s1790_s11  ;;  %814 = vrot.lane.b32.xlu1 %v774_v59, %s1790_s11  ;;  %v878_v59 = vsel %vm862_vm2, %v2914_v47, 0.0  ;;  %v2915_v48 = vld [vmem:[#allocation14_spill] sm:$0xff]  ;;  %v2926_v47 = vld [vmem:[#allocation21_spill] sm:$0xff] }
 0x1c3   : > { %v887_v60 = vsel %vm862_vm2, %v2915_v48, 0.0 }
 0x1c6   : > { %820 = vrot.lane.b32.xlu0 %v777_v49, %s1790_s11  ;;  %818 = vrot.lane.b32.xlu1 %v776_v61, %s1790_s11  ;;  %v2916_v61 = vld [vmem:[#allocation11_spill] sm:$0xff] }
 0x1c7   : > { %v884_v49 = vsel %vm862_vm2, %v2916_v61, 0.0 }
 0x1ca   : > { %824 = vrot.lane.b32.xlu0 %v779_v63, %s1790_s11  ;;  %822 = vrot.lane.b32.xlu1 %v778_v50, %s1790_s11  ;;  %v893_v50 = vsel %vm862_vm2, %v2917_v62, 0.0  ;;  %v2918_v63 = vld [vmem:[#allocation13_spill] sm:$0xff] }
 0x1cb   : > { %v890_v0 = vsel %vm862_vm2, %v2918_v63, 0.0  ;;  %v2928_v62 = vld [vmem:[#allocation25_spill] sm:$0xff] }
 0x1ce   : > { %828 = vrot.lane.b32.xlu0 %v781_v53, %s1790_s11  ;;  %826 = vrot.lane.b32.xlu1 %v780_v51, %s1790_s11  ;;  %v2919_v51 = vld [vmem:[#allocation18_spill] sm:$0xff] }
 0x1cf   : > { %v899_v53 = vsel %vm862_vm2, %v2919_v51, 0.0 }
 0x1ed   : > { %867 = vadd.xlane.f32.xlu0 %v866_v41  ;;  %v896_v41 = vsel %vm862_vm2, %v2920_v39, 0.0 }
 0x1f1   : > { %870 = vadd.xlane.f32.xlu0 %v869_v54  ;;  %v905_v54 = vsel %vm862_vm2, %v2921_v42, 0.0 }
 0x1f2   : > { %864 = vadd.xlane.f32.xlu1 %v863_v44  ;;  %v902_v44 = vsel %vm862_vm2, %v2922_v43, 0.0 }
 0x1f5   : > { %876 = vadd.xlane.f32.xlu0 %v875_v56  ;;  %v908_v56 = vsel %vm862_vm2, %v2923_v55, 0.0 }
 0x1f6   : > { %873 = vadd.xlane.f32.xlu1 %v872_v45  ;;  %v928_v45 = vadd.f32 1.0, %v2924_v57  ;;  %v2933_v57 = vld [vmem:[#allocation34_spill] sm:$0xff] }
 0x1f9   : > { %882 = vadd.xlane.f32.xlu0 %v881_v58  ;;  %v929_v58 = vadd.f32 1.0, %v2925_v46 }
 0x1fa   : > { %879 = vadd.xlane.f32.xlu1 %v878_v59  ;;  %v2381_v59 = vrot.slane %v928_v45, %v2926_v47  ;;  %v580_v45 = vmul.f32 %v2933_v57, %v2198_v24 }
 0x1fb   : > { %v2384_v48 = vrot.slane %v929_v58, %v2926_v47 }
 0x1fc   : > { %v724_v46 = vadd.f32 %v2296_v29, %v580_v45 }
 0x1fd   : > { %888 = vadd.xlane.f32.xlu0 %v887_v60  ;;  %v2927_v60 = vld [vmem:[#allocation24_spill] sm:$0xff] }
 0x1fe   : > { %885 = vadd.xlane.f32.xlu1 %v884_v49  ;;  %v930_v61 = vadd.f32 1.0, %v2927_v60  ;;  %v2934_v60 = vld [vmem:[#allocation29_spill] sm:$0xff] }
 0x200   : > { %v2390_v49 = vrot.slane %v930_v61, %v2926_v47  ;;  %v935_v61 = vadd.f32 1.0, %v2934_v60 }
 0x201   : > { %894 = vadd.xlane.f32.xlu0 %v893_v50  ;;  %v931_v50 = vadd.f32 1.0, %v2928_v62 }
 0x202   : > { %891 = vadd.xlane.f32.xlu1 %v890_v0  ;;  %v2929_v0 = vld [vmem:[#allocation26_spill] sm:$0xff]  ;;  %v2429_v24 = vrot.slane %v935_v61, %v2926_v47 }
 0x203   : > { %v2395_v63 = vrot.slane %v931_v50, %v2926_v47  ;;  %v932_v51 = vadd.f32 1.0, %v2929_v0  ;;  %v2935_v50 = vld [vmem:[#allocation35_spill] sm:$0xff]  ;;  %v2939_v61 = vld [vmem:[#allocation38_spill] sm:$0xff] }
 0x204   : > { %v582_v0 = vmul.f32 %v2935_v50, %v2214_v21 }
 0x205   : > { %900 = vadd.xlane.f32.xlu0 %v899_v53  ;;  %v2402_v39 = vrot.slane %v932_v51, %v2926_v47 }
 0x206   : > { %897 = vadd.xlane.f32.xlu1 %v896_v41  ;;  %v2931_v41 = vld [vmem:[#allocation27_spill] sm:$0xff] }
 0x207   : > { %v933_v42 = vadd.f32 1.0, %v2931_v41  ;;  %v726_v41 = vadd.f32 %v2300_v35, %v582_v0  ;;  %v588_v0 = vmul.f32 %v2939_v61, %v2268_v14 }
 0x209   : > { %906 = vadd.xlane.f32.xlu0 %v905_v54  ;;  %v2409_v43 = vrot.slane %v933_v42, %v2926_v47  ;;  %v2936_v42 = vld [vmem:[#allocation36_spill] sm:$0xff] }
 0x20a   : > { %903 = vadd.xlane.f32.xlu1 %v902_v44  ;;  %v2932_v44 = vld [vmem:[#allocation28_spill] sm:$0xff] }
 0x20b   : > { %v934_v55 = vadd.f32 1.0, %v2932_v44  ;;  %v584_v44 = vmul.f32 %v2936_v42, %v2232_v15  ;;  %v732_v15 = vadd.f32 %v2312_v28, %v588_v0 }
 0x20d   : > { %v2419_v58 = vrot.slane %v934_v55, %v2926_v47  ;;  %v728_v45 = vadd.f32 %v2304_v37, %v584_v44 }
 0x20e   : > { %909 = vadd.xlane.f32.xlu1 %v908_v56 }
 0x21f   : > { %977 = vperm.xlu0 %1681, %v2381_v59   ;;  %981 = vperm.xlu1 %1682, %v2384_v48  }
 0x223   : > { %985 = vperm.xlu1 %1682, %v2390_v49  }
 0x224   : > { %v2398_v53 = vpop.permute.xlu1 %798 }
 0x225   : > { %2930 = vst [vmem:[#allocation8_spill] sm:$0xff] %v2398_v53 }
 0x227   : > { %989 = vperm.xlu1 %1682, %v2395_v63  }
 0x228   : > { %v2405_v54 = vpop.permute.xlu1 %802 }
 0x22b   : > { %993 = vperm.xlu1 %1682, %v2402_v39  }
 0x22c   : > { %v2412_v56 = vpop.permute.xlu1 %806 }
 0x22f   : > { %997 = vperm.xlu1 %1682, %v2409_v43  }
 0x230   : > { %v811_v62 = vpop.permute.xlu1 %810 }
 0x231   : > { %v2424_v51 = vadd.f32 %v811_v62, %v724_v46  ;;  %v2937_v46 = vld [vmem:[#allocation37_spill] sm:$0xff] }
 0x232   : > { %v586_v60 = vmul.f32 %v2937_v46, %v2250_v16 }
 0x233   : > { %1001 = vperm.xlu1 %1682, %v2419_v58  }
 0x234   : > { %v815_v29 = vpop.permute.xlu1 %814  ;;  %v730_v62 = vadd.f32 %v2308_v3, %v586_v60 }
 0x235   : > { %v2433_v55 = vadd.f32 %v815_v29, %v726_v41  ;;  %v2449_v29 = vpop.permute.xlu0 %800 }
 0x236   : > { %2941 = vst [vmem:[#allocation10_spill] sm:$0xff] %v2449_v29 }
 0x237   : > { %1005 = vperm.xlu1 %1682, %v2429_v24  }
 0x238   : > { %v819_v21 = vpop.permute.xlu1 %818 }
 0x239   : > { %v2439_v35 = vadd.f32 %v819_v21, %v728_v45  ;;  %v2451_v44 = vpop.permute.xlu0 %804 }
 0x23b   : > { %2938 = vst [vmem:[#allocation5_spill] sm:$0xff] %v2439_v35 }
 0x23c   : > { %v823_v47 = vpop.permute.xlu1 %822 }
 0x23d   : > { %v2444_v25 = vadd.f32 %v823_v47, %v730_v62  ;;  %v2453_v16 = vpop.permute.xlu0 %808 }
 0x240   : > { %v827_v41 = vpop.permute.xlu1 %826 }
 0x241   : > { %v2447_v37 = vadd.f32 %v827_v41, %v732_v15  ;;  %v2455_v45 = vpop.permute.xlu0 %812 }
 0x243   : > { %2940 = vst [vmem:[#allocation6_spill] sm:$0xff] %v2447_v37 }
 0x245   : > { %v2457_v3 = vpop.permute.xlu0 %816 }
 0x249   : > { %v2459_v21 = vpop.permute.xlu0 %820 }
 0x24a   : > { %2942 = vst [vmem:[#allocation7_spill] sm:$0xff] %v2459_v21 }
 0x24d   : > { %v2461_v14 = vpop.permute.xlu0 %824 }
 0x251   : > { %v2463_v60 = vpop.permute.xlu0 %828 }
 0x252   : > { %2943 = vst [vmem:[#allocation12_spill] sm:$0xff] %v2463_v60 }
 0x27a   : > { %v868_v28 = vpop.xlane.xlu0 %867 }
 0x27b   : > { %v913_v62 = vmul.f32 0.0625, %v868_v28 }
 0x27d   : > { %v1033_v47 = vmul.f32 %v913_v62, %v2012_v23 }
 0x27e   : > { %v871_v0 = vpop.xlane.xlu0 %870 }
 0x27f   : > { %1055 = vperm.xlu0 %1681, %v1033_v47   ;;  %v865_v15 = vpop.xlane.xlu1 %864  ;;  %v914_v37 = vmul.f32 0.0625, %v871_v0 }
 0x280   : > { %v912_v41 = vmul.f32 0.0625, %v865_v15 }
 0x281   : > { %v1034_v9 = vmul.f32 %v914_v37, %v2008_v22 }
 0x282   : > { %v1032_v35 = vmul.f32 %v912_v41, %v2012_v23  ;;  %v877_v38 = vpop.xlane.xlu0 %876 }
 0x283   : > { %v874_v61 = vpop.xlane.xlu1 %873  ;;  %v916_v42 = vmul.f32 0.0625, %v877_v38 }
 0x284   : > { %v915_v21 = vmul.f32 0.0625, %v874_v61  ;;  %1050 = vperm.xlu1 %1682, %v1032_v35  }
 0x285   : > { %v1036_v62 = vmul.f32 %v916_v42, %v2022_v26 }
 0x286   : > { %v1035_v60 = vmul.f32 %v915_v21, %v2008_v22  ;;  %v883_v13 = vpop.xlane.xlu0 %882 }
 0x287   : > { %v880_v28 = vpop.xlane.xlu1 %879  ;;  %v918_v47 = vmul.f32 0.0625, %v883_v13 }
 0x288   : > { %v917_v29 = vmul.f32 0.0625, %v880_v28  ;;  %1060 = vperm.xlu1 %1682, %v1034_v9   ;;  %1065 = vperm.xlu0 %1681, %v1035_v60  }
 0x289   : > { %v1038_v53 = vmul.f32 %v918_v47, %v2026_v27 }
 0x28a   : > { %v1037_v0 = vmul.f32 %v917_v29, %v2022_v26  ;;  %v889_v15 = vpop.xlane.xlu0 %888 }
 0x28b   : > { %v886_v41 = vpop.xlane.xlu1 %885  ;;  %v920_v38 = vmul.f32 0.0625, %v889_v15 }
 0x28c   : > { %v919_v37 = vmul.f32 0.0625, %v886_v41  ;;  %1070 = vperm.xlu1 %1682, %v1036_v62   ;;  %1075 = vperm.xlu0 %1681, %v1037_v0  }
 0x28d   : > { %v1040_v42 = vmul.f32 %v920_v38, %v2036_v30 }
 0x28e   : > { %v1039_v35 = vmul.f32 %v919_v37, %v2026_v27  ;;  %v895_v61 = vpop.xlane.xlu0 %894 }
 0x28f   : > { %v892_v21 = vpop.xlane.xlu1 %891  ;;  %v922_v13 = vmul.f32 0.0625, %v895_v61 }
 0x290   : > { %v921_v28 = vmul.f32 0.0625, %v892_v21  ;;  %1080 = vperm.xlu1 %1682, %v1038_v53   ;;  %1085 = vperm.xlu0 %1681, %v1039_v35   ;;  %v2944_v35 = vld [vmem:[#allocation31_spill] sm:$0xff] }
 0x291   : > { %v1042_v47 = vmul.f32 %v922_v13, %v2040_v31  ;;  %v576_v61 = vmul.f32 %v2944_v35, %v2168_v5 }
 0x292   : > { %v1041_v9 = vmul.f32 %v921_v28, %v2036_v30  ;;  %v901_v29 = vpop.xlane.xlu0 %900  ;;  %v577_v28 = vmul.f32 %v2944_v35, %v2165_v32 }
 0x293   : > { %v898_v60 = vpop.xlane.xlu1 %897  ;;  %v924_v62 = vmul.f32 0.0625, %v901_v29  ;;  %v720_v29 = vadd.f32 %v2288_v17, %v576_v61 }
 0x294   : > { %v923_v41 = vmul.f32 0.0625, %v898_v60  ;;  %1090 = vperm.xlu1 %1682, %v1040_v42   ;;  %1095 = vperm.xlu0 %1681, %v1041_v9   ;;  %v721_v9 = vadd.f32 %v2286_v52, %v577_v28 }
 0x295   : > { %v1044_v38 = vmul.f32 %v924_v62, %v2050_v34  ;;  %v848_v32 = vadd.f32 %v2405_v54, %v720_v29  ;;  %v2946_v29 = vld [vmem:[#allocation32_spill] sm:$0xff] }
 0x296   : > { %v1043_v0 = vmul.f32 %v923_v41, %v2040_v31  ;;  %v907_v15 = vpop.xlane.xlu0 %906 }
 0x297   : > { %v904_v37 = vpop.xlane.xlu1 %903  ;;  %v926_v53 = vmul.f32 0.0625, %v907_v15 }
 0x298   : > { %v925_v21 = vmul.f32 0.0625, %v904_v37  ;;  %1100 = vperm.xlu1 %1682, %v1042_v47   ;;  %1105 = vperm.xlu0 %1681, %v1043_v0   ;;  %v2945_v47 = vld [vmem:[#allocation33_spill] sm:$0xff]  ;;  %v849_v0 = vadd.f32 %v2451_v44, %v721_v9 }
 0x299   : > { %v1046_v60 = vmul.f32 %v926_v53, %v2905_v7  ;;  %v579_v62 = vmul.f32 %v2945_v47, %v2179_v1  ;;  %v578_v5 = vmul.f32 %v2945_v47, %v2182_v2  ;;  %v581_v1 = vmul.f32 %v2933_v57, %v2195_v19 }
 0x29a   : > { %v1045_v42 = vmul.f32 %v925_v21, %v2050_v34  ;;  %v583_v19 = vmul.f32 %v2935_v50, %v2211_v20 }
 0x29b   : > { %v910_v13 = vpop.xlane.xlu1 %909  ;;  %v723_v52 = vadd.f32 %v2290_v18, %v579_v62  ;;  %v722_v37 = vadd.f32 %v2292_v36, %v578_v5  ;;  %v725_v53 = vadd.f32 %v2294_v40, %v581_v1  ;;  %v1791_v36 = vmov 4  }
 0x29c   : > { %v927_v41 = vmul.f32 0.0625, %v910_v13  ;;  %1110 = vperm.xlu1 %1682, %v1044_v38   ;;  %1115 = vperm.xlu0 %1681, %v1045_v42  }
 0x29d   : > { %v850_v2 = vadd.f32 %v2412_v56, %v722_v37  ;;  %v851_v54 = vadd.f32 %v2453_v16, %v723_v52  ;;  %v853_v56 = vadd.f32 %v2455_v45, %v725_v53  ;;  %v727_v16 = vadd.f32 %v2298_v6, %v583_v19  ;;  %v2948_v52 = vld [vmem:[#allocation10_spill] sm:$0xff]  ;;  %v2951_v53 = vld [vmem:[#allocation40_spill] sm:$0xff] }
 0x29e   : > { %v1047_v15 = vmul.f32 %v927_v41, %v2905_v7  ;;  %v587_v6 = vmul.f32 %v2937_v46, %v2246_v11  ;;  %v575_v41 = vmul.f32 %v2946_v29, %v2151_v8 }
 0x29f   : > { %v982_v17 = vpop.permute.xlu1 %981 }
 0x2a0   : > { %v2495_v21 = vmul.f32 %v982_v17, %v848_v32  ;;  %v2497_v38 = vmul.f32 %v982_v17, %v849_v0  ;;  %1120 = vperm.xlu1 %1682, %v1046_v60   ;;  %1125 = vperm.xlu0 %1681, %v1047_v15   ;;  %v574_v60 = vmul.f32 %v2946_v29, %v2154_v10  ;;  %v2947_v0 = vld [vmem:[#allocation8_spill] sm:$0xff] }
 0x2a1   : > { %v719_v5 = vadd.f32 %v2282_v12, %v575_v41 }
 0x2a2   : > { %v718_v32 = vadd.f32 %v2284_v33, %v574_v60  ;;  %v2955_v60 = vld [vmem:[#allocation7_spill] sm:$0xff] }
 0x2a3   : > { %v986_v44 = vpop.permute.xlu1 %985  ;;  %v847_v17 = vadd.f32 %v2948_v52, %v719_v5  ;;  %v2956_v5 = vld [vmem:[#allocation12_spill] sm:$0xff] }
 0x2a4   : > { %v2504_v18 = vmul.f32 %v986_v44, %v850_v2  ;;  %v2506_v35 = vmul.f32 %v986_v44, %v851_v54  ;;  %1683 = vset.pattern.permute.xlu1 %v1791_v36  ;;  %1684 = vset.pattern.permute.xlu0 %v1791_v36  ;;  %v846_v15 = vadd.f32 %v2947_v0, %v718_v32  ;;  %v2949_v2 = vld [vmem:[#allocation39_spill] sm:$0xff]  ;;  %v2950_v54 = vld [vmem:[#allocation36_spill] sm:$0xff]  ;;  %v2952_v36 = vld [vmem:[#allocation38_spill] sm:$0xff] }
 0x2a5   : > { %1145 = vperm.xlu1 %1683, %v2012_v23   ;;  %1149 = vperm.xlu0 %1684, %v2008_v22   ;;  %v855_v23 = vadd.f32 %v2457_v3, %v727_v16  ;;  %v585_v44 = vmul.f32 %v2950_v54, %v2949_v2  ;;  %v589_v12 = vmul.f32 %v2952_v36, %v2951_v53  ;;  %v2957_v0 = vld [vmem:[#allocation5_spill] sm:$0xff]  ;;  %v2958_v36 = vld [vmem:[#allocation6_spill] sm:$0xff] }
 0x2a7   : > { %v990_v57 = vpop.permute.xlu1 %989 }
 0x2a8   : > { %v2515_v40 = vmul.f32 %v990_v57, %v2424_v51  ;;  %v2517_v61 = vmul.f32 %v990_v57, %v853_v56  ;;  %v2953_v57 = vld [vmem:[#allocation30_spill] sm:$0xff] }
 0x2a9   : > { %1153 = vperm.xlu1 %1683, %v2022_v26   ;;  %1161 = vperm.xlu0 %1684, %v2036_v30   ;;  %v731_v26 = vadd.f32 %v2306_v4, %v587_v6  ;;  %v1792_v30 = vmov 5   ;;  %v729_v16 = vadd.f32 %v2953_v57, %v585_v44 }
 0x2ab   : > { %v994_v22 = vpop.permute.xlu1 %993  ;;  %v859_v51 = vadd.f32 %v2461_v14, %v731_v26  ;;  %v857_v41 = vadd.f32 %v2955_v60, %v729_v16 }
 0x2ac   : > { %v2523_v28 = vmul.f32 %v994_v22, %v2433_v55  ;;  %v2525_v20 = vmul.f32 %v994_v22, %v855_v23  ;;  %v2954_v23 = vld [vmem:[#allocation41_spill] sm:$0xff] }
 0x2ad   : > { %1157 = vperm.xlu1 %1683, %v2026_v27   ;;  %1169 = vperm.xlu0 %1684, %v2050_v34   ;;  %v733_v22 = vadd.f32 %v2954_v23, %v589_v12 }
 0x2af   : > { %v2531_v50 = vpop.permute.xlu1 %997  ;;  %v861_v32 = vadd.f32 %v2956_v5, %v733_v22  ;;  %v1691_v22 = vld [vmem:[%s1880_s30 + $0x50] sm:$0xff] }
 0x2b1   : > { %1165 = vperm.xlu1 %1683, %v2040_v31   ;;  %1685 = vset.pattern.permute.xlu0 %v1792_v30  ;;  %v978_v31 = vpop.permute.xlu0 %977 }
 0x2b2   : > { %1193 = vperm.xlu0 %1685, %v2381_v59   ;;  %v1008_v8 = vmul.f32 %v978_v31, %v846_v15  ;;  %v1009_v1 = vmul.f32 %v978_v31, %v847_v17  ;;  %v1688_v31 = vld [vmem:[%s1880_s30 + $0x8] sm:$0xff]  ;;  %v1018_v15 = vmul.f32 %v2531_v50, %v2957_v0  ;;  %v1696_v0 = vld [vmem:[%s1880_s30 + $0x78] sm:$0xff] }
 0x2b3   : > { %v1002_v55 = vpop.permute.xlu1 %1001 }
 0x2b4   : > { %v2538_v27 = vmul.f32 %v1002_v55, %v2444_v25  ;;  %v2540_v34 = vmul.f32 %v1002_v55, %v859_v51  ;;  %v1687_v51 = vld [vmem:[%s1880_s30] sm:$0xff] }
 0x2b5   : > { %1173 = vperm.xlu1 %1683, %v2905_v7  }
 0x2b6   : > { %1205 = vperm.xlu0 %1685, %v2395_v63  }
 0x2b7   : > { %v2550_v11 = vpop.permute.xlu1 %1005 }
 0x2b8   : > { %v1022_v12 = vmul.f32 %v2550_v11, %v2958_v36 }
 0x2b9   : > { %1686 = vset.pattern.permute.xlu1 %v1792_v30 }
 0x2ba   : > { %1197 = vperm.xlu1 %1686, %v2384_v48   ;;  %1213 = vperm.xlu0 %1685, %v2409_v43  }
 0x2be   : > { %1201 = vperm.xlu1 %1686, %v2390_v49   ;;  %1221 = vperm.xlu0 %1685, %v2429_v24  }
 0x2c2   : > { %1209 = vperm.xlu1 %1686, %v2402_v39  }
 0x2c6   : > { %1217 = vperm.xlu1 %1686, %v2419_v58  }
 0x2fe   : > { %v1056_v4 = vpop.permute.xlu0 %1055 }
 0x2ff   : > { %v1129_v19 = vsub.f32 %v1009_v1, %v1056_v4 }
 0x303   : > { %v1051_v7 = vpop.permute.xlu1 %1050 }
 0x304   : > { %v1128_v33 = vsub.f32 %v1008_v8, %v1051_v7  ;;  %v1019_v8 = vmul.f32 %v2531_v50, %v857_v41 }
 0x307   : > { %v2552_v25 = vpop.permute.xlu0 %1065  ;;  %v2554_v59 = vpop.permute.xlu1 %1060 }
 0x308   : > { %v1131_v1 = vsub.f32 %v2497_v38, %v2552_v25  ;;  %v1130_v38 = vsub.f32 %v2495_v21, %v2554_v59 }
 0x30b   : > { %v2556_v48 = vpop.permute.xlu0 %1075  ;;  %v2558_v63 = vpop.permute.xlu1 %1070 }
 0x30f   : > { %v1086_v49 = vpop.permute.xlu0 %1085  ;;  %v1081_v43 = vpop.permute.xlu1 %1080 }
 0x310   : > { %v1135_v4 = vsub.f32 %v2517_v61, %v1086_v49  ;;  %v1134_v7 = vsub.f32 %v2515_v40, %v1081_v43  ;;  %v1689_v61 = vld [vmem:[%s1880_s30 + $0x30] sm:$0xff]  ;;  %v1690_v40 = vld [vmem:[%s1880_s30 + $0x38] sm:$0xff] }
 0x313   : > { %v2560_v24 = vpop.permute.xlu0 %1095  ;;  %v2562_v39 = vpop.permute.xlu1 %1090 }
 0x317   : > { %v2564_v58 = vpop.permute.xlu0 %1105  ;;  %v2566_v46 = vpop.permute.xlu1 %1100 }
 0x318   : > { %v1139_v25 = vsub.f32 %v1019_v8, %v2564_v58  ;;  %v1698_v8 = vld [vmem:[%s1880_s30 + $0x28] sm:$0xff] }
 0x31b   : > { %v2568_v45 = vpop.permute.xlu0 %1115  ;;  %v2570_v3 = vpop.permute.xlu1 %1110 }
 0x31c   : > { %v1140_v36 = vsub.f32 %v2538_v27, %v2570_v3 }
 0x31f   : > { %v2572_v14 = vpop.permute.xlu0 %1125  ;;  %v2574_v42 = vpop.permute.xlu1 %1120 }
 0x324   : > { %v1150_v13 = vpop.permute.xlu0 %1149  ;;  %v1146_v9 = vpop.permute.xlu1 %1145 }
 0x325   : > { %v1176_v26 = vmul.f32 %v1146_v9, %v1128_v33  ;;  %v1177_v30 = vmul.f32 %v1146_v9, %v1129_v19  ;;  %v1023_v19 = vmul.f32 %v2550_v11, %v861_v32  ;;  %v1178_v21 = vmul.f32 %v1150_v13, %v1130_v38 }
 0x326   : > { %v1179_v59 = vmul.f32 %v1150_v13, %v1131_v1  ;;  %v1133_v13 = vsub.f32 %v2506_v35, %v2556_v48  ;;  %v1142_v35 = vsub.f32 %v1022_v12, %v2574_v42  ;;  %v1136_v42 = vsub.f32 %v2523_v28, %v2562_v39 }
 0x327   : > { %v1143_v60 = vsub.f32 %v1023_v19, %v2572_v14  ;;  %v1695_v14 = vld [vmem:[%s1880_s30 + $0x70] sm:$0xff] }
 0x328   : > { %v2580_v47 = vpop.permute.xlu0 %1161  ;;  %v2582_v62 = vpop.permute.xlu1 %1153 }
 0x32c   : > { %v2588_v37 = vpop.permute.xlu0 %1169  ;;  %v1158_v10 = vpop.permute.xlu1 %1157 }
 0x32d   : > { %v1182_v2 = vmul.f32 %v1158_v10, %v1134_v7  ;;  %v1183_v54 = vmul.f32 %v1158_v10, %v1135_v4  ;;  %v1138_v10 = vsub.f32 %v1018_v15, %v2566_v46  ;;  %v1188_v27 = vmul.f32 %v2588_v37, %v1140_v36 }
 0x330   : > { %v1166_v56 = vpop.permute.xlu1 %1165 }
 0x331   : > { %v1194_v6 = vpop.permute.xlu0 %1193  ;;  %v1186_v58 = vmul.f32 %v1166_v56, %v1138_v10  ;;  %v1187_v16 = vmul.f32 %v1166_v56, %v1139_v25  ;;  %v1132_v56 = vsub.f32 %v2504_v18, %v2558_v63  ;;  %v1141_v10 = vsub.f32 %v2540_v34, %v2568_v45  ;;  %v1701_v45 = vld [vmem:[%s1880_s30 + $0x60] sm:$0xff] }
 0x332   : > { %v1224_v55 = vmul.f32 %v1687_v51, %v1194_v6  ;;  %v1225_v29 = vmul.f32 %v1688_v31, %v1194_v6  ;;  %v1693_v51 = vld [vmem:[%s1880_s30 + $0x10] sm:$0xff]  ;;  %v1694_v31 = vld [vmem:[%s1880_s30 + $0x18] sm:$0xff] }
 0x333   : > { %v1180_v18 = vmul.f32 %v2582_v62, %v1132_v56  ;;  %v1189_v34 = vmul.f32 %v2588_v37, %v1141_v10 }
 0x334   : > { %v2607_v52 = vpop.permute.xlu1 %1173  ;;  %v1241_v9 = vadd.f32 %v1225_v29, %v1177_v30  ;;  %v1240_v17 = vadd.f32 %v1224_v55, %v1176_v26  ;;  %v1692_v26 = vld [vmem:[%s1880_s30 + $0x58] sm:$0xff]  ;;  %v1137_v29 = vsub.f32 %v2525_v20, %v2560_v24  ;;  %v1181_v20 = vmul.f32 %v2582_v62, %v1133_v13 }
 0x335   : > { %v1206_v44 = vpop.permute.xlu0 %1205  ;;  %v1191_v48 = vmul.f32 %v2607_v52, %v1143_v60  ;;  %v1190_v62 = vmul.f32 %v2607_v52, %v1142_v35  ;;  %v1699_v52 = vld [vmem:[%s1880_s30 + $0x40] sm:$0xff] }
 0x336   : > { %v1230_v49 = vmul.f32 %v1689_v61, %v1206_v44  ;;  %v1231_v43 = vmul.f32 %v1690_v40, %v1206_v44  ;;  %v1288_v53 = vsel %vm862_vm2, %v1241_v9, 0.0  ;;  %1257 = vst.msk [vmem:[%s2615_s21 + $0x8] sm:$0xff] %vm862_vm2, %v1241_v9  ;;  %v1285_v50 = vsel %vm862_vm2, %v1240_v17, 0.0  ;;  %1256 = vst.msk [vmem:[%s2615_s21] sm:$0xff] %vm862_vm2, %v1240_v17  ;;  %v1697_v9 = vld [vmem:[%s1880_s30 + $0x20] sm:$0xff] }
 0x337   : > { %1289 = vadd.xlane.f32.xlu0 %v1288_v53  ;;  %1286 = vadd.xlane.f32.xlu1 %v1285_v50  ;;  %v1184_v40 = vmul.f32 %v2580_v47, %v1136_v42  ;;  %v1185_v28 = vmul.f32 %v2580_v47, %v1137_v29  ;;  %v1700_v50 = vld [vmem:[%s1880_s30 + $0x48] sm:$0xff] }
 0x338   : > { %v2629_v33 = vadd.f32 %v1231_v43, %v1183_v54  ;;  %v2631_v57 = vadd.f32 %v1230_v49, %v1182_v2 }
 0x339   : > { %v1214_v46 = vpop.permute.xlu0 %1213  ;;  %v1198_v23 = vpop.permute.xlu1 %1197 }
 0x33a   : > { %v1234_v6 = vmul.f32 %v1691_v22, %v1214_v46  ;;  %v1235_v30 = vmul.f32 %v1692_v26, %v1214_v46  ;;  %v1226_v55 = vmul.f32 %v1693_v51, %v1198_v23  ;;  %v1227_v11 = vmul.f32 %v1694_v31, %v1198_v23  ;;  %1263 = vst.msk [vmem:[%s2615_s21 + $0x38] sm:$0xff] %vm862_vm2, %v2629_v33 }
 0x33b   : > { %1262 = vst.msk [vmem:[%s2615_s21 + $0x30] sm:$0xff] %vm862_vm2, %v2631_v57  ;;  %v1306_v46 = vsel %vm862_vm2, %v2629_v33, 0.0  ;;  %v1303_v23 = vsel %vm862_vm2, %v2631_v57, 0.0 }
 0x33c   : > { %v1243_v41 = vadd.f32 %v1227_v11, %v1179_v59  ;;  %v1242_v4 = vadd.f32 %v1226_v55, %v1178_v21  ;;  %v2650_v7 = vadd.f32 %v1235_v30, %v1187_v16  ;;  %v2652_v5 = vadd.f32 %v1234_v6, %v1186_v58  ;;  %v1702_v58 = vld [vmem:[%s1880_s30 + $0x68] sm:$0xff] }
 0x33d   : > { %v1222_v63 = vpop.permute.xlu0 %1221  ;;  %v1202_v24 = vpop.permute.xlu1 %1201  ;;  %v1793_v59 = vmov 0.0  }
 0x33e   : > { %v1238_v32 = vmul.f32 %v1695_v14, %v1222_v63  ;;  %v1239_v15 = vmul.f32 %v1696_v0, %v1222_v63  ;;  %v1228_v17 = vmul.f32 %v1697_v9, %v1202_v24  ;;  %v1229_v1 = vmul.f32 %v1698_v8, %v1202_v24  ;;  %1259 = vst.msk [vmem:[%s2615_s21 + $0x18] sm:$0xff] %vm862_vm2, %v1243_v41 }
 0x33f   : > { %1258 = vst.msk [vmem:[%s2615_s21 + $0x10] sm:$0xff] %vm862_vm2, %v1242_v4  ;;  %1267 = vst.msk [vmem:[%s2615_s21 + $0x58] sm:$0xff] %vm862_vm2, %v2650_v7  ;;  %v1294_v2 = vsel %vm862_vm2, %v1243_v41, 0.0  ;;  %v1291_v54 = vsel %vm862_vm2, %v1242_v4, 0.0  ;;  %v1318_v33 = vsel %vm862_vm2, %v2650_v7, 0.0  ;;  %v1315_v57 = vsel %vm862_vm2, %v2652_v5, 0.0 }
 0x340   : > { %1266 = vst.msk [vmem:[%s2615_s21 + $0x50] sm:$0xff] %vm862_vm2, %v2652_v5  ;;  %1295 = vadd.xlane.f32.xlu1 %v1294_v2  ;;  %1292 = vadd.xlane.f32.xlu0 %v1291_v54  ;;  %v1245_v44 = vadd.f32 %v1229_v1, %v1181_v20  ;;  %v1244_v61 = vadd.f32 %v1228_v17, %v1180_v18 }
 0x341   : > { %v1255_v49 = vadd.f32 %v1239_v15, %v1191_v48  ;;  %v1210_v39 = vpop.permute.xlu1 %1209  ;;  %v1254_v43 = vadd.f32 %v1238_v32, %v1190_v62  ;;  %1277 = vst.msk [vmem:[%s2684_s28] sm:$0x1] %vm1276_vm3, %v1793_v59  ;;  %1278 = vst.msk [vmem:[%s2684_s28 + $0x1] sm:$0x1] %vm1276_vm3, %v1793_v59 }
 0x342   : > { %v1232_v53 = vmul.f32 %v1699_v52, %v1210_v39  ;;  %v1233_v38 = vmul.f32 %v1700_v50, %v1210_v39  ;;  %v1300_v25 = vsel %vm862_vm2, %v1245_v44, 0.0  ;;  %1261 = vst.msk [vmem:[%s2615_s21 + $0x28] sm:$0xff] %vm862_vm2, %v1245_v44  ;;  %v1297_v47 = vsel %vm862_vm2, %v1244_v61, 0.0  ;;  %1260 = vst.msk [vmem:[%s2615_s21 + $0x20] sm:$0xff] %vm862_vm2, %v1244_v61 }
 0x343   : > { %1271 = vst.msk [vmem:[%s2615_s21 + $0x78] sm:$0xff] %vm862_vm2, %v1255_v49  ;;  %1270 = vst.msk [vmem:[%s2615_s21 + $0x70] sm:$0xff] %vm862_vm2, %v1254_v43  ;;  %v1330_v55 = vsel %vm862_vm2, %v1255_v49, 0.0  ;;  %v1327_v31 = vsel %vm862_vm2, %v1254_v43, 0.0 }
 0x344   : > { %1301 = vadd.xlane.f32.xlu1 %v1300_v25  ;;  %1298 = vadd.xlane.f32.xlu0 %v1297_v47  ;;  %v1249_v12 = vadd.f32 %v1233_v38, %v1185_v28  ;;  %v1248_v19 = vadd.f32 %v1232_v53, %v1184_v40  ;;  %1279 = vst.msk [vmem:[%s2684_s28 + $0x2] sm:$0x1] %vm1276_vm3, %v1793_v59  ;;  %1280 = vst.msk [vmem:[%s2684_s28 + $0x3] sm:$0x1] %vm1276_vm3, %v1793_v59 }
 0x345   : > { %v1218_v21 = vpop.permute.xlu1 %1217  ;;  %1281 = vst.msk [vmem:[%s2684_s28 + $0x4] sm:$0x1] %vm1276_vm3, %v1793_v59  ;;  %1282 = vst.msk [vmem:[%s2684_s28 + $0x5] sm:$0x1] %vm1276_vm3, %v1793_v59 }
 0x346   : > { %1283 = vst.msk [vmem:[%s2684_s28 + $0x6] sm:$0x1] %vm1276_vm3, %v1793_v59  ;;  %1284 = vst.msk [vmem:[%s2684_s28 + $0x7] sm:$0x1] %vm1276_vm3, %v1793_v59  ;;  %v1236_v3 = vmul.f32 %v1701_v45, %v1218_v21  ;;  %v1237_v16 = vmul.f32 %v1702_v58, %v1218_v21  ;;  %v1312_v37 = vsel %vm862_vm2, %v1249_v12, 0.0  ;;  %v1309_v26 = vsel %vm862_vm2, %v1248_v19, 0.0 }
 0x347   : > { %1265 = vst.msk [vmem:[%s2615_s21 + $0x48] sm:$0xff] %vm862_vm2, %v1249_v12  ;;  %1264 = vst.msk [vmem:[%s2615_s21 + $0x40] sm:$0xff] %vm862_vm2, %v1248_v19 }
 0x348   : > { %1307 = vadd.xlane.f32.xlu1 %v1306_v46  ;;  %1304 = vadd.xlane.f32.xlu0 %v1303_v23  ;;  %v1253_v22 = vadd.f32 %v1237_v16, %v1189_v34  ;;  %v1252_v6 = vadd.f32 %v1236_v3, %v1188_v27 }
 0x34a   : > { %1269 = vst.msk [vmem:[%s2615_s21 + $0x68] sm:$0xff] %vm862_vm2, %v1253_v22  ;;  %1268 = vst.msk [vmem:[%s2615_s21 + $0x60] sm:$0xff] %vm862_vm2, %v1252_v6  ;;  %v1324_v30 = vsel %vm862_vm2, %v1253_v22, 0.0  ;;  %v1321_v51 = vsel %vm862_vm2, %v1252_v6, 0.0 }
 0x34c   : > { %1313 = vadd.xlane.f32.xlu1 %v1312_v37  ;;  %1310 = vadd.xlane.f32.xlu0 %v1309_v26 }
 0x350   : > { %1319 = vadd.xlane.f32.xlu1 %v1318_v33  ;;  %1316 = vadd.xlane.f32.xlu0 %v1315_v57 }
 0x354   : > { %1325 = vadd.xlane.f32.xlu1 %v1324_v30  ;;  %1322 = vadd.xlane.f32.xlu0 %v1321_v51 }
 0x358   : > { %1331 = vadd.xlane.f32.xlu1 %v1330_v55  ;;  %1328 = vadd.xlane.f32.xlu0 %v1327_v31 }
 0x359   : > { %1716 = shalt.err (!%p1713_p5)
}
 0x35a   : > { %s1717_s10 = scalar_lea.hbm %s2749_s5, 2048  ;;  %s1721_s19 = scalar_lea.hbm %s2827_s2, 4096 }
 0x35b   : > { %p1718_p6 = scmp.ne.s32.totalorder %s2749_s5, %s1717_s10  ;;  %p1722_p10 = scmp.lt.u32.totalorder %s2749_s5, %s2827_s2 }
 0x35c   : > { %p1723_p11 = scmp.lt.u32.totalorder %s1721_s19, %s1717_s10  ;;  %p1725_p13 = scmp.lt.u32.totalorder %s1717_s10, %s2749_s5 }
 0x35d   : > { %p1719_p7 = pnand %p1718_p6, %p1857_p4 }
 0x35e   : > { %p1724_p12 = por %p1723_p11, %p1722_p10 }
 0x35f   : > { %p1720_p9 = pneg %p1719_p7 }
 0x360   : > { %p1726_p0 = por %p1725_p13, %p1724_p12 }
 0x362   : > { %p1727_p1 = pnand %p1726_p0, %p1720_p9 }
 0x364   : > { %1730 = shalt.err (!%p1727_p1)
}
 0x365   : > { %s1795_s27 = smov 128   ;;  %s1796_s26 = smov 8   ;;  %v1389_v14 = vld [vmem:[%s2684_s28] sm:$0x1]  ;;  %v1390_v50 = vld [vmem:[%s2684_s28 + $0x1] sm:$0x1] }
 0x366   : > { %1607 = dma.vmem_to_hbm [thread:$0]  (%p1857_p4), %s2751_s29, 2048, %s2749_s5, %s2755_s6, %s1795_s27, %s1795_s27, %s1796_s26  }
 0x367   : > { %v1391_v34 = vld [vmem:[%s2684_s28 + $0x2] sm:$0x1]  ;;  %v1392_v57 = vld [vmem:[%s2684_s28 + $0x3] sm:$0x1] }
 0x3c4   : > { %v1290_v11 = vpop.xlane.xlu0 %1289  ;;  %v1287_v13 = vpop.xlane.xlu1 %1286 }
 0x3c5   : > { %v1333_v56 = vadd.f32 %v1290_v11, %v1287_v13 }
 0x3c7   : > { %v1334_v29 = vrot.slane %v1333_v56, 4 }
 0x3c9   : > { %v1335_v60 = vadd.f32 %v1334_v29, %v1333_v56 }
 0x3cb   : > { %v1336_v41 = vrot.slane %v1335_v60, 2 }
 0x3cd   : > { %v1337_v4 = vadd.f32 %v1336_v41, %v1335_v60  ;;  %v1293_v7 = vpop.xlane.xlu0 %1292  ;;  %v1296_v5 = vpop.xlane.xlu1 %1295 }
 0x3ce   : > { %v1340_v35 = vadd.f32 %v1296_v5, %v1293_v7  ;;  %v1393_v7 = vld [vmem:[%s2684_s28 + $0x4] sm:$0x1] }
 0x3cf   : > { %v1338_v18 = vrot.slane %v1337_v4, 1 }
 0x3d0   : > { %v1341_v20 = vrot.slane %v1340_v35, 4 }
 0x3d1   : > { %v1339_v48 = vadd.f32 %v1338_v18, %v1337_v4  ;;  %v1299_v63 = vpop.xlane.xlu0 %1298  ;;  %v1302_v24 = vpop.xlane.xlu1 %1301 }
 0x3d2   : > { %v1342_v32 = vadd.f32 %v1341_v20, %v1340_v35  ;;  %v1347_v0 = vadd.f32 %v1302_v24, %v1299_v63 }
 0x3d3   : > { %v1397_v15 = vmul.f32 0.00390625, %v1339_v48 }
 0x3d4   : > { %v1343_v9 = vrot.slane %v1342_v32, 2  ;;  %v1348_v17 = vrot.slane %v1347_v0, 4 }
 0x3d5   : > { %v1405_v8 = vadd.f32 %v1397_v15, %v1389_v14  ;;  %v1305_v1 = vpop.xlane.xlu0 %1304  ;;  %v1308_v42 = vpop.xlane.xlu1 %1307 }
 0x3d6   : > { %v1344_v62 = vadd.f32 %v1343_v9, %v1342_v32  ;;  %v1349_v2 = vadd.f32 %v1348_v17, %v1347_v0  ;;  %v1354_v54 = vadd.f32 %v1308_v42, %v1305_v1  ;;  %v1394_v0 = vld [vmem:[%s2684_s28 + $0x5] sm:$0x1] }
 0x3d7   : > { %1414 = vst.msk [vmem:[%s2684_s28] sm:$0x1] %vm1276_vm3, %v1405_v8 }
 0x3d8   : > { %v1345_v44 = vrot.slane %v1344_v62, 1  ;;  %v1350_v61 = vrot.slane %v1349_v2, 2  ;;  %v1355_v49 = vrot.slane %v1354_v54, 4 }
 0x3d9   : > { %v1311_v40 = vpop.xlane.xlu0 %1310  ;;  %v1314_v28 = vpop.xlane.xlu1 %1313 }
 0x3da   : > { %v1346_v39 = vadd.f32 %v1345_v44, %v1344_v62  ;;  %v1351_v43 = vadd.f32 %v1350_v61, %v1349_v2  ;;  %v1356_v52 = vadd.f32 %v1355_v49, %v1354_v54  ;;  %v1361_v53 = vadd.f32 %v1314_v28, %v1311_v40  ;;  %v1395_v62 = vld [vmem:[%s2684_s28 + $0x6] sm:$0x1]  ;;  %v1396_v49 = vld [vmem:[%s2684_s28 + $0x7] sm:$0x1] }
 0x3dc   : > { %v1398_v38 = vmul.f32 0.00390625, %v1346_v39  ;;  %v1352_v25 = vrot.slane %v1351_v43, 1  ;;  %v1357_v47 = vrot.slane %v1356_v52, 2  ;;  %v1362_v10 = vrot.slane %v1361_v53, 4 }
 0x3dd   : > { %v1317_v36 = vpop.xlane.xlu0 %1316  ;;  %v1320_v12 = vpop.xlane.xlu1 %1319 }
 0x3de   : > { %v1406_v19 = vadd.f32 %v1398_v38, %v1390_v50  ;;  %v1353_v21 = vadd.f32 %v1352_v25, %v1351_v43  ;;  %v1358_v59 = vadd.f32 %v1357_v47, %v1356_v52  ;;  %v1363_v27 = vadd.f32 %v1362_v10, %v1361_v53 }
 0x3df   : > { %v1368_v45 = vadd.f32 %v1320_v12, %v1317_v36 }
 0x3e0   : > { %1415 = vst.msk [vmem:[%s2684_s28 + $0x1] sm:$0x1] %vm1276_vm3, %v1406_v19  ;;  %v1399_v3 = vmul.f32 0.00390625, %v1353_v21  ;;  %v1359_v58 = vrot.slane %v1358_v59, 1  ;;  %v1364_v16 = vrot.slane %v1363_v27, 2 }
 0x3e1   : > { %v1369_v46 = vrot.slane %v1368_v45, 4  ;;  %v1323_v23 = vpop.xlane.xlu0 %1322  ;;  %v1326_v22 = vpop.xlane.xlu1 %1325 }
 0x3e2   : > { %v1407_v6 = vadd.f32 %v1399_v3, %v1391_v34  ;;  %v1360_v37 = vadd.f32 %v1359_v58, %v1358_v59  ;;  %v1365_v26 = vadd.f32 %v1364_v16, %v1363_v27  ;;  %v1375_v33 = vadd.f32 %v1326_v22, %v1323_v23 }
 0x3e3   : > { %v1370_v30 = vadd.f32 %v1369_v46, %v1368_v45 }
 0x3e4   : > { %1416 = vst.msk [vmem:[%s2684_s28 + $0x2] sm:$0x1] %vm1276_vm3, %v1407_v6  ;;  %v1400_v51 = vmul.f32 0.00390625, %v1360_v37  ;;  %v1366_v55 = vrot.slane %v1365_v26, 1  ;;  %v1376_v31 = vrot.slane %v1375_v33, 4 }
 0x3e5   : > { %v1371_v11 = vrot.slane %v1370_v30, 2  ;;  %v1329_v13 = vpop.xlane.xlu0 %1328  ;;  %v1332_v56 = vpop.xlane.xlu1 %1331 }
 0x3e6   : > { %v1408_v29 = vadd.f32 %v1400_v51, %v1392_v57  ;;  %v1367_v60 = vadd.f32 %v1366_v55, %v1365_v26  ;;  %v1377_v41 = vadd.f32 %v1376_v31, %v1375_v33  ;;  %v1382_v4 = vadd.f32 %v1332_v56, %v1329_v13 }
 0x3e7   : > { %v1372_v5 = vadd.f32 %v1371_v11, %v1370_v30 }
 0x3e8   : > { %1417 = vst.msk [vmem:[%s2684_s28 + $0x3] sm:$0x1] %vm1276_vm3, %v1408_v29  ;;  %v1401_v35 = vmul.f32 0.00390625, %v1367_v60  ;;  %v1378_v18 = vrot.slane %v1377_v41, 2  ;;  %v1383_v20 = vrot.slane %v1382_v4, 4 }
 0x3e9   : > { %v1373_v48 = vrot.slane %v1372_v5, 1 }
 0x3ea   : > { %v1409_v63 = vadd.f32 %v1401_v35, %v1393_v7  ;;  %v1379_v24 = vadd.f32 %v1378_v18, %v1377_v41  ;;  %v1384_v14 = vadd.f32 %v1383_v20, %v1382_v4 }
 0x3eb   : > { %v1374_v32 = vadd.f32 %v1373_v48, %v1372_v5 }
 0x3ec   : > { %1418 = vst.msk [vmem:[%s2684_s28 + $0x4] sm:$0x1] %vm1276_vm3, %v1409_v63  ;;  %v1380_v15 = vrot.slane %v1379_v24, 1  ;;  %v1385_v9 = vrot.slane %v1384_v14, 2 }
 0x3ed   : > { %v1402_v17 = vmul.f32 0.00390625, %v1374_v32 }
 0x3ee   : > { %v1381_v8 = vadd.f32 %v1380_v15, %v1379_v24  ;;  %v1386_v1 = vadd.f32 %v1385_v9, %v1384_v14 }
 0x3ef   : > { %v1410_v42 = vadd.f32 %v1402_v17, %v1394_v0 }
 0x3f0   : > { %v1403_v2 = vmul.f32 0.00390625, %v1381_v8  ;;  %v1387_v54 = vrot.slane %v1386_v1, 1 }
 0x3f1   : > { %1419 = vst.msk [vmem:[%s2684_s28 + $0x5] sm:$0x1] %vm1276_vm3, %v1410_v42 }
 0x3f2   : > { %v1411_v44 = vadd.f32 %v1403_v2, %v1395_v62  ;;  %v1388_v61 = vadd.f32 %v1387_v54, %v1386_v1 }
 0x3f4   : > { %1420 = vst.msk [vmem:[%s2684_s28 + $0x6] sm:$0x1] %vm1276_vm3, %v1411_v44  ;;  %v1404_v40 = vmul.f32 0.00390625, %v1388_v61 }
 0x3f6   : > { %v1412_v28 = vadd.f32 %v1404_v40, %v1396_v49 }
 0x3f8   : > { %1421 = vst.msk [vmem:[%s2684_s28 + $0x7] sm:$0x1] %vm1276_vm3, %v1412_v28 }
 0x3f9 PF: > { %p1613_p4 = scmp.ge.s32.totalorder %s1781_s17, 2  ;;  %s1468_s22 = sand.u32 1, %s1761_s12  }
 0x3fa   : > { %s1469_s29 = scalar_lea.sflag [#allocation3], %s1468_s22 }
 0x3fb   : > { %p1610_p2 = pnand %p1613_p4, %p1864_p8 }
 0x3fd   : > { %1756 = dma.done.wait (!%p1610_p2), %s1469_s29, 2048  }
 0x3fe   : > { %1758 = vsyncadd (!%p1610_p2), %s1469_s29, 4294965248  ;;  %s17_s17 = sadd.s32 1, %s1781_s17   ;;  %s2959_s12 = smov %s1765_s13 }
 0x3ff   : > { %p14_p3 = scmp.ge.s32.totalorder %s17_s17, 4   ;;  %s2960_s13 = smov %s1769_s14 }
 0x400   : > { %s2961_s14 = smov %s1870_s25  ;;  %s2962_s15 = smov %s1777_s16 }
 0x401   : > { %s2963_s16 = smov %s2965_s20  ;;  %16 = sbr.rel (!%p14_p3) target bundleno = 4 (0x4), region = 82 }
 0x408   :  { %1485 = vsyncpa [#allocation3], 1 }
 0x409   :  { %1487 = vsyncpa [#allocation3 + $0x1], 1 }

</bundles_post_ra>
